<compile_context>
chip_gen: v6e
topology: v6e:2x2x1
jax: 0.10.0
libtpu: 0.0.40
codegen_flags: <defaults>
</compile_context>

<pallas_src>
import functools
import math

import jax
import jax.numpy as jnp
from jax.experimental import pallas as pl
from jax.experimental.pallas import tpu as pltpu


# ----------------------------------------------------------------------------
# In-kernel helpers
# ----------------------------------------------------------------------------
def _lstm_dir_scan(gx, whh, *, T, B, H, reverse, dst_ref, dst_col,
                   coeff=None, store_scan_order=False):
    """One direction of an LSTM(Cell) scan, fully unrolled (T is small here).

    gx:       (T*B, 4H) f32 value: x @ W_ih + (b_ih + b_hh); rows in ORIGINAL
              time-major order (row t*B + b); gate columns ordered (i, f, o, g).
    whh:      (H, 4H) f32 value.
    dst_ref:  VMEM ref with T*B rows; the hidden state of each step is stored
              at dst_ref[row*B:(row+1)*B, dst_col:dst_col+H], where row is the
              scan step (store_scan_order=True) or the original time index.
    coeff:    optional (T*B, H) value of DTRN residual coefficients, rows in
              SCAN order; applied as h = cell(x) + coeff * h_prev for s > 0.
    """
    h = jnp.zeros((B, H), jnp.float32)
    c = jnp.zeros((B, H), jnp.float32)
    for s in range(T):
        src = (T - 1 - s) if reverse else s               # original-time index
        gates = gx[src * B:(src + 1) * B, :] + jnp.dot(
            h, whh, preferred_element_type=jnp.float32)
        sig = jax.nn.sigmoid(gates[:, :3 * H])            # i, f, o in one shot
        i_g = sig[:, 0 * H:1 * H]
        f_g = sig[:, 1 * H:2 * H]
        o_g = sig[:, 2 * H:3 * H]
        g_g = jnp.tanh(gates[:, 3 * H:])
        c = f_g * c + i_g * g_g
        h_cell = o_g * jnp.tanh(c)
        if coeff is not None and s > 0:
            # Post-residual h feeds both the next cell step and the next
            # residual term, exactly as in the PyTorch module.
            h = h_cell + coeff[s * B:(s + 1) * B, :] * h
        else:
            h = h_cell
        row = s if store_scan_order else src
        dst_ref[row * B:(row + 1) * B, dst_col:dst_col + H] = h


def _dtrn_fused_kernel(*refs, T, B, H_dcg, trn_hidden, discount):
    """Entire DTRN forward in one kernel invocation (no grid).

    refs = [x, dcg_wih, dcg_whh, dcg_b, lin_w, lin_b,
            (wih_i, whh_i, b_i) per TRN layer,            # inputs
            out,                                          # output
            h_dcg_scratch, act_scratch_0, ...]            # VMEM scratch
    Weight layouts (built by make_dtrn_params):
      *_wih: (Din, 8H) columns = [forward 4H | backward 4H], gate order (i,f,o,g)
      *_whh: (2, H, 4H)   per direction
      *_b:   (1, 8H)      b_ih + b_hh, columns like wih
      lin_w: (2, 1, H_dcg), lin_b: (2, 1, 1)
    """
    n_layers = len(trn_hidden)
    x_ref, dcg_wih_ref, dcg_whh_ref, dcg_b_ref, lw_ref, lb_ref = refs[:6]
    trn_refs = refs[6:6 + 3 * n_layers]
    out_ref = refs[6 + 3 * n_layers]
    scratch = refs[6 + 3 * n_layers + 1:]
    h_dcg_ref = scratch[0]            # (T*B, 2*H_dcg), rows in scan order
    act_refs = scratch[1:]            # one (T*B, 2*H_i) per non-final layer

    Hd = H_dcg
    x = x_ref[...]                                        # (T*B, D)

    # ---- DCG bidirectional LSTM: one fused input projection (fw|bw columns,
    #      bias folded in), then two independent, interleavable scan chains.
    gx = jnp.dot(x, dcg_wih_ref[...],
                 preferred_element_type=jnp.float32) + dcg_b_ref[...]
    _lstm_dir_scan(gx[:, :4 * Hd], dcg_whh_ref[0], T=T, B=B, H=Hd,
                   reverse=False, dst_ref=h_dcg_ref, dst_col=0,
                   store_scan_order=True)
    _lstm_dir_scan(gx[:, 4 * Hd:], dcg_whh_ref[1], T=T, B=B, H=Hd,
                   reverse=True, dst_ref=h_dcg_ref, dst_col=Hd,
                   store_scan_order=True)

    # ---- Coefficient head, hoisted out of the recurrence: one slab
    #      reduce + sigmoid per direction over all T steps at once.
    h_all = h_dcg_ref[...]                                # (T*B, 2*Hd)

    def head(col0, d):
        logit = jnp.sum(h_all[:, col0:col0 + Hd] * lw_ref[d], axis=-1,
                        keepdims=True) + lb_ref[d]
        return discount * jax.nn.sigmoid(logit)           # (T*B, 1), scan order

    coeff_fw = head(0, 0)
    coeff_bw = head(Hd, 1)

    # ---- TRN layers: DTRN residual LSTMCell scans; activations handed to the
    #      next layer through VMEM (no HBM round trips, no extra launches).
    layer_in = x
    for li, H in enumerate(trn_hidden):
        wih_ref, whh_ref, b_ref = trn_refs[3 * li:3 * li + 3]
        gxl = jnp.dot(layer_in, wih_ref[...],
                      preferred_element_type=jnp.float32) + b_ref[...]
        # Broadcast the (T*B, 1) coefficients across the hidden width once per
        # layer (kept out of the per-step loop).
        cfw = jnp.broadcast_to(coeff_fw, (T * B, H))
        cbw = jnp.broadcast_to(coeff_bw, (T * B, H))
        dst = out_ref if li == n_layers - 1 else act_refs[li]
        _lstm_dir_scan(gxl[:, :4 * H], whh_ref[0], T=T, B=B, H=H,
                       reverse=False, dst_ref=dst, dst_col=0, coeff=cfw)
        _lstm_dir_scan(gxl[:, 4 * H:], whh_ref[1], T=T, B=B, H=H,
                       reverse=True, dst_ref=dst, dst_col=H, coeff=cbw)
        if li < n_layers - 1:
            layer_in = dst[...]                           # (T*B, 2H) time-major


# ----------------------------------------------------------------------------
# pallas_call wrapper
# ----------------------------------------------------------------------------
def dtrn_forward(inputs, params, discount):
    B, T, D = inputs.shape
    # Time-major, batch-flattened rows: row (t*B + b) == inputs[b, t].
    x_flat = jnp.transpose(inputs, (1, 0, 2)).reshape(T * B, D)

    H_dcg = params["dcg"]["whh"].shape[1]
    trn_hidden = tuple(int(l["whh"].shape[1]) for l in params["trn"])
    H_last = trn_hidden[-1]

    trn_args = []
    for lyr in params["trn"]:
        trn_args += [lyr["wih"], lyr["whh"], lyr["b"]]

    scratch_shapes = [pltpu.VMEM((T * B, 2 * H_dcg), jnp.float32)]
    scratch_shapes += [pltpu.VMEM((T * B, 2 * h), jnp.float32)
                       for h in trn_hidden[:-1]]

    kernel = functools.partial(
        _dtrn_fused_kernel, T=T, B=B, H_dcg=H_dcg,
        trn_hidden=trn_hidden, discount=float(discount))

    out_flat = pl.pallas_call(
        kernel,
        out_shape=jax.ShapeDtypeStruct((T * B, 2 * H_last), jnp.float32),
        scratch_shapes=scratch_shapes,
        compiler_params=pltpu.CompilerParams(
            vmem_limit_bytes=32 * 1024 * 1024),
    )(x_flat, params["dcg"]["wih"], params["dcg"]["whh"], params["dcg"]["b"],
      params["lin_w"], params["lin_b"], *trn_args)

    # TODO(synk): at production sizes, emit batch-major from the kernel to
    #             avoid this transpose pass; negligible at these shapes.
    out = jnp.transpose(out_flat.reshape(T, B, 2 * H_last), (1, 0, 2))
    return out, None                                      # (B, T, 2*H_last)


# ----------------------------------------------------------------------------
# Parameter construction (deterministic, PyTorch-style uniform init)
# Gate order within each 4H block is (i, f, o, g).  When importing PyTorch
# weights (order (i, f, g, o)), permute wih/whh/b columns identically.
# ----------------------------------------------------------------------------
def _uniform(key, shape, bound):
    return jax.random.uniform(key, shape, jnp.float32, -bound, bound)


def _bilstm_params(key, in_dim, hidden):
    bound = 1.0 / math.sqrt(hidden)
    k1, k2, k3, k4 = jax.random.split(key, 4)
    return {
        "wih": _uniform(k1, (in_dim, 8 * hidden), bound),   # [fw 4H | bw 4H]
        "whh": _uniform(k2, (2, hidden, 4 * hidden), bound),
        "b": (_uniform(k3, (1, 8 * hidden), bound)
              + _uniform(k4, (1, 8 * hidden), bound)),      # b_ih + b_hh
    }


def make_dtrn_params(key, input_size, dcg_hidden, trn_hidden):
    keys = jax.random.split(key, 3 + len(trn_hidden))
    lin_bound = 1.0 / math.sqrt(dcg_hidden)
    params = {
        "dcg": _bilstm_params(keys[0], input_size, dcg_hidden),
        "lin_w": _uniform(keys[1], (2, 1, dcg_hidden), lin_bound),
        "lin_b": _uniform(keys[2], (2, 1, 1), lin_bound),
        "trn": [],
    }
    in_dim = input_size
    for i, h in enumerate(trn_hidden):
        params["trn"].append(_bilstm_params(keys[3 + i], in_dim, h))
        in_dim = 2 * h
    return params


# ----------------------------------------------------------------------------
# Pure-JAX reference (mirrors the PyTorch module), HIGHEST matmul precision.
# ----------------------------------------------------------------------------
def _ref_cell(x_t, h, c, wih, whh, b, H):
    hp = jax.lax.Precision.HIGHEST
    g = (jnp.dot(x_t, wih, precision=hp) + jnp.dot(h, whh, precision=hp) + b)
    i = jax.nn.sigmoid(g[:, 0 * H:1 * H])
    f = jax.nn.sigmoid(g[:, 1 * H:2 * H])
    o = jax.nn.sigmoid(g[:, 2 * H:3 * H])
    gg = jnp.tanh(g[:, 3 * H:4 * H])
    c_new = f * c + i * gg
    return o * jnp.tanh(c_new), c_new


def dtrn_reference(inputs, params, discount):
    B, T, _ = inputs.shape

    def plain_scan(x, wih, whh, b):
        H = whh.shape[0]
        h = jnp.zeros((B, H), jnp.float32)
        c = jnp.zeros((B, H), jnp.float32)
        hs = []
        for t in range(T):
            h, c = _ref_cell(x[:, t], h, c, wih, whh, b, H)
            hs.append(h)
        return jnp.stack(hs, axis=1)                      # (B, T, H)

    dcg = params["dcg"]
    Hd = dcg["whh"].shape[1]
    fw_out = plain_scan(inputs, dcg["wih"][:, :4 * Hd], dcg["whh"][0],
                        dcg["b"][:, :4 * Hd])
    bw_out = plain_scan(inputs[:, ::-1], dcg["wih"][:, 4 * Hd:], dcg["whh"][1],
                        dcg["b"][:, 4 * Hd:])[:, ::-1]    # original time order

    def head(x, w, bb):                                   # w:(1,Hd), bb:(1,1)
        return discount * jax.nn.sigmoid(
            jnp.sum(x * w, axis=-1, keepdims=True) + bb)

    fw_coeffs = head(fw_out, params["lin_w"][0], params["lin_b"][0])
    bw_coeffs_rev = head(bw_out, params["lin_w"][1], params["lin_b"][1])[:, ::-1]

    def trn_scan(x, wih, whh, b, coeff):                  # x, coeff: scan order
        H = whh.shape[0]
        h = jnp.zeros((B, H), jnp.float32)
        c = jnp.zeros((B, H), jnp.float32)
        hs = []
        for t in range(T):
            h_cell, c = _ref_cell(x[:, t], h, c, wih, whh, b, H)
            h = h_cell + coeff[:, t] * h if t > 0 else h_cell
            hs.append(h)
        return jnp.stack(hs, axis=1)

    layer_in = inputs
    out = None
    for lyr in params["trn"]:
        H = lyr["whh"].shape[1]
        fw = trn_scan(layer_in, lyr["wih"][:, :4 * H], lyr["whh"][0],
                      lyr["b"][:, :4 * H], fw_coeffs)
        bw = trn_scan(layer_in[:, ::-1], lyr["wih"][:, 4 * H:], lyr["whh"][1],
                      lyr["b"][:, 4 * H:], bw_coeffs_rev)[:, ::-1]
        out = jnp.concatenate([fw, bw], axis=-1)
        layer_in = out
    return out


# ----------------------------------------------------------------------------
if __name__ == "__main__":
    B, T, INPUT = 2, 8, 8
    DCG_HIDDEN = 16
    TRN_HIDDEN = (16, 16)
    DISCOUNT = 0.9

    key = jax.random.PRNGKey(0)
    pkey, xkey = jax.random.split(key)
    params = make_dtrn_params(pkey, INPUT, DCG_HIDDEN, TRN_HIDDEN)
    x = jax.random.normal(xkey, (B, T, INPUT), jnp.float32)

    fwd = jax.jit(functools.partial(dtrn_forward, discount=DISCOUNT))
    out, _ = fwd(x, params)
    out = jax.block_until_ready(out)

    assert out.shape == (B, T, 2 * TRN_HIDDEN[-1]), out.shape
    assert bool(jnp.all(jnp.isfinite(out)))

    # Numeric check vs a HIGHEST-precision pure-JAX reference (tightened from
    # 5e-2 to 1e-3; kernel matmuls are f32 with f32 accumulation).
    ref = dtrn_reference(x, params, DISCOUNT)
    max_err = float(jnp.max(jnp.abs(out - ref)))
    assert max_err < 1e-3, f"max abs error vs reference: {max_err}"

    print("KERNEL_OK")
</pallas_src>

<mosaic_0001>
module attributes {stable_mosaic.version = 11 : i64} {
  func.func @_dtrn_fused_kernel(%arg0: memref<16x8xf32, #tpu.memory_space<vmem>>, %arg1: memref<8x128xf32, #tpu.memory_space<vmem>>, %arg2: memref<2x16x64xf32, #tpu.memory_space<vmem>>, %arg3: memref<1x128xf32, #tpu.memory_space<vmem>>, %arg4: memref<2x1x16xf32, #tpu.memory_space<vmem>>, %arg5: memref<2x1x1xf32, #tpu.memory_space<vmem>>, %arg6: memref<8x128xf32, #tpu.memory_space<vmem>>, %arg7: memref<2x16x64xf32, #tpu.memory_space<vmem>>, %arg8: memref<1x128xf32, #tpu.memory_space<vmem>>, %arg9: memref<32x128xf32, #tpu.memory_space<vmem>>, %arg10: memref<2x16x64xf32, #tpu.memory_space<vmem>>, %arg11: memref<1x128xf32, #tpu.memory_space<vmem>>, %arg12: memref<16x32xf32, #tpu.memory_space<vmem>>, %arg13: memref<16x32xf32, #tpu.memory_space<vmem>>, %arg14: memref<16x32xf32, #tpu.memory_space<vmem>>) attributes {dimension_semantics = [], scalar_prefetch = 0 : i64, scratch_operands = 2 : i64, tpu.core_type = #tpu.core_type<tc>} {
    %c0 = arith.constant 0 : index
    %c0_0 = arith.constant 0 : index
    %0 = vector.load %arg0[%c0, %c0_0] : memref<16x8xf32, #tpu.memory_space<vmem>>, vector<16x8xf32>
    %c0_1 = arith.constant 0 : index
    %c0_2 = arith.constant 0 : index
    %1 = vector.load %arg1[%c0_1, %c0_2] : memref<8x128xf32, #tpu.memory_space<vmem>>, vector<8x128xf32>
    %cst = arith.constant dense<0.000000e+00> : vector<16x128xf32>
    %2 = tpu.matmul %0, %1, %cst {dimension_numbers = #tpu.dot_dimension_numbers<[1], [0], [0], [1], [0, 0, 1, 1], [], []>} : vector<16x8xf32>, vector<8x128xf32>, vector<16x128xf32> -> vector<16x128xf32>
    %c0_3 = arith.constant 0 : index
    %c0_4 = arith.constant 0 : index
    %3 = vector.load %arg3[%c0_3, %c0_4] : memref<1x128xf32, #tpu.memory_space<vmem>>, vector<1x128xf32>
    %4 = vector.broadcast %3 : vector<1x128xf32> to vector<16x128xf32>
    %5 = arith.addf %2, %4 : vector<16x128xf32>
    %6 = vector.extract_strided_slice %5 {offsets = [0, 0], sizes = [16, 64], strides = [1, 1]} : vector<16x128xf32> to vector<16x64xf32>
    %c0_5 = arith.constant 0 : index
    %c0_6 = arith.constant 0 : index
    %c0_7 = arith.constant 0 : index
    %7 = vector.load %arg2[%c0_5, %c0_6, %c0_7] : memref<2x16x64xf32, #tpu.memory_space<vmem>>, vector<1x16x64xf32>
    %8 = vector.shape_cast %7 : vector<1x16x64xf32> to vector<16x64xf32>
    %cst_8 = arith.constant 0.000000e+00 : f32
    %9 = vector.broadcast %cst_8 : f32 to vector<2x16xf32>
    %cst_9 = arith.constant 0.000000e+00 : f32
    %10 = vector.broadcast %cst_9 : f32 to vector<2x16xf32>
    %11 = vector.extract_strided_slice %6 {offsets = [0, 0], sizes = [2, 64], strides = [1, 1]} : vector<16x64xf32> to vector<2x64xf32>
    %cst_10 = arith.constant dense<0.000000e+00> : vector<2x64xf32>
    %12 = tpu.matmul %9, %8, %cst_10 {dimension_numbers = #tpu.dot_dimension_numbers<[1], [0], [0], [1], [0, 0, 1, 1], [], []>} : vector<2x16xf32>, vector<16x64xf32>, vector<2x64xf32> -> vector<2x64xf32>
    %13 = arith.addf %11, %12 : vector<2x64xf32>
    %14 = vector.extract_strided_slice %13 {offsets = [0, 0], sizes = [2, 48], strides = [1, 1]} : vector<2x64xf32> to vector<2x48xf32>
    %15 = arith.negf %14 : vector<2x48xf32>
    %16 = math.exp %15 : vector<2x48xf32>
    %cst_11 = arith.constant 1.000000e+00 : f32
    %17 = vector.broadcast %cst_11 : f32 to vector<2x48xf32>
    %18 = arith.addf %17, %16 : vector<2x48xf32>
    %19 = arith.divf %17, %18 : vector<2x48xf32>
    %20 = vector.extract_strided_slice %19 {offsets = [0, 0], sizes = [2, 16], strides = [1, 1]} : vector<2x48xf32> to vector<2x16xf32>
    %21 = vector.extract_strided_slice %19 {offsets = [0, 16], sizes = [2, 16], strides = [1, 1]} : vector<2x48xf32> to vector<2x16xf32>
    %22 = vector.extract_strided_slice %19 {offsets = [0, 32], sizes = [2, 16], strides = [1, 1]} : vector<2x48xf32> to vector<2x16xf32>
    %23 = vector.extract_strided_slice %13 {offsets = [0, 48], sizes = [2, 16], strides = [1, 1]} : vector<2x64xf32> to vector<2x16xf32>
    %24 = math.tanh %23 : vector<2x16xf32>
    %25 = arith.mulf %21, %10 : vector<2x16xf32>
    %26 = arith.mulf %20, %24 : vector<2x16xf32>
    %27 = arith.addf %25, %26 : vector<2x16xf32>
    %28 = math.tanh %27 : vector<2x16xf32>
    %29 = arith.mulf %22, %28 : vector<2x16xf32>
    %c0_12 = arith.constant 0 : index
    %c0_13 = arith.constant 0 : index
    %30 = vector.load %arg13[%c0_12, %c0_13] : memref<16x32xf32, #tpu.memory_space<vmem>>, vector<2x16xf32>
    tpu.vector_store %arg13[%c0_12, %c0_13], %29 {strides = array<i32>} : memref<16x32xf32, #tpu.memory_space<vmem>>, vector<2x16xf32>,
    %31 = vector.extract_strided_slice %6 {offsets = [2, 0], sizes = [2, 64], strides = [1, 1]} : vector<16x64xf32> to vector<2x64xf32>
    %cst_14 = arith.constant dense<0.000000e+00> : vector<2x64xf32>
    %32 = tpu.matmul %29, %8, %cst_14 {dimension_numbers = #tpu.dot_dimension_numbers<[1], [0], [0], [1], [0, 0, 1, 1], [], []>} : vector<2x16xf32>, vector<16x64xf32>, vector<2x64xf32> -> vector<2x64xf32>
    %33 = arith.addf %31, %32 : vector<2x64xf32>
    %34 = vector.extract_strided_slice %33 {offsets = [0, 0], sizes = [2, 48], strides = [1, 1]} : vector<2x64xf32> to vector<2x48xf32>
    %35 = arith.negf %34 : vector<2x48xf32>
    %36 = math.exp %35 : vector<2x48xf32>
    %cst_15 = arith.constant 1.000000e+00 : f32
    %37 = vector.broadcast %cst_15 : f32 to vector<2x48xf32>
    %38 = arith.addf %37, %36 : vector<2x48xf32>
    %39 = arith.divf %37, %38 : vector<2x48xf32>
    %40 = vector.extract_strided_slice %39 {offsets = [0, 0], sizes = [2, 16], strides = [1, 1]} : vector<2x48xf32> to vector<2x16xf32>
    %41 = vector.extract_strided_slice %39 {offsets = [0, 16], sizes = [2, 16], strides = [1, 1]} : vector<2x48xf32> to vector<2x16xf32>
    %42 = vector.extract_strided_slice %39 {offsets = [0, 32], sizes = [2, 16], strides = [1, 1]} : vector<2x48xf32> to vector<2x16xf32>
    %43 = vector.extract_strided_slice %33 {offsets = [0, 48], sizes = [2, 16], strides = [1, 1]} : vector<2x64xf32> to vector<2x16xf32>
    %44 = math.tanh %43 : vector<2x16xf32>
    %45 = arith.mulf %41, %27 : vector<2x16xf32>
    %46 = arith.mulf %40, %44 : vector<2x16xf32>
    %47 = arith.addf %45, %46 : vector<2x16xf32>
    %48 = math.tanh %47 : vector<2x16xf32>
    %49 = arith.mulf %42, %48 : vector<2x16xf32>
    %c2 = arith.constant 2 : index
    %c0_16 = arith.constant 0 : index
    %50 = vector.load %arg13[%c2, %c0_16] : memref<16x32xf32, #tpu.memory_space<vmem>>, vector<2x16xf32>
    tpu.vector_store %arg13[%c2, %c0_16], %49 {strides = array<i32>} : memref<16x32xf32, #tpu.memory_space<vmem>>, vector<2x16xf32>,
    %51 = vector.extract_strided_slice %6 {offsets = [4, 0], sizes = [2, 64], strides = [1, 1]} : vector<16x64xf32> to vector<2x64xf32>
    %cst_17 = arith.constant dense<0.000000e+00> : vector<2x64xf32>
    %52 = tpu.matmul %49, %8, %cst_17 {dimension_numbers = #tpu.dot_dimension_numbers<[1], [0], [0], [1], [0, 0, 1, 1], [], []>} : vector<2x16xf32>, vector<16x64xf32>, vector<2x64xf32> -> vector<2x64xf32>
    %53 = arith.addf %51, %52 : vector<2x64xf32>
    %54 = vector.extract_strided_slice %53 {offsets = [0, 0], sizes = [2, 48], strides = [1, 1]} : vector<2x64xf32> to vector<2x48xf32>
    %55 = arith.negf %54 : vector<2x48xf32>
    %56 = math.exp %55 : vector<2x48xf32>
    %cst_18 = arith.constant 1.000000e+00 : f32
    %57 = vector.broadcast %cst_18 : f32 to vector<2x48xf32>
    %58 = arith.addf %57, %56 : vector<2x48xf32>
    %59 = arith.divf %57, %58 : vector<2x48xf32>
    %60 = vector.extract_strided_slice %59 {offsets = [0, 0], sizes = [2, 16], strides = [1, 1]} : vector<2x48xf32> to vector<2x16xf32>
    %61 = vector.extract_strided_slice %59 {offsets = [0, 16], sizes = [2, 16], strides = [1, 1]} : vector<2x48xf32> to vector<2x16xf32>
    %62 = vector.extract_strided_slice %59 {offsets = [0, 32], sizes = [2, 16], strides = [1, 1]} : vector<2x48xf32> to vector<2x16xf32>
    %63 = vector.extract_strided_slice %53 {offsets = [0, 48], sizes = [2, 16], strides = [1, 1]} : vector<2x64xf32> to vector<2x16xf32>
    %64 = math.tanh %63 : vector<2x16xf32>
    %65 = arith.mulf %61, %47 : vector<2x16xf32>
    %66 = arith.mulf %60, %64 : vector<2x16xf32>
    %67 = arith.addf %65, %66 : vector<2x16xf32>
    %68 = math.tanh %67 : vector<2x16xf32>
    %69 = arith.mulf %62, %68 : vector<2x16xf32>
    %c4 = arith.constant 4 : index
    %c0_19 = arith.constant 0 : index
    %70 = vector.load %arg13[%c4, %c0_19] : memref<16x32xf32, #tpu.memory_space<vmem>>, vector<2x16xf32>
    tpu.vector_store %arg13[%c4, %c0_19], %69 {strides = array<i32>} : memref<16x32xf32, #tpu.memory_space<vmem>>, vector<2x16xf32>,
    %71 = vector.extract_strided_slice %6 {offsets = [6, 0], sizes = [2, 64], strides = [1, 1]} : vector<16x64xf32> to vector<2x64xf32>
    %cst_20 = arith.constant dense<0.000000e+00> : vector<2x64xf32>
    %72 = tpu.matmul %69, %8, %cst_20 {dimension_numbers = #tpu.dot_dimension_numbers<[1], [0], [0], [1], [0, 0, 1, 1], [], []>} : vector<2x16xf32>, vector<16x64xf32>, vector<2x64xf32> -> vector<2x64xf32>
    %73 = arith.addf %71, %72 : vector<2x64xf32>
    %74 = vector.extract_strided_slice %73 {offsets = [0, 0], sizes = [2, 48], strides = [1, 1]} : vector<2x64xf32> to vector<2x48xf32>
    %75 = arith.negf %74 : vector<2x48xf32>
    %76 = math.exp %75 : vector<2x48xf32>
    %cst_21 = arith.constant 1.000000e+00 : f32
    %77 = vector.broadcast %cst_21 : f32 to vector<2x48xf32>
    %78 = arith.addf %77, %76 : vector<2x48xf32>
    %79 = arith.divf %77, %78 : vector<2x48xf32>
    %80 = vector.extract_strided_slice %79 {offsets = [0, 0], sizes = [2, 16], strides = [1, 1]} : vector<2x48xf32> to vector<2x16xf32>
    %81 = vector.extract_strided_slice %79 {offsets = [0, 16], sizes = [2, 16], strides = [1, 1]} : vector<2x48xf32> to vector<2x16xf32>
    %82 = vector.extract_strided_slice %79 {offsets = [0, 32], sizes = [2, 16], strides = [1, 1]} : vector<2x48xf32> to vector<2x16xf32>
    %83 = vector.extract_strided_slice %73 {offsets = [0, 48], sizes = [2, 16], strides = [1, 1]} : vector<2x64xf32> to vector<2x16xf32>
    %84 = math.tanh %83 : vector<2x16xf32>
    %85 = arith.mulf %81, %67 : vector<2x16xf32>
    %86 = arith.mulf %80, %84 : vector<2x16xf32>
    %87 = arith.addf %85, %86 : vector<2x16xf32>
    %88 = math.tanh %87 : vector<2x16xf32>
    %89 = arith.mulf %82, %88 : vector<2x16xf32>
    %c6 = arith.constant 6 : index
    %c0_22 = arith.constant 0 : index
    %90 = vector.load %arg13[%c6, %c0_22] : memref<16x32xf32, #tpu.memory_space<vmem>>, vector<2x16xf32>
    tpu.vector_store %arg13[%c6, %c0_22], %89 {strides = array<i32>} : memref<16x32xf32, #tpu.memory_space<vmem>>, vector<2x16xf32>,
    %91 = vector.extract_strided_slice %6 {offsets = [8, 0], sizes = [2, 64], strides = [1, 1]} : vector<16x64xf32> to vector<2x64xf32>
    %cst_23 = arith.constant dense<0.000000e+00> : vector<2x64xf32>
    %92 = tpu.matmul %89, %8, %cst_23 {dimension_numbers = #tpu.dot_dimension_numbers<[1], [0], [0], [1], [0, 0, 1, 1], [], []>} : vector<2x16xf32>, vector<16x64xf32>, vector<2x64xf32> -> vector<2x64xf32>
    %93 = arith.addf %91, %92 : vector<2x64xf32>
    %94 = vector.extract_strided_slice %93 {offsets = [0, 0], sizes = [2, 48], strides = [1, 1]} : vector<2x64xf32> to vector<2x48xf32>
    %95 = arith.negf %94 : vector<2x48xf32>
    %96 = math.exp %95 : vector<2x48xf32>
    %cst_24 = arith.constant 1.000000e+00 : f32
    %97 = vector.broadcast %cst_24 : f32 to vector<2x48xf32>
    %98 = arith.addf %97, %96 : vector<2x48xf32>
    %99 = arith.divf %97, %98 : vector<2x48xf32>
    %100 = vector.extract_strided_slice %99 {offsets = [0, 0], sizes = [2, 16], strides = [1, 1]} : vector<2x48xf32> to vector<2x16xf32>
    %101 = vector.extract_strided_slice %99 {offsets = [0, 16], sizes = [2, 16], strides = [1, 1]} : vector<2x48xf32> to vector<2x16xf32>
    %102 = vector.extract_strided_slice %99 {offsets = [0, 32], sizes = [2, 16], strides = [1, 1]} : vector<2x48xf32> to vector<2x16xf32>
    %103 = vector.extract_strided_slice %93 {offsets = [0, 48], sizes = [2, 16], strides = [1, 1]} : vector<2x64xf32> to vector<2x16xf32>
    %104 = math.tanh %103 : vector<2x16xf32>
    %105 = arith.mulf %101, %87 : vector<2x16xf32>
    %106 = arith.mulf %100, %104 : vector<2x16xf32>
    %107 = arith.addf %105, %106 : vector<2x16xf32>
    %108 = math.tanh %107 : vector<2x16xf32>
    %109 = arith.mulf %102, %108 : vector<2x16xf32>
    %c8 = arith.constant 8 : index
    %c0_25 = arith.constant 0 : index
    %110 = vector.load %arg13[%c8, %c0_25] : memref<16x32xf32, #tpu.memory_space<vmem>>, vector<2x16xf32>
    tpu.vector_store %arg13[%c8, %c0_25], %109 {strides = array<i32>} : memref<16x32xf32, #tpu.memory_space<vmem>>, vector<2x16xf32>,
    %111 = vector.extract_strided_slice %6 {offsets = [10, 0], sizes = [2, 64], strides = [1, 1]} : vector<16x64xf32> to vector<2x64xf32>
    %cst_26 = arith.constant dense<0.000000e+00> : vector<2x64xf32>
    %112 = tpu.matmul %109, %8, %cst_26 {dimension_numbers = #tpu.dot_dimension_numbers<[1], [0], [0], [1], [0, 0, 1, 1], [], []>} : vector<2x16xf32>, vector<16x64xf32>, vector<2x64xf32> -> vector<2x64xf32>
    %113 = arith.addf %111, %112 : vector<2x64xf32>
    %114 = vector.extract_strided_slice %113 {offsets = [0, 0], sizes = [2, 48], strides = [1, 1]} : vector<2x64xf32> to vector<2x48xf32>
    %115 = arith.negf %114 : vector<2x48xf32>
    %116 = math.exp %115 : vector<2x48xf32>
    %cst_27 = arith.constant 1.000000e+00 : f32
    %117 = vector.broadcast %cst_27 : f32 to vector<2x48xf32>
    %118 = arith.addf %117, %116 : vector<2x48xf32>
    %119 = arith.divf %117, %118 : vector<2x48xf32>
    %120 = vector.extract_strided_slice %119 {offsets = [0, 0], sizes = [2, 16], strides = [1, 1]} : vector<2x48xf32> to vector<2x16xf32>
    %121 = vector.extract_strided_slice %119 {offsets = [0, 16], sizes = [2, 16], strides = [1, 1]} : vector<2x48xf32> to vector<2x16xf32>
    %122 = vector.extract_strided_slice %119 {offsets = [0, 32], sizes = [2, 16], strides = [1, 1]} : vector<2x48xf32> to vector<2x16xf32>
    %123 = vector.extract_strided_slice %113 {offsets = [0, 48], sizes = [2, 16], strides = [1, 1]} : vector<2x64xf32> to vector<2x16xf32>
    %124 = math.tanh %123 : vector<2x16xf32>
    %125 = arith.mulf %121, %107 : vector<2x16xf32>
    %126 = arith.mulf %120, %124 : vector<2x16xf32>
    %127 = arith.addf %125, %126 : vector<2x16xf32>
    %128 = math.tanh %127 : vector<2x16xf32>
    %129 = arith.mulf %122, %128 : vector<2x16xf32>
    %c10 = arith.constant 10 : index
    %c0_28 = arith.constant 0 : index
    %130 = vector.load %arg13[%c10, %c0_28] : memref<16x32xf32, #tpu.memory_space<vmem>>, vector<2x16xf32>
    tpu.vector_store %arg13[%c10, %c0_28], %129 {strides = array<i32>} : memref<16x32xf32, #tpu.memory_space<vmem>>, vector<2x16xf32>,
    %131 = vector.extract_strided_slice %6 {offsets = [12, 0], sizes = [2, 64], strides = [1, 1]} : vector<16x64xf32> to vector<2x64xf32>
    %cst_29 = arith.constant dense<0.000000e+00> : vector<2x64xf32>
    %132 = tpu.matmul %129, %8, %cst_29 {dimension_numbers = #tpu.dot_dimension_numbers<[1], [0], [0], [1], [0, 0, 1, 1], [], []>} : vector<2x16xf32>, vector<16x64xf32>, vector<2x64xf32> -> vector<2x64xf32>
    %133 = arith.addf %131, %132 : vector<2x64xf32>
    %134 = vector.extract_strided_slice %133 {offsets = [0, 0], sizes = [2, 48], strides = [1, 1]} : vector<2x64xf32> to vector<2x48xf32>
    %135 = arith.negf %134 : vector<2x48xf32>
    %136 = math.exp %135 : vector<2x48xf32>
    %cst_30 = arith.constant 1.000000e+00 : f32
    %137 = vector.broadcast %cst_30 : f32 to vector<2x48xf32>
    %138 = arith.addf %137, %136 : vector<2x48xf32>
    %139 = arith.divf %137, %138 : vector<2x48xf32>
    %140 = vector.extract_strided_slice %139 {offsets = [0, 0], sizes = [2, 16], strides = [1, 1]} : vector<2x48xf32> to vector<2x16xf32>
    %141 = vector.extract_strided_slice %139 {offsets = [0, 16], sizes = [2, 16], strides = [1, 1]} : vector<2x48xf32> to vector<2x16xf32>
    %142 = vector.extract_strided_slice %139 {offsets = [0, 32], sizes = [2, 16], strides = [1, 1]} : vector<2x48xf32> to vector<2x16xf32>
    %143 = vector.extract_strided_slice %133 {offsets = [0, 48], sizes = [2, 16], strides = [1, 1]} : vector<2x64xf32> to vector<2x16xf32>
    %144 = math.tanh %143 : vector<2x16xf32>
    %145 = arith.mulf %141, %127 : vector<2x16xf32>
    %146 = arith.mulf %140, %144 : vector<2x16xf32>
    %147 = arith.addf %145, %146 : vector<2x16xf32>
    %148 = math.tanh %147 : vector<2x16xf32>
    %149 = arith.mulf %142, %148 : vector<2x16xf32>
    %c12 = arith.constant 12 : index
    %c0_31 = arith.constant 0 : index
    %150 = vector.load %arg13[%c12, %c0_31] : memref<16x32xf32, #tpu.memory_space<vmem>>, vector<2x16xf32>
    tpu.vector_store %arg13[%c12, %c0_31], %149 {strides = array<i32>} : memref<16x32xf32, #tpu.memory_space<vmem>>, vector<2x16xf32>,
    %151 = vector.extract_strided_slice %6 {offsets = [14, 0], sizes = [2, 64], strides = [1, 1]} : vector<16x64xf32> to vector<2x64xf32>
    %cst_32 = arith.constant dense<0.000000e+00> : vector<2x64xf32>
    %152 = tpu.matmul %149, %8, %cst_32 {dimension_numbers = #tpu.dot_dimension_numbers<[1], [0], [0], [1], [0, 0, 1, 1], [], []>} : vector<2x16xf32>, vector<16x64xf32>, vector<2x64xf32> -> vector<2x64xf32>
    %153 = arith.addf %151, %152 : vector<2x64xf32>
    %154 = vector.extract_strided_slice %153 {offsets = [0, 0], sizes = [2, 48], strides = [1, 1]} : vector<2x64xf32> to vector<2x48xf32>
    %155 = arith.negf %154 : vector<2x48xf32>
    %156 = math.exp %155 : vector<2x48xf32>
    %cst_33 = arith.constant 1.000000e+00 : f32
    %157 = vector.broadcast %cst_33 : f32 to vector<2x48xf32>
    %158 = arith.addf %157, %156 : vector<2x48xf32>
    %159 = arith.divf %157, %158 : vector<2x48xf32>
    %160 = vector.extract_strided_slice %159 {offsets = [0, 0], sizes = [2, 16], strides = [1, 1]} : vector<2x48xf32> to vector<2x16xf32>
    %161 = vector.extract_strided_slice %159 {offsets = [0, 16], sizes = [2, 16], strides = [1, 1]} : vector<2x48xf32> to vector<2x16xf32>
    %162 = vector.extract_strided_slice %159 {offsets = [0, 32], sizes = [2, 16], strides = [1, 1]} : vector<2x48xf32> to vector<2x16xf32>
    %163 = vector.extract_strided_slice %153 {offsets = [0, 48], sizes = [2, 16], strides = [1, 1]} : vector<2x64xf32> to vector<2x16xf32>
    %164 = math.tanh %163 : vector<2x16xf32>
    %165 = arith.mulf %161, %147 : vector<2x16xf32>
    %166 = arith.mulf %160, %164 : vector<2x16xf32>
    %167 = arith.addf %165, %166 : vector<2x16xf32>
    %168 = math.tanh %167 : vector<2x16xf32>
    %169 = arith.mulf %162, %168 : vector<2x16xf32>
    %c14 = arith.constant 14 : index
    %c0_34 = arith.constant 0 : index
    %170 = vector.load %arg13[%c14, %c0_34] : memref<16x32xf32, #tpu.memory_space<vmem>>, vector<2x16xf32>
    tpu.vector_store %arg13[%c14, %c0_34], %169 {strides = array<i32>} : memref<16x32xf32, #tpu.memory_space<vmem>>, vector<2x16xf32>,
    %171 = vector.extract_strided_slice %5 {offsets = [0, 64], sizes = [16, 64], strides = [1, 1]} : vector<16x128xf32> to vector<16x64xf32>
    %c1 = arith.constant 1 : index
    %c0_35 = arith.constant 0 : index
    %c0_36 = arith.constant 0 : index
    %172 = vector.load %arg2[%c1, %c0_35, %c0_36] : memref<2x16x64xf32, #tpu.memory_space<vmem>>, vector<1x16x64xf32>
    %173 = vector.shape_cast %172 : vector<1x16x64xf32> to vector<16x64xf32>
    %cst_37 = arith.constant 0.000000e+00 : f32
    %174 = vector.broadcast %cst_37 : f32 to vector<2x16xf32>
    %cst_38 = arith.constant 0.000000e+00 : f32
    %175 = vector.broadcast %cst_38 : f32 to vector<2x16xf32>
    %176 = vector.extract_strided_slice %171 {offsets = [14, 0], sizes = [2, 64], strides = [1, 1]} : vector<16x64xf32> to vector<2x64xf32>
    %cst_39 = arith.constant dense<0.000000e+00> : vector<2x64xf32>
    %177 = tpu.matmul %174, %173, %cst_39 {dimension_numbers = #tpu.dot_dimension_numbers<[1], [0], [0], [1], [0, 0, 1, 1], [], []>} : vector<2x16xf32>, vector<16x64xf32>, vector<2x64xf32> -> vector<2x64xf32>
    %178 = arith.addf %176, %177 : vector<2x64xf32>
    %179 = vector.extract_strided_slice %178 {offsets = [0, 0], sizes = [2, 48], strides = [1, 1]} : vector<2x64xf32> to vector<2x48xf32>
    %180 = arith.negf %179 : vector<2x48xf32>
    %181 = math.exp %180 : vector<2x48xf32>
    %cst_40 = arith.constant 1.000000e+00 : f32
    %182 = vector.broadcast %cst_40 : f32 to vector<2x48xf32>
    %183 = arith.addf %182, %181 : vector<2x48xf32>
    %184 = arith.divf %182, %183 : vector<2x48xf32>
    %185 = vector.extract_strided_slice %184 {offsets = [0, 0], sizes = [2, 16], strides = [1, 1]} : vector<2x48xf32> to vector<2x16xf32>
    %186 = vector.extract_strided_slice %184 {offsets = [0, 16], sizes = [2, 16], strides = [1, 1]} : vector<2x48xf32> to vector<2x16xf32>
    %187 = vector.extract_strided_slice %184 {offsets = [0, 32], sizes = [2, 16], strides = [1, 1]} : vector<2x48xf32> to vector<2x16xf32>
    %188 = vector.extract_strided_slice %178 {offsets = [0, 48], sizes = [2, 16], strides = [1, 1]} : vector<2x64xf32> to vector<2x16xf32>
    %189 = math.tanh %188 : vector<2x16xf32>
    %190 = arith.mulf %186, %175 : vector<2x16xf32>
    %191 = arith.mulf %185, %189 : vector<2x16xf32>
    %192 = arith.addf %190, %191 : vector<2x16xf32>
    %193 = math.tanh %192 : vector<2x16xf32>
    %194 = arith.mulf %187, %193 : vector<2x16xf32>
    %c0_41 = arith.constant 0 : index
    %c16 = arith.constant 16 : index
    %195 = vector.load %arg13[%c0_41, %c16] : memref<16x32xf32, #tpu.memory_space<vmem>>, vector<2x16xf32>
    tpu.vector_store %arg13[%c0_41, %c16], %194 {strides = array<i32>} : memref<16x32xf32, #tpu.memory_space<vmem>>, vector<2x16xf32>,
    %196 = vector.extract_strided_slice %171 {offsets = [12, 0], sizes = [2, 64], strides = [1, 1]} : vector<16x64xf32> to vector<2x64xf32>
    %cst_42 = arith.constant dense<0.000000e+00> : vector<2x64xf32>
    %197 = tpu.matmul %194, %173, %cst_42 {dimension_numbers = #tpu.dot_dimension_numbers<[1], [0], [0], [1], [0, 0, 1, 1], [], []>} : vector<2x16xf32>, vector<16x64xf32>, vector<2x64xf32> -> vector<2x64xf32>
    %198 = arith.addf %196, %197 : vector<2x64xf32>
    %199 = vector.extract_strided_slice %198 {offsets = [0, 0], sizes = [2, 48], strides = [1, 1]} : vector<2x64xf32> to vector<2x48xf32>
    %200 = arith.negf %199 : vector<2x48xf32>
    %201 = math.exp %200 : vector<2x48xf32>
    %cst_43 = arith.constant 1.000000e+00 : f32
    %202 = vector.broadcast %cst_43 : f32 to vector<2x48xf32>
    %203 = arith.addf %202, %201 : vector<2x48xf32>
    %204 = arith.divf %202, %203 : vector<2x48xf32>
    %205 = vector.extract_strided_slice %204 {offsets = [0, 0], sizes = [2, 16], strides = [1, 1]} : vector<2x48xf32> to vector<2x16xf32>
    %206 = vector.extract_strided_slice %204 {offsets = [0, 16], sizes = [2, 16], strides = [1, 1]} : vector<2x48xf32> to vector<2x16xf32>
    %207 = vector.extract_strided_slice %204 {offsets = [0, 32], sizes = [2, 16], strides = [1, 1]} : vector<2x48xf32> to vector<2x16xf32>
    %208 = vector.extract_strided_slice %198 {offsets = [0, 48], sizes = [2, 16], strides = [1, 1]} : vector<2x64xf32> to vector<2x16xf32>
    %209 = math.tanh %208 : vector<2x16xf32>
    %210 = arith.mulf %206, %192 : vector<2x16xf32>
    %211 = arith.mulf %205, %209 : vector<2x16xf32>
    %212 = arith.addf %210, %211 : vector<2x16xf32>
    %213 = math.tanh %212 : vector<2x16xf32>
    %214 = arith.mulf %207, %213 : vector<2x16xf32>
    %c2_44 = arith.constant 2 : index
    %c16_45 = arith.constant 16 : index
    %215 = vector.load %arg13[%c2_44, %c16_45] : memref<16x32xf32, #tpu.memory_space<vmem>>, vector<2x16xf32>
    tpu.vector_store %arg13[%c2_44, %c16_45], %214 {strides = array<i32>} : memref<16x32xf32, #tpu.memory_space<vmem>>, vector<2x16xf32>,
    %216 = vector.extract_strided_slice %171 {offsets = [10, 0], sizes = [2, 64], strides = [1, 1]} : vector<16x64xf32> to vector<2x64xf32>
    %cst_46 = arith.constant dense<0.000000e+00> : vector<2x64xf32>
    %217 = tpu.matmul %214, %173, %cst_46 {dimension_numbers = #tpu.dot_dimension_numbers<[1], [0], [0], [1], [0, 0, 1, 1], [], []>} : vector<2x16xf32>, vector<16x64xf32>, vector<2x64xf32> -> vector<2x64xf32>
    %218 = arith.addf %216, %217 : vector<2x64xf32>
    %219 = vector.extract_strided_slice %218 {offsets = [0, 0], sizes = [2, 48], strides = [1, 1]} : vector<2x64xf32> to vector<2x48xf32>
    %220 = arith.negf %219 : vector<2x48xf32>
    %221 = math.exp %220 : vector<2x48xf32>
    %cst_47 = arith.constant 1.000000e+00 : f32
    %222 = vector.broadcast %cst_47 : f32 to vector<2x48xf32>
    %223 = arith.addf %222, %221 : vector<2x48xf32>
    %224 = arith.divf %222, %223 : vector<2x48xf32>
    %225 = vector.extract_strided_slice %224 {offsets = [0, 0], sizes = [2, 16], strides = [1, 1]} : vector<2x48xf32> to vector<2x16xf32>
    %226 = vector.extract_strided_slice %224 {offsets = [0, 16], sizes = [2, 16], strides = [1, 1]} : vector<2x48xf32> to vector<2x16xf32>
    %227 = vector.extract_strided_slice %224 {offsets = [0, 32], sizes = [2, 16], strides = [1, 1]} : vector<2x48xf32> to vector<2x16xf32>
    %228 = vector.extract_strided_slice %218 {offsets = [0, 48], sizes = [2, 16], strides = [1, 1]} : vector<2x64xf32> to vector<2x16xf32>
    %229 = math.tanh %228 : vector<2x16xf32>
    %230 = arith.mulf %226, %212 : vector<2x16xf32>
    %231 = arith.mulf %225, %229 : vector<2x16xf32>
    %232 = arith.addf %230, %231 : vector<2x16xf32>
    %233 = math.tanh %232 : vector<2x16xf32>
    %234 = arith.mulf %227, %233 : vector<2x16xf32>
    %c4_48 = arith.constant 4 : index
    %c16_49 = arith.constant 16 : index
    %235 = vector.load %arg13[%c4_48, %c16_49] : memref<16x32xf32, #tpu.memory_space<vmem>>, vector<2x16xf32>
    tpu.vector_store %arg13[%c4_48, %c16_49], %234 {strides = array<i32>} : memref<16x32xf32, #tpu.memory_space<vmem>>, vector<2x16xf32>,
    %236 = vector.extract_strided_slice %171 {offsets = [8, 0], sizes = [2, 64], strides = [1, 1]} : vector<16x64xf32> to vector<2x64xf32>
    %cst_50 = arith.constant dense<0.000000e+00> : vector<2x64xf32>
    %237 = tpu.matmul %234, %173, %cst_50 {dimension_numbers = #tpu.dot_dimension_numbers<[1], [0], [0], [1], [0, 0, 1, 1], [], []>} : vector<2x16xf32>, vector<16x64xf32>, vector<2x64xf32> -> vector<2x64xf32>
    %238 = arith.addf %236, %237 : vector<2x64xf32>
    %239 = vector.extract_strided_slice %238 {offsets = [0, 0], sizes = [2, 48], strides = [1, 1]} : vector<2x64xf32> to vector<2x48xf32>
    %240 = arith.negf %239 : vector<2x48xf32>
    %241 = math.exp %240 : vector<2x48xf32>
    %cst_51 = arith.constant 1.000000e+00 : f32
    %242 = vector.broadcast %cst_51 : f32 to vector<2x48xf32>
    %243 = arith.addf %242, %241 : vector<2x48xf32>
    %244 = arith.divf %242, %243 : vector<2x48xf32>
    %245 = vector.extract_strided_slice %244 {offsets = [0, 0], sizes = [2, 16], strides = [1, 1]} : vector<2x48xf32> to vector<2x16xf32>
    %246 = vector.extract_strided_slice %244 {offsets = [0, 16], sizes = [2, 16], strides = [1, 1]} : vector<2x48xf32> to vector<2x16xf32>
    %247 = vector.extract_strided_slice %244 {offsets = [0, 32], sizes = [2, 16], strides = [1, 1]} : vector<2x48xf32> to vector<2x16xf32>
    %248 = vector.extract_strided_slice %238 {offsets = [0, 48], sizes = [2, 16], strides = [1, 1]} : vector<2x64xf32> to vector<2x16xf32>
    %249 = math.tanh %248 : vector<2x16xf32>
    %250 = arith.mulf %246, %232 : vector<2x16xf32>
    %251 = arith.mulf %245, %249 : vector<2x16xf32>
    %252 = arith.addf %250, %251 : vector<2x16xf32>
    %253 = math.tanh %252 : vector<2x16xf32>
    %254 = arith.mulf %247, %253 : vector<2x16xf32>
    %c6_52 = arith.constant 6 : index
    %c16_53 = arith.constant 16 : index
    %255 = vector.load %arg13[%c6_52, %c16_53] : memref<16x32xf32, #tpu.memory_space<vmem>>, vector<2x16xf32>
    tpu.vector_store %arg13[%c6_52, %c16_53], %254 {strides = array<i32>} : memref<16x32xf32, #tpu.memory_space<vmem>>, vector<2x16xf32>,
    %256 = vector.extract_strided_slice %171 {offsets = [6, 0], sizes = [2, 64], strides = [1, 1]} : vector<16x64xf32> to vector<2x64xf32>
    %cst_54 = arith.constant dense<0.000000e+00> : vector<2x64xf32>
    %257 = tpu.matmul %254, %173, %cst_54 {dimension_numbers = #tpu.dot_dimension_numbers<[1], [0], [0], [1], [0, 0, 1, 1], [], []>} : vector<2x16xf32>, vector<16x64xf32>, vector<2x64xf32> -> vector<2x64xf32>
    %258 = arith.addf %256, %257 : vector<2x64xf32>
    %259 = vector.extract_strided_slice %258 {offsets = [0, 0], sizes = [2, 48], strides = [1, 1]} : vector<2x64xf32> to vector<2x48xf32>
    %260 = arith.negf %259 : vector<2x48xf32>
    %261 = math.exp %260 : vector<2x48xf32>
    %cst_55 = arith.constant 1.000000e+00 : f32
    %262 = vector.broadcast %cst_55 : f32 to vector<2x48xf32>
    %263 = arith.addf %262, %261 : vector<2x48xf32>
    %264 = arith.divf %262, %263 : vector<2x48xf32>
    %265 = vector.extract_strided_slice %264 {offsets = [0, 0], sizes = [2, 16], strides = [1, 1]} : vector<2x48xf32> to vector<2x16xf32>
    %266 = vector.extract_strided_slice %264 {offsets = [0, 16], sizes = [2, 16], strides = [1, 1]} : vector<2x48xf32> to vector<2x16xf32>
    %267 = vector.extract_strided_slice %264 {offsets = [0, 32], sizes = [2, 16], strides = [1, 1]} : vector<2x48xf32> to vector<2x16xf32>
    %268 = vector.extract_strided_slice %258 {offsets = [0, 48], sizes = [2, 16], strides = [1, 1]} : vector<2x64xf32> to vector<2x16xf32>
    %269 = math.tanh %268 : vector<2x16xf32>
    %270 = arith.mulf %266, %252 : vector<2x16xf32>
    %271 = arith.mulf %265, %269 : vector<2x16xf32>
    %272 = arith.addf %270, %271 : vector<2x16xf32>
    %273 = math.tanh %272 : vector<2x16xf32>
    %274 = arith.mulf %267, %273 : vector<2x16xf32>
    %c8_56 = arith.constant 8 : index
    %c16_57 = arith.constant 16 : index
    %275 = vector.load %arg13[%c8_56, %c16_57] : memref<16x32xf32, #tpu.memory_space<vmem>>, vector<2x16xf32>
    tpu.vector_store %arg13[%c8_56, %c16_57], %274 {strides = array<i32>} : memref<16x32xf32, #tpu.memory_space<vmem>>, vector<2x16xf32>,
    %276 = vector.extract_strided_slice %171 {offsets = [4, 0], sizes = [2, 64], strides = [1, 1]} : vector<16x64xf32> to vector<2x64xf32>
    %cst_58 = arith.constant dense<0.000000e+00> : vector<2x64xf32>
    %277 = tpu.matmul %274, %173, %cst_58 {dimension_numbers = #tpu.dot_dimension_numbers<[1], [0], [0], [1], [0, 0, 1, 1], [], []>} : vector<2x16xf32>, vector<16x64xf32>, vector<2x64xf32> -> vector<2x64xf32>
    %278 = arith.addf %276, %277 : vector<2x64xf32>
    %279 = vector.extract_strided_slice %278 {offsets = [0, 0], sizes = [2, 48], strides = [1, 1]} : vector<2x64xf32> to vector<2x48xf32>
    %280 = arith.negf %279 : vector<2x48xf32>
    %281 = math.exp %280 : vector<2x48xf32>
    %cst_59 = arith.constant 1.000000e+00 : f32
    %282 = vector.broadcast %cst_59 : f32 to vector<2x48xf32>
    %283 = arith.addf %282, %281 : vector<2x48xf32>
    %284 = arith.divf %282, %283 : vector<2x48xf32>
    %285 = vector.extract_strided_slice %284 {offsets = [0, 0], sizes = [2, 16], strides = [1, 1]} : vector<2x48xf32> to vector<2x16xf32>
    %286 = vector.extract_strided_slice %284 {offsets = [0, 16], sizes = [2, 16], strides = [1, 1]} : vector<2x48xf32> to vector<2x16xf32>
    %287 = vector.extract_strided_slice %284 {offsets = [0, 32], sizes = [2, 16], strides = [1, 1]} : vector<2x48xf32> to vector<2x16xf32>
    %288 = vector.extract_strided_slice %278 {offsets = [0, 48], sizes = [2, 16], strides = [1, 1]} : vector<2x64xf32> to vector<2x16xf32>
    %289 = math.tanh %288 : vector<2x16xf32>
    %290 = arith.mulf %286, %272 : vector<2x16xf32>
    %291 = arith.mulf %285, %289 : vector<2x16xf32>
    %292 = arith.addf %290, %291 : vector<2x16xf32>
    %293 = math.tanh %292 : vector<2x16xf32>
    %294 = arith.mulf %287, %293 : vector<2x16xf32>
    %c10_60 = arith.constant 10 : index
    %c16_61 = arith.constant 16 : index
    %295 = vector.load %arg13[%c10_60, %c16_61] : memref<16x32xf32, #tpu.memory_space<vmem>>, vector<2x16xf32>
    tpu.vector_store %arg13[%c10_60, %c16_61], %294 {strides = array<i32>} : memref<16x32xf32, #tpu.memory_space<vmem>>, vector<2x16xf32>,
    %296 = vector.extract_strided_slice %171 {offsets = [2, 0], sizes = [2, 64], strides = [1, 1]} : vector<16x64xf32> to vector<2x64xf32>
    %cst_62 = arith.constant dense<0.000000e+00> : vector<2x64xf32>
    %297 = tpu.matmul %294, %173, %cst_62 {dimension_numbers = #tpu.dot_dimension_numbers<[1], [0], [0], [1], [0, 0, 1, 1], [], []>} : vector<2x16xf32>, vector<16x64xf32>, vector<2x64xf32> -> vector<2x64xf32>
    %298 = arith.addf %296, %297 : vector<2x64xf32>
    %299 = vector.extract_strided_slice %298 {offsets = [0, 0], sizes = [2, 48], strides = [1, 1]} : vector<2x64xf32> to vector<2x48xf32>
    %300 = arith.negf %299 : vector<2x48xf32>
    %301 = math.exp %300 : vector<2x48xf32>
    %cst_63 = arith.constant 1.000000e+00 : f32
    %302 = vector.broadcast %cst_63 : f32 to vector<2x48xf32>
    %303 = arith.addf %302, %301 : vector<2x48xf32>
    %304 = arith.divf %302, %303 : vector<2x48xf32>
    %305 = vector.extract_strided_slice %304 {offsets = [0, 0], sizes = [2, 16], strides = [1, 1]} : vector<2x48xf32> to vector<2x16xf32>
    %306 = vector.extract_strided_slice %304 {offsets = [0, 16], sizes = [2, 16], strides = [1, 1]} : vector<2x48xf32> to vector<2x16xf32>
    %307 = vector.extract_strided_slice %304 {offsets = [0, 32], sizes = [2, 16], strides = [1, 1]} : vector<2x48xf32> to vector<2x16xf32>
    %308 = vector.extract_strided_slice %298 {offsets = [0, 48], sizes = [2, 16], strides = [1, 1]} : vector<2x64xf32> to vector<2x16xf32>
    %309 = math.tanh %308 : vector<2x16xf32>
    %310 = arith.mulf %306, %292 : vector<2x16xf32>
    %311 = arith.mulf %305, %309 : vector<2x16xf32>
    %312 = arith.addf %310, %311 : vector<2x16xf32>
    %313 = math.tanh %312 : vector<2x16xf32>
    %314 = arith.mulf %307, %313 : vector<2x16xf32>
    %c12_64 = arith.constant 12 : index
    %c16_65 = arith.constant 16 : index
    %315 = vector.load %arg13[%c12_64, %c16_65] : memref<16x32xf32, #tpu.memory_space<vmem>>, vector<2x16xf32>
    tpu.vector_store %arg13[%c12_64, %c16_65], %314 {strides = array<i32>} : memref<16x32xf32, #tpu.memory_space<vmem>>, vector<2x16xf32>,
    %316 = vector.extract_strided_slice %171 {offsets = [0, 0], sizes = [2, 64], strides = [1, 1]} : vector<16x64xf32> to vector<2x64xf32>
    %cst_66 = arith.constant dense<0.000000e+00> : vector<2x64xf32>
    %317 = tpu.matmul %314, %173, %cst_66 {dimension_numbers = #tpu.dot_dimension_numbers<[1], [0], [0], [1], [0, 0, 1, 1], [], []>} : vector<2x16xf32>, vector<16x64xf32>, vector<2x64xf32> -> vector<2x64xf32>
    %318 = arith.addf %316, %317 : vector<2x64xf32>
    %319 = vector.extract_strided_slice %318 {offsets = [0, 0], sizes = [2, 48], strides = [1, 1]} : vector<2x64xf32> to vector<2x48xf32>
    %320 = arith.negf %319 : vector<2x48xf32>
    %321 = math.exp %320 : vector<2x48xf32>
    %cst_67 = arith.constant 1.000000e+00 : f32
    %322 = vector.broadcast %cst_67 : f32 to vector<2x48xf32>
    %323 = arith.addf %322, %321 : vector<2x48xf32>
    %324 = arith.divf %322, %323 : vector<2x48xf32>
    %325 = vector.extract_strided_slice %324 {offsets = [0, 0], sizes = [2, 16], strides = [1, 1]} : vector<2x48xf32> to vector<2x16xf32>
    %326 = vector.extract_strided_slice %324 {offsets = [0, 16], sizes = [2, 16], strides = [1, 1]} : vector<2x48xf32> to vector<2x16xf32>
    %327 = vector.extract_strided_slice %324 {offsets = [0, 32], sizes = [2, 16], strides = [1, 1]} : vector<2x48xf32> to vector<2x16xf32>
    %328 = vector.extract_strided_slice %318 {offsets = [0, 48], sizes = [2, 16], strides = [1, 1]} : vector<2x64xf32> to vector<2x16xf32>
    %329 = math.tanh %328 : vector<2x16xf32>
    %330 = arith.mulf %326, %312 : vector<2x16xf32>
    %331 = arith.mulf %325, %329 : vector<2x16xf32>
    %332 = arith.addf %330, %331 : vector<2x16xf32>
    %333 = math.tanh %332 : vector<2x16xf32>
    %334 = arith.mulf %327, %333 : vector<2x16xf32>
    %c14_68 = arith.constant 14 : index
    %c16_69 = arith.constant 16 : index
    %335 = vector.load %arg13[%c14_68, %c16_69] : memref<16x32xf32, #tpu.memory_space<vmem>>, vector<2x16xf32>
    tpu.vector_store %arg13[%c14_68, %c16_69], %334 {strides = array<i32>} : memref<16x32xf32, #tpu.memory_space<vmem>>, vector<2x16xf32>,
    %c0_70 = arith.constant 0 : index
    %c0_71 = arith.constant 0 : index
    %336 = vector.load %arg13[%c0_70, %c0_71] : memref<16x32xf32, #tpu.memory_space<vmem>>, vector<16x32xf32>
    %337 = vector.extract_strided_slice %336 {offsets = [0, 0], sizes = [16, 16], strides = [1, 1]} : vector<16x32xf32> to vector<16x16xf32>
    %c0_72 = arith.constant 0 : index
    %c0_73 = arith.constant 0 : index
    %c0_74 = arith.constant 0 : index
    %338 = vector.load %arg4[%c0_72, %c0_73, %c0_74] : memref<2x1x16xf32, #tpu.memory_space<vmem>>, vector<1x1x16xf32>
    %339 = vector.shape_cast %338 : vector<1x1x16xf32> to vector<1x16xf32>
    %340 = vector.broadcast %339 : vector<1x16xf32> to vector<16x16xf32>
    %341 = arith.mulf %337, %340 : vector<16x16xf32>
    %cst_75 = arith.constant dense<0.000000e+00> : vector<16xf32>
    %342 = vector.multi_reduction <add>, %341, %cst_75 [1] : vector<16x16xf32> to vector<16xf32>
    %343 = vector.shape_cast %342 : vector<16xf32> to vector<16x1xf32>
    %c0_76 = arith.constant 0 : index
    %c0_77 = arith.constant 0 : index
    %c0_78 = arith.constant 0 : index
    %344 = vector.load %arg5[%c0_76, %c0_77, %c0_78] : memref<2x1x1xf32, #tpu.memory_space<vmem>>, vector<1x1x1xf32>
    %345 = vector.shape_cast %344 : vector<1x1x1xf32> to vector<1x1xf32>
    %346 = vector.broadcast %345 : vector<1x1xf32> to vector<16x1xf32>
    %347 = arith.addf %343, %346 : vector<16x1xf32>
    %348 = arith.negf %347 : vector<16x1xf32>
    %349 = math.exp %348 : vector<16x1xf32>
    %cst_79 = arith.constant 1.000000e+00 : f32
    %350 = vector.broadcast %cst_79 : f32 to vector<16x1xf32>
    %351 = arith.addf %350, %349 : vector<16x1xf32>
    %352 = arith.divf %350, %351 : vector<16x1xf32>
    %cst_80 = arith.constant 0.899999976 : f32
    %353 = vector.broadcast %cst_80 : f32 to vector<16x1xf32>
    %354 = arith.mulf %353, %352 : vector<16x1xf32>
    %355 = vector.extract_strided_slice %336 {offsets = [0, 16], sizes = [16, 16], strides = [1, 1]} : vector<16x32xf32> to vector<16x16xf32>
    %c1_81 = arith.constant 1 : index
    %c0_82 = arith.constant 0 : index
    %c0_83 = arith.constant 0 : index
    %356 = vector.load %arg4[%c1_81, %c0_82, %c0_83] : memref<2x1x16xf32, #tpu.memory_space<vmem>>, vector<1x1x16xf32>
    %357 = vector.shape_cast %356 : vector<1x1x16xf32> to vector<1x16xf32>
    %358 = vector.broadcast %357 : vector<1x16xf32> to vector<16x16xf32>
    %359 = arith.mulf %355, %358 : vector<16x16xf32>
    %cst_84 = arith.constant dense<0.000000e+00> : vector<16xf32>
    %360 = vector.multi_reduction <add>, %359, %cst_84 [1] : vector<16x16xf32> to vector<16xf32>
    %361 = vector.shape_cast %360 : vector<16xf32> to vector<16x1xf32>
    %c1_85 = arith.constant 1 : index
    %c0_86 = arith.constant 0 : index
    %c0_87 = arith.constant 0 : index
    %362 = vector.load %arg5[%c1_85, %c0_86, %c0_87] : memref<2x1x1xf32, #tpu.memory_space<vmem>>, vector<1x1x1xf32>
    %363 = vector.shape_cast %362 : vector<1x1x1xf32> to vector<1x1xf32>
    %364 = vector.broadcast %363 : vector<1x1xf32> to vector<16x1xf32>
    %365 = arith.addf %361, %364 : vector<16x1xf32>
    %366 = arith.negf %365 : vector<16x1xf32>
    %367 = math.exp %366 : vector<16x1xf32>
    %cst_88 = arith.constant 1.000000e+00 : f32
    %368 = vector.broadcast %cst_88 : f32 to vector<16x1xf32>
    %369 = arith.addf %368, %367 : vector<16x1xf32>
    %370 = arith.divf %368, %369 : vector<16x1xf32>
    %cst_89 = arith.constant 0.899999976 : f32
    %371 = vector.broadcast %cst_89 : f32 to vector<16x1xf32>
    %372 = arith.mulf %371, %370 : vector<16x1xf32>
    %c0_90 = arith.constant 0 : index
    %c0_91 = arith.constant 0 : index
    %373 = vector.load %arg6[%c0_90, %c0_91] : memref<8x128xf32, #tpu.memory_space<vmem>>, vector<8x128xf32>
    %cst_92 = arith.constant dense<0.000000e+00> : vector<16x128xf32>
    %374 = tpu.matmul %0, %373, %cst_92 {dimension_numbers = #tpu.dot_dimension_numbers<[1], [0], [0], [1], [0, 0, 1, 1], [], []>} : vector<16x8xf32>, vector<8x128xf32>, vector<16x128xf32> -> vector<16x128xf32>
    %c0_93 = arith.constant 0 : index
    %c0_94 = arith.constant 0 : index
    %375 = vector.load %arg8[%c0_93, %c0_94] : memref<1x128xf32, #tpu.memory_space<vmem>>, vector<1x128xf32>
    %376 = vector.broadcast %375 : vector<1x128xf32> to vector<16x128xf32>
    %377 = arith.addf %374, %376 : vector<16x128xf32>
    %378 = vector.shape_cast %354 : vector<16x1xf32> to vector<16x1xf32>
    %379 = vector.broadcast %378 : vector<16x1xf32> to vector<16x16xf32>
    %380 = vector.shape_cast %372 : vector<16x1xf32> to vector<16x1xf32>
    %381 = vector.broadcast %380 : vector<16x1xf32> to vector<16x16xf32>
    %382 = vector.extract_strided_slice %377 {offsets = [0, 0], sizes = [16, 64], strides = [1, 1]} : vector<16x128xf32> to vector<16x64xf32>
    %c0_95 = arith.constant 0 : index
    %c0_96 = arith.constant 0 : index
    %c0_97 = arith.constant 0 : index
    %383 = vector.load %arg7[%c0_95, %c0_96, %c0_97] : memref<2x16x64xf32, #tpu.memory_space<vmem>>, vector<1x16x64xf32>
    %384 = vector.shape_cast %383 : vector<1x16x64xf32> to vector<16x64xf32>
    %cst_98 = arith.constant 0.000000e+00 : f32
    %385 = vector.broadcast %cst_98 : f32 to vector<2x16xf32>
    %cst_99 = arith.constant 0.000000e+00 : f32
    %386 = vector.broadcast %cst_99 : f32 to vector<2x16xf32>
    %387 = vector.extract_strided_slice %382 {offsets = [0, 0], sizes = [2, 64], strides = [1, 1]} : vector<16x64xf32> to vector<2x64xf32>
    %cst_100 = arith.constant dense<0.000000e+00> : vector<2x64xf32>
    %388 = tpu.matmul %385, %384, %cst_100 {dimension_numbers = #tpu.dot_dimension_numbers<[1], [0], [0], [1], [0, 0, 1, 1], [], []>} : vector<2x16xf32>, vector<16x64xf32>, vector<2x64xf32> -> vector<2x64xf32>
    %389 = arith.addf %387, %388 : vector<2x64xf32>
    %390 = vector.extract_strided_slice %389 {offsets = [0, 0], sizes = [2, 48], strides = [1, 1]} : vector<2x64xf32> to vector<2x48xf32>
    %391 = arith.negf %390 : vector<2x48xf32>
    %392 = math.exp %391 : vector<2x48xf32>
    %cst_101 = arith.constant 1.000000e+00 : f32
    %393 = vector.broadcast %cst_101 : f32 to vector<2x48xf32>
    %394 = arith.addf %393, %392 : vector<2x48xf32>
    %395 = arith.divf %393, %394 : vector<2x48xf32>
    %396 = vector.extract_strided_slice %395 {offsets = [0, 0], sizes = [2, 16], strides = [1, 1]} : vector<2x48xf32> to vector<2x16xf32>
    %397 = vector.extract_strided_slice %395 {offsets = [0, 16], sizes = [2, 16], strides = [1, 1]} : vector<2x48xf32> to vector<2x16xf32>
    %398 = vector.extract_strided_slice %395 {offsets = [0, 32], sizes = [2, 16], strides = [1, 1]} : vector<2x48xf32> to vector<2x16xf32>
    %399 = vector.extract_strided_slice %389 {offsets = [0, 48], sizes = [2, 16], strides = [1, 1]} : vector<2x64xf32> to vector<2x16xf32>
    %400 = math.tanh %399 : vector<2x16xf32>
    %401 = arith.mulf %397, %386 : vector<2x16xf32>
    %402 = arith.mulf %396, %400 : vector<2x16xf32>
    %403 = arith.addf %401, %402 : vector<2x16xf32>
    %404 = math.tanh %403 : vector<2x16xf32>
    %405 = arith.mulf %398, %404 : vector<2x16xf32>
    %c0_102 = arith.constant 0 : index
    %c0_103 = arith.constant 0 : index
    %406 = vector.load %arg14[%c0_102, %c0_103] : memref<16x32xf32, #tpu.memory_space<vmem>>, vector<2x16xf32>
    tpu.vector_store %arg14[%c0_102, %c0_103], %405 {strides = array<i32>} : memref<16x32xf32, #tpu.memory_space<vmem>>, vector<2x16xf32>,
    %407 = vector.extract_strided_slice %382 {offsets = [2, 0], sizes = [2, 64], strides = [1, 1]} : vector<16x64xf32> to vector<2x64xf32>
    %cst_104 = arith.constant dense<0.000000e+00> : vector<2x64xf32>
    %408 = tpu.matmul %405, %384, %cst_104 {dimension_numbers = #tpu.dot_dimension_numbers<[1], [0], [0], [1], [0, 0, 1, 1], [], []>} : vector<2x16xf32>, vector<16x64xf32>, vector<2x64xf32> -> vector<2x64xf32>
    %409 = arith.addf %407, %408 : vector<2x64xf32>
    %410 = vector.extract_strided_slice %409 {offsets = [0, 0], sizes = [2, 48], strides = [1, 1]} : vector<2x64xf32> to vector<2x48xf32>
    %411 = arith.negf %410 : vector<2x48xf32>
    %412 = math.exp %411 : vector<2x48xf32>
    %cst_105 = arith.constant 1.000000e+00 : f32
    %413 = vector.broadcast %cst_105 : f32 to vector<2x48xf32>
    %414 = arith.addf %413, %412 : vector<2x48xf32>
    %415 = arith.divf %413, %414 : vector<2x48xf32>
    %416 = vector.extract_strided_slice %415 {offsets = [0, 0], sizes = [2, 16], strides = [1, 1]} : vector<2x48xf32> to vector<2x16xf32>
    %417 = vector.extract_strided_slice %415 {offsets = [0, 16], sizes = [2, 16], strides = [1, 1]} : vector<2x48xf32> to vector<2x16xf32>
    %418 = vector.extract_strided_slice %415 {offsets = [0, 32], sizes = [2, 16], strides = [1, 1]} : vector<2x48xf32> to vector<2x16xf32>
    %419 = vector.extract_strided_slice %409 {offsets = [0, 48], sizes = [2, 16], strides = [1, 1]} : vector<2x64xf32> to vector<2x16xf32>
    %420 = math.tanh %419 : vector<2x16xf32>
    %421 = arith.mulf %417, %403 : vector<2x16xf32>
    %422 = arith.mulf %416, %420 : vector<2x16xf32>
    %423 = arith.addf %421, %422 : vector<2x16xf32>
    %424 = math.tanh %423 : vector<2x16xf32>
    %425 = arith.mulf %418, %424 : vector<2x16xf32>
    %426 = vector.extract_strided_slice %379 {offsets = [2, 0], sizes = [2, 16], strides = [1, 1]} : vector<16x16xf32> to vector<2x16xf32>
    %427 = arith.mulf %426, %405 : vector<2x16xf32>
    %428 = arith.addf %425, %427 : vector<2x16xf32>
    %c2_106 = arith.constant 2 : index
    %c0_107 = arith.constant 0 : index
    %429 = vector.load %arg14[%c2_106, %c0_107] : memref<16x32xf32, #tpu.memory_space<vmem>>, vector<2x16xf32>
    tpu.vector_store %arg14[%c2_106, %c0_107], %428 {strides = array<i32>} : memref<16x32xf32, #tpu.memory_space<vmem>>, vector<2x16xf32>,
    %430 = vector.extract_strided_slice %382 {offsets = [4, 0], sizes = [2, 64], strides = [1, 1]} : vector<16x64xf32> to vector<2x64xf32>
    %cst_108 = arith.constant dense<0.000000e+00> : vector<2x64xf32>
    %431 = tpu.matmul %428, %384, %cst_108 {dimension_numbers = #tpu.dot_dimension_numbers<[1], [0], [0], [1], [0, 0, 1, 1], [], []>} : vector<2x16xf32>, vector<16x64xf32>, vector<2x64xf32> -> vector<2x64xf32>
    %432 = arith.addf %430, %431 : vector<2x64xf32>
    %433 = vector.extract_strided_slice %432 {offsets = [0, 0], sizes = [2, 48], strides = [1, 1]} : vector<2x64xf32> to vector<2x48xf32>
    %434 = arith.negf %433 : vector<2x48xf32>
    %435 = math.exp %434 : vector<2x48xf32>
    %cst_109 = arith.constant 1.000000e+00 : f32
    %436 = vector.broadcast %cst_109 : f32 to vector<2x48xf32>
    %437 = arith.addf %436, %435 : vector<2x48xf32>
    %438 = arith.divf %436, %437 : vector<2x48xf32>
    %439 = vector.extract_strided_slice %438 {offsets = [0, 0], sizes = [2, 16], strides = [1, 1]} : vector<2x48xf32> to vector<2x16xf32>
    %440 = vector.extract_strided_slice %438 {offsets = [0, 16], sizes = [2, 16], strides = [1, 1]} : vector<2x48xf32> to vector<2x16xf32>
    %441 = vector.extract_strided_slice %438 {offsets = [0, 32], sizes = [2, 16], strides = [1, 1]} : vector<2x48xf32> to vector<2x16xf32>
    %442 = vector.extract_strided_slice %432 {offsets = [0, 48], sizes = [2, 16], strides = [1, 1]} : vector<2x64xf32> to vector<2x16xf32>
    %443 = math.tanh %442 : vector<2x16xf32>
    %444 = arith.mulf %440, %423 : vector<2x16xf32>
    %445 = arith.mulf %439, %443 : vector<2x16xf32>
    %446 = arith.addf %444, %445 : vector<2x16xf32>
    %447 = math.tanh %446 : vector<2x16xf32>
    %448 = arith.mulf %441, %447 : vector<2x16xf32>
    %449 = vector.extract_strided_slice %379 {offsets = [4, 0], sizes = [2, 16], strides = [1, 1]} : vector<16x16xf32> to vector<2x16xf32>
    %450 = arith.mulf %449, %428 : vector<2x16xf32>
    %451 = arith.addf %448, %450 : vector<2x16xf32>
    %c4_110 = arith.constant 4 : index
    %c0_111 = arith.constant 0 : index
    %452 = vector.load %arg14[%c4_110, %c0_111] : memref<16x32xf32, #tpu.memory_space<vmem>>, vector<2x16xf32>
    tpu.vector_store %arg14[%c4_110, %c0_111], %451 {strides = array<i32>} : memref<16x32xf32, #tpu.memory_space<vmem>>, vector<2x16xf32>,
    %453 = vector.extract_strided_slice %382 {offsets = [6, 0], sizes = [2, 64], strides = [1, 1]} : vector<16x64xf32> to vector<2x64xf32>
    %cst_112 = arith.constant dense<0.000000e+00> : vector<2x64xf32>
    %454 = tpu.matmul %451, %384, %cst_112 {dimension_numbers = #tpu.dot_dimension_numbers<[1], [0], [0], [1], [0, 0, 1, 1], [], []>} : vector<2x16xf32>, vector<16x64xf32>, vector<2x64xf32> -> vector<2x64xf32>
    %455 = arith.addf %453, %454 : vector<2x64xf32>
    %456 = vector.extract_strided_slice %455 {offsets = [0, 0], sizes = [2, 48], strides = [1, 1]} : vector<2x64xf32> to vector<2x48xf32>
    %457 = arith.negf %456 : vector<2x48xf32>
    %458 = math.exp %457 : vector<2x48xf32>
    %cst_113 = arith.constant 1.000000e+00 : f32
    %459 = vector.broadcast %cst_113 : f32 to vector<2x48xf32>
    %460 = arith.addf %459, %458 : vector<2x48xf32>
    %461 = arith.divf %459, %460 : vector<2x48xf32>
    %462 = vector.extract_strided_slice %461 {offsets = [0, 0], sizes = [2, 16], strides = [1, 1]} : vector<2x48xf32> to vector<2x16xf32>
    %463 = vector.extract_strided_slice %461 {offsets = [0, 16], sizes = [2, 16], strides = [1, 1]} : vector<2x48xf32> to vector<2x16xf32>
    %464 = vector.extract_strided_slice %461 {offsets = [0, 32], sizes = [2, 16], strides = [1, 1]} : vector<2x48xf32> to vector<2x16xf32>
    %465 = vector.extract_strided_slice %455 {offsets = [0, 48], sizes = [2, 16], strides = [1, 1]} : vector<2x64xf32> to vector<2x16xf32>
    %466 = math.tanh %465 : vector<2x16xf32>
    %467 = arith.mulf %463, %446 : vector<2x16xf32>
    %468 = arith.mulf %462, %466 : vector<2x16xf32>
    %469 = arith.addf %467, %468 : vector<2x16xf32>
    %470 = math.tanh %469 : vector<2x16xf32>
    %471 = arith.mulf %464, %470 : vector<2x16xf32>
    %472 = vector.extract_strided_slice %379 {offsets = [6, 0], sizes = [2, 16], strides = [1, 1]} : vector<16x16xf32> to vector<2x16xf32>
    %473 = arith.mulf %472, %451 : vector<2x16xf32>
    %474 = arith.addf %471, %473 : vector<2x16xf32>
    %c6_114 = arith.constant 6 : index
    %c0_115 = arith.constant 0 : index
    %475 = vector.load %arg14[%c6_114, %c0_115] : memref<16x32xf32, #tpu.memory_space<vmem>>, vector<2x16xf32>
    tpu.vector_store %arg14[%c6_114, %c0_115], %474 {strides = array<i32>} : memref<16x32xf32, #tpu.memory_space<vmem>>, vector<2x16xf32>,
    %476 = vector.extract_strided_slice %382 {offsets = [8, 0], sizes = [2, 64], strides = [1, 1]} : vector<16x64xf32> to vector<2x64xf32>
    %cst_116 = arith.constant dense<0.000000e+00> : vector<2x64xf32>
    %477 = tpu.matmul %474, %384, %cst_116 {dimension_numbers = #tpu.dot_dimension_numbers<[1], [0], [0], [1], [0, 0, 1, 1], [], []>} : vector<2x16xf32>, vector<16x64xf32>, vector<2x64xf32> -> vector<2x64xf32>
    %478 = arith.addf %476, %477 : vector<2x64xf32>
    %479 = vector.extract_strided_slice %478 {offsets = [0, 0], sizes = [2, 48], strides = [1, 1]} : vector<2x64xf32> to vector<2x48xf32>
    %480 = arith.negf %479 : vector<2x48xf32>
    %481 = math.exp %480 : vector<2x48xf32>
    %cst_117 = arith.constant 1.000000e+00 : f32
    %482 = vector.broadcast %cst_117 : f32 to vector<2x48xf32>
    %483 = arith.addf %482, %481 : vector<2x48xf32>
    %484 = arith.divf %482, %483 : vector<2x48xf32>
    %485 = vector.extract_strided_slice %484 {offsets = [0, 0], sizes = [2, 16], strides = [1, 1]} : vector<2x48xf32> to vector<2x16xf32>
    %486 = vector.extract_strided_slice %484 {offsets = [0, 16], sizes = [2, 16], strides = [1, 1]} : vector<2x48xf32> to vector<2x16xf32>
    %487 = vector.extract_strided_slice %484 {offsets = [0, 32], sizes = [2, 16], strides = [1, 1]} : vector<2x48xf32> to vector<2x16xf32>
    %488 = vector.extract_strided_slice %478 {offsets = [0, 48], sizes = [2, 16], strides = [1, 1]} : vector<2x64xf32> to vector<2x16xf32>
    %489 = math.tanh %488 : vector<2x16xf32>
    %490 = arith.mulf %486, %469 : vector<2x16xf32>
    %491 = arith.mulf %485, %489 : vector<2x16xf32>
    %492 = arith.addf %490, %491 : vector<2x16xf32>
    %493 = math.tanh %492 : vector<2x16xf32>
    %494 = arith.mulf %487, %493 : vector<2x16xf32>
    %495 = vector.extract_strided_slice %379 {offsets = [8, 0], sizes = [2, 16], strides = [1, 1]} : vector<16x16xf32> to vector<2x16xf32>
    %496 = arith.mulf %495, %474 : vector<2x16xf32>
    %497 = arith.addf %494, %496 : vector<2x16xf32>
    %c8_118 = arith.constant 8 : index
    %c0_119 = arith.constant 0 : index
    %498 = vector.load %arg14[%c8_118, %c0_119] : memref<16x32xf32, #tpu.memory_space<vmem>>, vector<2x16xf32>
    tpu.vector_store %arg14[%c8_118, %c0_119], %497 {strides = array<i32>} : memref<16x32xf32, #tpu.memory_space<vmem>>, vector<2x16xf32>,
    %499 = vector.extract_strided_slice %382 {offsets = [10, 0], sizes = [2, 64], strides = [1, 1]} : vector<16x64xf32> to vector<2x64xf32>
    %cst_120 = arith.constant dense<0.000000e+00> : vector<2x64xf32>
    %500 = tpu.matmul %497, %384, %cst_120 {dimension_numbers = #tpu.dot_dimension_numbers<[1], [0], [0], [1], [0, 0, 1, 1], [], []>} : vector<2x16xf32>, vector<16x64xf32>, vector<2x64xf32> -> vector<2x64xf32>
    %501 = arith.addf %499, %500 : vector<2x64xf32>
    %502 = vector.extract_strided_slice %501 {offsets = [0, 0], sizes = [2, 48], strides = [1, 1]} : vector<2x64xf32> to vector<2x48xf32>
    %503 = arith.negf %502 : vector<2x48xf32>
    %504 = math.exp %503 : vector<2x48xf32>
    %cst_121 = arith.constant 1.000000e+00 : f32
    %505 = vector.broadcast %cst_121 : f32 to vector<2x48xf32>
    %506 = arith.addf %505, %504 : vector<2x48xf32>
    %507 = arith.divf %505, %506 : vector<2x48xf32>
    %508 = vector.extract_strided_slice %507 {offsets = [0, 0], sizes = [2, 16], strides = [1, 1]} : vector<2x48xf32> to vector<2x16xf32>
    %509 = vector.extract_strided_slice %507 {offsets = [0, 16], sizes = [2, 16], strides = [1, 1]} : vector<2x48xf32> to vector<2x16xf32>
    %510 = vector.extract_strided_slice %507 {offsets = [0, 32], sizes = [2, 16], strides = [1, 1]} : vector<2x48xf32> to vector<2x16xf32>
    %511 = vector.extract_strided_slice %501 {offsets = [0, 48], sizes = [2, 16], strides = [1, 1]} : vector<2x64xf32> to vector<2x16xf32>
    %512 = math.tanh %511 : vector<2x16xf32>
    %513 = arith.mulf %509, %492 : vector<2x16xf32>
    %514 = arith.mulf %508, %512 : vector<2x16xf32>
    %515 = arith.addf %513, %514 : vector<2x16xf32>
    %516 = math.tanh %515 : vector<2x16xf32>
    %517 = arith.mulf %510, %516 : vector<2x16xf32>
    %518 = vector.extract_strided_slice %379 {offsets = [10, 0], sizes = [2, 16], strides = [1, 1]} : vector<16x16xf32> to vector<2x16xf32>
    %519 = arith.mulf %518, %497 : vector<2x16xf32>
    %520 = arith.addf %517, %519 : vector<2x16xf32>
    %c10_122 = arith.constant 10 : index
    %c0_123 = arith.constant 0 : index
    %521 = vector.load %arg14[%c10_122, %c0_123] : memref<16x32xf32, #tpu.memory_space<vmem>>, vector<2x16xf32>
    tpu.vector_store %arg14[%c10_122, %c0_123], %520 {strides = array<i32>} : memref<16x32xf32, #tpu.memory_space<vmem>>, vector<2x16xf32>,
    %522 = vector.extract_strided_slice %382 {offsets = [12, 0], sizes = [2, 64], strides = [1, 1]} : vector<16x64xf32> to vector<2x64xf32>
    %cst_124 = arith.constant dense<0.000000e+00> : vector<2x64xf32>
    %523 = tpu.matmul %520, %384, %cst_124 {dimension_numbers = #tpu.dot_dimension_numbers<[1], [0], [0], [1], [0, 0, 1, 1], [], []>} : vector<2x16xf32>, vector<16x64xf32>, vector<2x64xf32> -> vector<2x64xf32>
    %524 = arith.addf %522, %523 : vector<2x64xf32>
    %525 = vector.extract_strided_slice %524 {offsets = [0, 0], sizes = [2, 48], strides = [1, 1]} : vector<2x64xf32> to vector<2x48xf32>
    %526 = arith.negf %525 : vector<2x48xf32>
    %527 = math.exp %526 : vector<2x48xf32>
    %cst_125 = arith.constant 1.000000e+00 : f32
    %528 = vector.broadcast %cst_125 : f32 to vector<2x48xf32>
    %529 = arith.addf %528, %527 : vector<2x48xf32>
    %530 = arith.divf %528, %529 : vector<2x48xf32>
    %531 = vector.extract_strided_slice %530 {offsets = [0, 0], sizes = [2, 16], strides = [1, 1]} : vector<2x48xf32> to vector<2x16xf32>
    %532 = vector.extract_strided_slice %530 {offsets = [0, 16], sizes = [2, 16], strides = [1, 1]} : vector<2x48xf32> to vector<2x16xf32>
    %533 = vector.extract_strided_slice %530 {offsets = [0, 32], sizes = [2, 16], strides = [1, 1]} : vector<2x48xf32> to vector<2x16xf32>
    %534 = vector.extract_strided_slice %524 {offsets = [0, 48], sizes = [2, 16], strides = [1, 1]} : vector<2x64xf32> to vector<2x16xf32>
    %535 = math.tanh %534 : vector<2x16xf32>
    %536 = arith.mulf %532, %515 : vector<2x16xf32>
    %537 = arith.mulf %531, %535 : vector<2x16xf32>
    %538 = arith.addf %536, %537 : vector<2x16xf32>
    %539 = math.tanh %538 : vector<2x16xf32>
    %540 = arith.mulf %533, %539 : vector<2x16xf32>
    %541 = vector.extract_strided_slice %379 {offsets = [12, 0], sizes = [2, 16], strides = [1, 1]} : vector<16x16xf32> to vector<2x16xf32>
    %542 = arith.mulf %541, %520 : vector<2x16xf32>
    %543 = arith.addf %540, %542 : vector<2x16xf32>
    %c12_126 = arith.constant 12 : index
    %c0_127 = arith.constant 0 : index
    %544 = vector.load %arg14[%c12_126, %c0_127] : memref<16x32xf32, #tpu.memory_space<vmem>>, vector<2x16xf32>
    tpu.vector_store %arg14[%c12_126, %c0_127], %543 {strides = array<i32>} : memref<16x32xf32, #tpu.memory_space<vmem>>, vector<2x16xf32>,
    %545 = vector.extract_strided_slice %382 {offsets = [14, 0], sizes = [2, 64], strides = [1, 1]} : vector<16x64xf32> to vector<2x64xf32>
    %cst_128 = arith.constant dense<0.000000e+00> : vector<2x64xf32>
    %546 = tpu.matmul %543, %384, %cst_128 {dimension_numbers = #tpu.dot_dimension_numbers<[1], [0], [0], [1], [0, 0, 1, 1], [], []>} : vector<2x16xf32>, vector<16x64xf32>, vector<2x64xf32> -> vector<2x64xf32>
    %547 = arith.addf %545, %546 : vector<2x64xf32>
    %548 = vector.extract_strided_slice %547 {offsets = [0, 0], sizes = [2, 48], strides = [1, 1]} : vector<2x64xf32> to vector<2x48xf32>
    %549 = arith.negf %548 : vector<2x48xf32>
    %550 = math.exp %549 : vector<2x48xf32>
    %cst_129 = arith.constant 1.000000e+00 : f32
    %551 = vector.broadcast %cst_129 : f32 to vector<2x48xf32>
    %552 = arith.addf %551, %550 : vector<2x48xf32>
    %553 = arith.divf %551, %552 : vector<2x48xf32>
    %554 = vector.extract_strided_slice %553 {offsets = [0, 0], sizes = [2, 16], strides = [1, 1]} : vector<2x48xf32> to vector<2x16xf32>
    %555 = vector.extract_strided_slice %553 {offsets = [0, 16], sizes = [2, 16], strides = [1, 1]} : vector<2x48xf32> to vector<2x16xf32>
    %556 = vector.extract_strided_slice %553 {offsets = [0, 32], sizes = [2, 16], strides = [1, 1]} : vector<2x48xf32> to vector<2x16xf32>
    %557 = vector.extract_strided_slice %547 {offsets = [0, 48], sizes = [2, 16], strides = [1, 1]} : vector<2x64xf32> to vector<2x16xf32>
    %558 = math.tanh %557 : vector<2x16xf32>
    %559 = arith.mulf %555, %538 : vector<2x16xf32>
    %560 = arith.mulf %554, %558 : vector<2x16xf32>
    %561 = arith.addf %559, %560 : vector<2x16xf32>
    %562 = math.tanh %561 : vector<2x16xf32>
    %563 = arith.mulf %556, %562 : vector<2x16xf32>
    %564 = vector.extract_strided_slice %379 {offsets = [14, 0], sizes = [2, 16], strides = [1, 1]} : vector<16x16xf32> to vector<2x16xf32>
    %565 = arith.mulf %564, %543 : vector<2x16xf32>
    %566 = arith.addf %563, %565 : vector<2x16xf32>
    %c14_130 = arith.constant 14 : index
    %c0_131 = arith.constant 0 : index
    %567 = vector.load %arg14[%c14_130, %c0_131] : memref<16x32xf32, #tpu.memory_space<vmem>>, vector<2x16xf32>
    tpu.vector_store %arg14[%c14_130, %c0_131], %566 {strides = array<i32>} : memref<16x32xf32, #tpu.memory_space<vmem>>, vector<2x16xf32>,
    %568 = vector.extract_strided_slice %377 {offsets = [0, 64], sizes = [16, 64], strides = [1, 1]} : vector<16x128xf32> to vector<16x64xf32>
    %c1_132 = arith.constant 1 : index
    %c0_133 = arith.constant 0 : index
    %c0_134 = arith.constant 0 : index
    %569 = vector.load %arg7[%c1_132, %c0_133, %c0_134] : memref<2x16x64xf32, #tpu.memory_space<vmem>>, vector<1x16x64xf32>
    %570 = vector.shape_cast %569 : vector<1x16x64xf32> to vector<16x64xf32>
    %cst_135 = arith.constant 0.000000e+00 : f32
    %571 = vector.broadcast %cst_135 : f32 to vector<2x16xf32>
    %cst_136 = arith.constant 0.000000e+00 : f32
    %572 = vector.broadcast %cst_136 : f32 to vector<2x16xf32>
    %573 = vector.extract_strided_slice %568 {offsets = [14, 0], sizes = [2, 64], strides = [1, 1]} : vector<16x64xf32> to vector<2x64xf32>
    %cst_137 = arith.constant dense<0.000000e+00> : vector<2x64xf32>
    %574 = tpu.matmul %571, %570, %cst_137 {dimension_numbers = #tpu.dot_dimension_numbers<[1], [0], [0], [1], [0, 0, 1, 1], [], []>} : vector<2x16xf32>, vector<16x64xf32>, vector<2x64xf32> -> vector<2x64xf32>
    %575 = arith.addf %573, %574 : vector<2x64xf32>
    %576 = vector.extract_strided_slice %575 {offsets = [0, 0], sizes = [2, 48], strides = [1, 1]} : vector<2x64xf32> to vector<2x48xf32>
    %577 = arith.negf %576 : vector<2x48xf32>
    %578 = math.exp %577 : vector<2x48xf32>
    %cst_138 = arith.constant 1.000000e+00 : f32
    %579 = vector.broadcast %cst_138 : f32 to vector<2x48xf32>
    %580 = arith.addf %579, %578 : vector<2x48xf32>
    %581 = arith.divf %579, %580 : vector<2x48xf32>
    %582 = vector.extract_strided_slice %581 {offsets = [0, 0], sizes = [2, 16], strides = [1, 1]} : vector<2x48xf32> to vector<2x16xf32>
    %583 = vector.extract_strided_slice %581 {offsets = [0, 16], sizes = [2, 16], strides = [1, 1]} : vector<2x48xf32> to vector<2x16xf32>
    %584 = vector.extract_strided_slice %581 {offsets = [0, 32], sizes = [2, 16], strides = [1, 1]} : vector<2x48xf32> to vector<2x16xf32>
    %585 = vector.extract_strided_slice %575 {offsets = [0, 48], sizes = [2, 16], strides = [1, 1]} : vector<2x64xf32> to vector<2x16xf32>
    %586 = math.tanh %585 : vector<2x16xf32>
    %587 = arith.mulf %583, %572 : vector<2x16xf32>
    %588 = arith.mulf %582, %586 : vector<2x16xf32>
    %589 = arith.addf %587, %588 : vector<2x16xf32>
    %590 = math.tanh %589 : vector<2x16xf32>
    %591 = arith.mulf %584, %590 : vector<2x16xf32>
    %c14_139 = arith.constant 14 : index
    %c16_140 = arith.constant 16 : index
    %592 = vector.load %arg14[%c14_139, %c16_140] : memref<16x32xf32, #tpu.memory_space<vmem>>, vector<2x16xf32>
    tpu.vector_store %arg14[%c14_139, %c16_140], %591 {strides = array<i32>} : memref<16x32xf32, #tpu.memory_space<vmem>>, vector<2x16xf32>,
    %593 = vector.extract_strided_slice %568 {offsets = [12, 0], sizes = [2, 64], strides = [1, 1]} : vector<16x64xf32> to vector<2x64xf32>
    %cst_141 = arith.constant dense<0.000000e+00> : vector<2x64xf32>
    %594 = tpu.matmul %591, %570, %cst_141 {dimension_numbers = #tpu.dot_dimension_numbers<[1], [0], [0], [1], [0, 0, 1, 1], [], []>} : vector<2x16xf32>, vector<16x64xf32>, vector<2x64xf32> -> vector<2x64xf32>
    %595 = arith.addf %593, %594 : vector<2x64xf32>
    %596 = vector.extract_strided_slice %595 {offsets = [0, 0], sizes = [2, 48], strides = [1, 1]} : vector<2x64xf32> to vector<2x48xf32>
    %597 = arith.negf %596 : vector<2x48xf32>
    %598 = math.exp %597 : vector<2x48xf32>
    %cst_142 = arith.constant 1.000000e+00 : f32
    %599 = vector.broadcast %cst_142 : f32 to vector<2x48xf32>
    %600 = arith.addf %599, %598 : vector<2x48xf32>
    %601 = arith.divf %599, %600 : vector<2x48xf32>
    %602 = vector.extract_strided_slice %601 {offsets = [0, 0], sizes = [2, 16], strides = [1, 1]} : vector<2x48xf32> to vector<2x16xf32>
    %603 = vector.extract_strided_slice %601 {offsets = [0, 16], sizes = [2, 16], strides = [1, 1]} : vector<2x48xf32> to vector<2x16xf32>
    %604 = vector.extract_strided_slice %601 {offsets = [0, 32], sizes = [2, 16], strides = [1, 1]} : vector<2x48xf32> to vector<2x16xf32>
    %605 = vector.extract_strided_slice %595 {offsets = [0, 48], sizes = [2, 16], strides = [1, 1]} : vector<2x64xf32> to vector<2x16xf32>
    %606 = math.tanh %605 : vector<2x16xf32>
    %607 = arith.mulf %603, %589 : vector<2x16xf32>
    %608 = arith.mulf %602, %606 : vector<2x16xf32>
    %609 = arith.addf %607, %608 : vector<2x16xf32>
    %610 = math.tanh %609 : vector<2x16xf32>
    %611 = arith.mulf %604, %610 : vector<2x16xf32>
    %612 = vector.extract_strided_slice %381 {offsets = [2, 0], sizes = [2, 16], strides = [1, 1]} : vector<16x16xf32> to vector<2x16xf32>
    %613 = arith.mulf %612, %591 : vector<2x16xf32>
    %614 = arith.addf %611, %613 : vector<2x16xf32>
    %c12_143 = arith.constant 12 : index
    %c16_144 = arith.constant 16 : index
    %615 = vector.load %arg14[%c12_143, %c16_144] : memref<16x32xf32, #tpu.memory_space<vmem>>, vector<2x16xf32>
    tpu.vector_store %arg14[%c12_143, %c16_144], %614 {strides = array<i32>} : memref<16x32xf32, #tpu.memory_space<vmem>>, vector<2x16xf32>,
    %616 = vector.extract_strided_slice %568 {offsets = [10, 0], sizes = [2, 64], strides = [1, 1]} : vector<16x64xf32> to vector<2x64xf32>
    %cst_145 = arith.constant dense<0.000000e+00> : vector<2x64xf32>
    %617 = tpu.matmul %614, %570, %cst_145 {dimension_numbers = #tpu.dot_dimension_numbers<[1], [0], [0], [1], [0, 0, 1, 1], [], []>} : vector<2x16xf32>, vector<16x64xf32>, vector<2x64xf32> -> vector<2x64xf32>
    %618 = arith.addf %616, %617 : vector<2x64xf32>
    %619 = vector.extract_strided_slice %618 {offsets = [0, 0], sizes = [2, 48], strides = [1, 1]} : vector<2x64xf32> to vector<2x48xf32>
    %620 = arith.negf %619 : vector<2x48xf32>
    %621 = math.exp %620 : vector<2x48xf32>
    %cst_146 = arith.constant 1.000000e+00 : f32
    %622 = vector.broadcast %cst_146 : f32 to vector<2x48xf32>
    %623 = arith.addf %622, %621 : vector<2x48xf32>
    %624 = arith.divf %622, %623 : vector<2x48xf32>
    %625 = vector.extract_strided_slice %624 {offsets = [0, 0], sizes = [2, 16], strides = [1, 1]} : vector<2x48xf32> to vector<2x16xf32>
    %626 = vector.extract_strided_slice %624 {offsets = [0, 16], sizes = [2, 16], strides = [1, 1]} : vector<2x48xf32> to vector<2x16xf32>
    %627 = vector.extract_strided_slice %624 {offsets = [0, 32], sizes = [2, 16], strides = [1, 1]} : vector<2x48xf32> to vector<2x16xf32>
    %628 = vector.extract_strided_slice %618 {offsets = [0, 48], sizes = [2, 16], strides = [1, 1]} : vector<2x64xf32> to vector<2x16xf32>
    %629 = math.tanh %628 : vector<2x16xf32>
    %630 = arith.mulf %626, %609 : vector<2x16xf32>
    %631 = arith.mulf %625, %629 : vector<2x16xf32>
    %632 = arith.addf %630, %631 : vector<2x16xf32>
    %633 = math.tanh %632 : vector<2x16xf32>
    %634 = arith.mulf %627, %633 : vector<2x16xf32>
    %635 = vector.extract_strided_slice %381 {offsets = [4, 0], sizes = [2, 16], strides = [1, 1]} : vector<16x16xf32> to vector<2x16xf32>
    %636 = arith.mulf %635, %614 : vector<2x16xf32>
    %637 = arith.addf %634, %636 : vector<2x16xf32>
    %c10_147 = arith.constant 10 : index
    %c16_148 = arith.constant 16 : index
    %638 = vector.load %arg14[%c10_147, %c16_148] : memref<16x32xf32, #tpu.memory_space<vmem>>, vector<2x16xf32>
    tpu.vector_store %arg14[%c10_147, %c16_148], %637 {strides = array<i32>} : memref<16x32xf32, #tpu.memory_space<vmem>>, vector<2x16xf32>,
    %639 = vector.extract_strided_slice %568 {offsets = [8, 0], sizes = [2, 64], strides = [1, 1]} : vector<16x64xf32> to vector<2x64xf32>
    %cst_149 = arith.constant dense<0.000000e+00> : vector<2x64xf32>
    %640 = tpu.matmul %637, %570, %cst_149 {dimension_numbers = #tpu.dot_dimension_numbers<[1], [0], [0], [1], [0, 0, 1, 1], [], []>} : vector<2x16xf32>, vector<16x64xf32>, vector<2x64xf32> -> vector<2x64xf32>
    %641 = arith.addf %639, %640 : vector<2x64xf32>
    %642 = vector.extract_strided_slice %641 {offsets = [0, 0], sizes = [2, 48], strides = [1, 1]} : vector<2x64xf32> to vector<2x48xf32>
    %643 = arith.negf %642 : vector<2x48xf32>
    %644 = math.exp %643 : vector<2x48xf32>
    %cst_150 = arith.constant 1.000000e+00 : f32
    %645 = vector.broadcast %cst_150 : f32 to vector<2x48xf32>
    %646 = arith.addf %645, %644 : vector<2x48xf32>
    %647 = arith.divf %645, %646 : vector<2x48xf32>
    %648 = vector.extract_strided_slice %647 {offsets = [0, 0], sizes = [2, 16], strides = [1, 1]} : vector<2x48xf32> to vector<2x16xf32>
    %649 = vector.extract_strided_slice %647 {offsets = [0, 16], sizes = [2, 16], strides = [1, 1]} : vector<2x48xf32> to vector<2x16xf32>
    %650 = vector.extract_strided_slice %647 {offsets = [0, 32], sizes = [2, 16], strides = [1, 1]} : vector<2x48xf32> to vector<2x16xf32>
    %651 = vector.extract_strided_slice %641 {offsets = [0, 48], sizes = [2, 16], strides = [1, 1]} : vector<2x64xf32> to vector<2x16xf32>
    %652 = math.tanh %651 : vector<2x16xf32>
    %653 = arith.mulf %649, %632 : vector<2x16xf32>
    %654 = arith.mulf %648, %652 : vector<2x16xf32>
    %655 = arith.addf %653, %654 : vector<2x16xf32>
    %656 = math.tanh %655 : vector<2x16xf32>
    %657 = arith.mulf %650, %656 : vector<2x16xf32>
    %658 = vector.extract_strided_slice %381 {offsets = [6, 0], sizes = [2, 16], strides = [1, 1]} : vector<16x16xf32> to vector<2x16xf32>
    %659 = arith.mulf %658, %637 : vector<2x16xf32>
    %660 = arith.addf %657, %659 : vector<2x16xf32>
    %c8_151 = arith.constant 8 : index
    %c16_152 = arith.constant 16 : index
    %661 = vector.load %arg14[%c8_151, %c16_152] : memref<16x32xf32, #tpu.memory_space<vmem>>, vector<2x16xf32>
    tpu.vector_store %arg14[%c8_151, %c16_152], %660 {strides = array<i32>} : memref<16x32xf32, #tpu.memory_space<vmem>>, vector<2x16xf32>,
    %662 = vector.extract_strided_slice %568 {offsets = [6, 0], sizes = [2, 64], strides = [1, 1]} : vector<16x64xf32> to vector<2x64xf32>
    %cst_153 = arith.constant dense<0.000000e+00> : vector<2x64xf32>
    %663 = tpu.matmul %660, %570, %cst_153 {dimension_numbers = #tpu.dot_dimension_numbers<[1], [0], [0], [1], [0, 0, 1, 1], [], []>} : vector<2x16xf32>, vector<16x64xf32>, vector<2x64xf32> -> vector<2x64xf32>
    %664 = arith.addf %662, %663 : vector<2x64xf32>
    %665 = vector.extract_strided_slice %664 {offsets = [0, 0], sizes = [2, 48], strides = [1, 1]} : vector<2x64xf32> to vector<2x48xf32>
    %666 = arith.negf %665 : vector<2x48xf32>
    %667 = math.exp %666 : vector<2x48xf32>
    %cst_154 = arith.constant 1.000000e+00 : f32
    %668 = vector.broadcast %cst_154 : f32 to vector<2x48xf32>
    %669 = arith.addf %668, %667 : vector<2x48xf32>
    %670 = arith.divf %668, %669 : vector<2x48xf32>
    %671 = vector.extract_strided_slice %670 {offsets = [0, 0], sizes = [2, 16], strides = [1, 1]} : vector<2x48xf32> to vector<2x16xf32>
    %672 = vector.extract_strided_slice %670 {offsets = [0, 16], sizes = [2, 16], strides = [1, 1]} : vector<2x48xf32> to vector<2x16xf32>
    %673 = vector.extract_strided_slice %670 {offsets = [0, 32], sizes = [2, 16], strides = [1, 1]} : vector<2x48xf32> to vector<2x16xf32>
    %674 = vector.extract_strided_slice %664 {offsets = [0, 48], sizes = [2, 16], strides = [1, 1]} : vector<2x64xf32> to vector<2x16xf32>
    %675 = math.tanh %674 : vector<2x16xf32>
    %676 = arith.mulf %672, %655 : vector<2x16xf32>
    %677 = arith.mulf %671, %675 : vector<2x16xf32>
    %678 = arith.addf %676, %677 : vector<2x16xf32>
    %679 = math.tanh %678 : vector<2x16xf32>
    %680 = arith.mulf %673, %679 : vector<2x16xf32>
    %681 = vector.extract_strided_slice %381 {offsets = [8, 0], sizes = [2, 16], strides = [1, 1]} : vector<16x16xf32> to vector<2x16xf32>
    %682 = arith.mulf %681, %660 : vector<2x16xf32>
    %683 = arith.addf %680, %682 : vector<2x16xf32>
    %c6_155 = arith.constant 6 : index
    %c16_156 = arith.constant 16 : index
    %684 = vector.load %arg14[%c6_155, %c16_156] : memref<16x32xf32, #tpu.memory_space<vmem>>, vector<2x16xf32>
    tpu.vector_store %arg14[%c6_155, %c16_156], %683 {strides = array<i32>} : memref<16x32xf32, #tpu.memory_space<vmem>>, vector<2x16xf32>,
    %685 = vector.extract_strided_slice %568 {offsets = [4, 0], sizes = [2, 64], strides = [1, 1]} : vector<16x64xf32> to vector<2x64xf32>
    %cst_157 = arith.constant dense<0.000000e+00> : vector<2x64xf32>
    %686 = tpu.matmul %683, %570, %cst_157 {dimension_numbers = #tpu.dot_dimension_numbers<[1], [0], [0], [1], [0, 0, 1, 1], [], []>} : vector<2x16xf32>, vector<16x64xf32>, vector<2x64xf32> -> vector<2x64xf32>
    %687 = arith.addf %685, %686 : vector<2x64xf32>
    %688 = vector.extract_strided_slice %687 {offsets = [0, 0], sizes = [2, 48], strides = [1, 1]} : vector<2x64xf32> to vector<2x48xf32>
    %689 = arith.negf %688 : vector<2x48xf32>
    %690 = math.exp %689 : vector<2x48xf32>
    %cst_158 = arith.constant 1.000000e+00 : f32
    %691 = vector.broadcast %cst_158 : f32 to vector<2x48xf32>
    %692 = arith.addf %691, %690 : vector<2x48xf32>
    %693 = arith.divf %691, %692 : vector<2x48xf32>
    %694 = vector.extract_strided_slice %693 {offsets = [0, 0], sizes = [2, 16], strides = [1, 1]} : vector<2x48xf32> to vector<2x16xf32>
    %695 = vector.extract_strided_slice %693 {offsets = [0, 16], sizes = [2, 16], strides = [1, 1]} : vector<2x48xf32> to vector<2x16xf32>
    %696 = vector.extract_strided_slice %693 {offsets = [0, 32], sizes = [2, 16], strides = [1, 1]} : vector<2x48xf32> to vector<2x16xf32>
    %697 = vector.extract_strided_slice %687 {offsets = [0, 48], sizes = [2, 16], strides = [1, 1]} : vector<2x64xf32> to vector<2x16xf32>
    %698 = math.tanh %697 : vector<2x16xf32>
    %699 = arith.mulf %695, %678 : vector<2x16xf32>
    %700 = arith.mulf %694, %698 : vector<2x16xf32>
    %701 = arith.addf %699, %700 : vector<2x16xf32>
    %702 = math.tanh %701 : vector<2x16xf32>
    %703 = arith.mulf %696, %702 : vector<2x16xf32>
    %704 = vector.extract_strided_slice %381 {offsets = [10, 0], sizes = [2, 16], strides = [1, 1]} : vector<16x16xf32> to vector<2x16xf32>
    %705 = arith.mulf %704, %683 : vector<2x16xf32>
    %706 = arith.addf %703, %705 : vector<2x16xf32>
    %c4_159 = arith.constant 4 : index
    %c16_160 = arith.constant 16 : index
    %707 = vector.load %arg14[%c4_159, %c16_160] : memref<16x32xf32, #tpu.memory_space<vmem>>, vector<2x16xf32>
    tpu.vector_store %arg14[%c4_159, %c16_160], %706 {strides = array<i32>} : memref<16x32xf32, #tpu.memory_space<vmem>>, vector<2x16xf32>,
    %708 = vector.extract_strided_slice %568 {offsets = [2, 0], sizes = [2, 64], strides = [1, 1]} : vector<16x64xf32> to vector<2x64xf32>
    %cst_161 = arith.constant dense<0.000000e+00> : vector<2x64xf32>
    %709 = tpu.matmul %706, %570, %cst_161 {dimension_numbers = #tpu.dot_dimension_numbers<[1], [0], [0], [1], [0, 0, 1, 1], [], []>} : vector<2x16xf32>, vector<16x64xf32>, vector<2x64xf32> -> vector<2x64xf32>
    %710 = arith.addf %708, %709 : vector<2x64xf32>
    %711 = vector.extract_strided_slice %710 {offsets = [0, 0], sizes = [2, 48], strides = [1, 1]} : vector<2x64xf32> to vector<2x48xf32>
    %712 = arith.negf %711 : vector<2x48xf32>
    %713 = math.exp %712 : vector<2x48xf32>
    %cst_162 = arith.constant 1.000000e+00 : f32
    %714 = vector.broadcast %cst_162 : f32 to vector<2x48xf32>
    %715 = arith.addf %714, %713 : vector<2x48xf32>
    %716 = arith.divf %714, %715 : vector<2x48xf32>
    %717 = vector.extract_strided_slice %716 {offsets = [0, 0], sizes = [2, 16], strides = [1, 1]} : vector<2x48xf32> to vector<2x16xf32>
    %718 = vector.extract_strided_slice %716 {offsets = [0, 16], sizes = [2, 16], strides = [1, 1]} : vector<2x48xf32> to vector<2x16xf32>
    %719 = vector.extract_strided_slice %716 {offsets = [0, 32], sizes = [2, 16], strides = [1, 1]} : vector<2x48xf32> to vector<2x16xf32>
    %720 = vector.extract_strided_slice %710 {offsets = [0, 48], sizes = [2, 16], strides = [1, 1]} : vector<2x64xf32> to vector<2x16xf32>
    %721 = math.tanh %720 : vector<2x16xf32>
    %722 = arith.mulf %718, %701 : vector<2x16xf32>
    %723 = arith.mulf %717, %721 : vector<2x16xf32>
    %724 = arith.addf %722, %723 : vector<2x16xf32>
    %725 = math.tanh %724 : vector<2x16xf32>
    %726 = arith.mulf %719, %725 : vector<2x16xf32>
    %727 = vector.extract_strided_slice %381 {offsets = [12, 0], sizes = [2, 16], strides = [1, 1]} : vector<16x16xf32> to vector<2x16xf32>
    %728 = arith.mulf %727, %706 : vector<2x16xf32>
    %729 = arith.addf %726, %728 : vector<2x16xf32>
    %c2_163 = arith.constant 2 : index
    %c16_164 = arith.constant 16 : index
    %730 = vector.load %arg14[%c2_163, %c16_164] : memref<16x32xf32, #tpu.memory_space<vmem>>, vector<2x16xf32>
    tpu.vector_store %arg14[%c2_163, %c16_164], %729 {strides = array<i32>} : memref<16x32xf32, #tpu.memory_space<vmem>>, vector<2x16xf32>,
    %731 = vector.extract_strided_slice %568 {offsets = [0, 0], sizes = [2, 64], strides = [1, 1]} : vector<16x64xf32> to vector<2x64xf32>
    %cst_165 = arith.constant dense<0.000000e+00> : vector<2x64xf32>
    %732 = tpu.matmul %729, %570, %cst_165 {dimension_numbers = #tpu.dot_dimension_numbers<[1], [0], [0], [1], [0, 0, 1, 1], [], []>} : vector<2x16xf32>, vector<16x64xf32>, vector<2x64xf32> -> vector<2x64xf32>
    %733 = arith.addf %731, %732 : vector<2x64xf32>
    %734 = vector.extract_strided_slice %733 {offsets = [0, 0], sizes = [2, 48], strides = [1, 1]} : vector<2x64xf32> to vector<2x48xf32>
    %735 = arith.negf %734 : vector<2x48xf32>
    %736 = math.exp %735 : vector<2x48xf32>
    %cst_166 = arith.constant 1.000000e+00 : f32
    %737 = vector.broadcast %cst_166 : f32 to vector<2x48xf32>
    %738 = arith.addf %737, %736 : vector<2x48xf32>
    %739 = arith.divf %737, %738 : vector<2x48xf32>
    %740 = vector.extract_strided_slice %739 {offsets = [0, 0], sizes = [2, 16], strides = [1, 1]} : vector<2x48xf32> to vector<2x16xf32>
    %741 = vector.extract_strided_slice %739 {offsets = [0, 16], sizes = [2, 16], strides = [1, 1]} : vector<2x48xf32> to vector<2x16xf32>
    %742 = vector.extract_strided_slice %739 {offsets = [0, 32], sizes = [2, 16], strides = [1, 1]} : vector<2x48xf32> to vector<2x16xf32>
    %743 = vector.extract_strided_slice %733 {offsets = [0, 48], sizes = [2, 16], strides = [1, 1]} : vector<2x64xf32> to vector<2x16xf32>
    %744 = math.tanh %743 : vector<2x16xf32>
    %745 = arith.mulf %741, %724 : vector<2x16xf32>
    %746 = arith.mulf %740, %744 : vector<2x16xf32>
    %747 = arith.addf %745, %746 : vector<2x16xf32>
    %748 = math.tanh %747 : vector<2x16xf32>
    %749 = arith.mulf %742, %748 : vector<2x16xf32>
    %750 = vector.extract_strided_slice %381 {offsets = [14, 0], sizes = [2, 16], strides = [1, 1]} : vector<16x16xf32> to vector<2x16xf32>
    %751 = arith.mulf %750, %729 : vector<2x16xf32>
    %752 = arith.addf %749, %751 : vector<2x16xf32>
    %c0_167 = arith.constant 0 : index
    %c16_168 = arith.constant 16 : index
    %753 = vector.load %arg14[%c0_167, %c16_168] : memref<16x32xf32, #tpu.memory_space<vmem>>, vector<2x16xf32>
    tpu.vector_store %arg14[%c0_167, %c16_168], %752 {strides = array<i32>} : memref<16x32xf32, #tpu.memory_space<vmem>>, vector<2x16xf32>,
    %c0_169 = arith.constant 0 : index
    %c0_170 = arith.constant 0 : index
    %754 = vector.load %arg14[%c0_169, %c0_170] : memref<16x32xf32, #tpu.memory_space<vmem>>, vector<16x32xf32>
    %c0_171 = arith.constant 0 : index
    %c0_172 = arith.constant 0 : index
    %755 = vector.load %arg9[%c0_171, %c0_172] : memref<32x128xf32, #tpu.memory_space<vmem>>, vector<32x128xf32>
    %cst_173 = arith.constant dense<0.000000e+00> : vector<16x128xf32>
    %756 = tpu.matmul %754, %755, %cst_173 {dimension_numbers = #tpu.dot_dimension_numbers<[1], [0], [0], [1], [0, 0, 1, 1], [], []>} : vector<16x32xf32>, vector<32x128xf32>, vector<16x128xf32> -> vector<16x128xf32>
    %c0_174 = arith.constant 0 : index
    %c0_175 = arith.constant 0 : index
    %757 = vector.load %arg11[%c0_174, %c0_175] : memref<1x128xf32, #tpu.memory_space<vmem>>, vector<1x128xf32>
    %758 = vector.broadcast %757 : vector<1x128xf32> to vector<16x128xf32>
    %759 = arith.addf %756, %758 : vector<16x128xf32>
    %760 = vector.shape_cast %354 : vector<16x1xf32> to vector<16x1xf32>
    %761 = vector.broadcast %760 : vector<16x1xf32> to vector<16x16xf32>
    %762 = vector.shape_cast %372 : vector<16x1xf32> to vector<16x1xf32>
    %763 = vector.broadcast %762 : vector<16x1xf32> to vector<16x16xf32>
    %764 = vector.extract_strided_slice %759 {offsets = [0, 0], sizes = [16, 64], strides = [1, 1]} : vector<16x128xf32> to vector<16x64xf32>
    %c0_176 = arith.constant 0 : index
    %c0_177 = arith.constant 0 : index
    %c0_178 = arith.constant 0 : index
    %765 = vector.load %arg10[%c0_176, %c0_177, %c0_178] : memref<2x16x64xf32, #tpu.memory_space<vmem>>, vector<1x16x64xf32>
    %766 = vector.shape_cast %765 : vector<1x16x64xf32> to vector<16x64xf32>
    %cst_179 = arith.constant 0.000000e+00 : f32
    %767 = vector.broadcast %cst_179 : f32 to vector<2x16xf32>
    %cst_180 = arith.constant 0.000000e+00 : f32
    %768 = vector.broadcast %cst_180 : f32 to vector<2x16xf32>
    %769 = vector.extract_strided_slice %764 {offsets = [0, 0], sizes = [2, 64], strides = [1, 1]} : vector<16x64xf32> to vector<2x64xf32>
    %cst_181 = arith.constant dense<0.000000e+00> : vector<2x64xf32>
    %770 = tpu.matmul %767, %766, %cst_181 {dimension_numbers = #tpu.dot_dimension_numbers<[1], [0], [0], [1], [0, 0, 1, 1], [], []>} : vector<2x16xf32>, vector<16x64xf32>, vector<2x64xf32> -> vector<2x64xf32>
    %771 = arith.addf %769, %770 : vector<2x64xf32>
    %772 = vector.extract_strided_slice %771 {offsets = [0, 0], sizes = [2, 48], strides = [1, 1]} : vector<2x64xf32> to vector<2x48xf32>
    %773 = arith.negf %772 : vector<2x48xf32>
    %774 = math.exp %773 : vector<2x48xf32>
    %cst_182 = arith.constant 1.000000e+00 : f32
    %775 = vector.broadcast %cst_182 : f32 to vector<2x48xf32>
    %776 = arith.addf %775, %774 : vector<2x48xf32>
    %777 = arith.divf %775, %776 : vector<2x48xf32>
    %778 = vector.extract_strided_slice %777 {offsets = [0, 0], sizes = [2, 16], strides = [1, 1]} : vector<2x48xf32> to vector<2x16xf32>
    %779 = vector.extract_strided_slice %777 {offsets = [0, 16], sizes = [2, 16], strides = [1, 1]} : vector<2x48xf32> to vector<2x16xf32>
    %780 = vector.extract_strided_slice %777 {offsets = [0, 32], sizes = [2, 16], strides = [1, 1]} : vector<2x48xf32> to vector<2x16xf32>
    %781 = vector.extract_strided_slice %771 {offsets = [0, 48], sizes = [2, 16], strides = [1, 1]} : vector<2x64xf32> to vector<2x16xf32>
    %782 = math.tanh %781 : vector<2x16xf32>
    %783 = arith.mulf %779, %768 : vector<2x16xf32>
    %784 = arith.mulf %778, %782 : vector<2x16xf32>
    %785 = arith.addf %783, %784 : vector<2x16xf32>
    %786 = math.tanh %785 : vector<2x16xf32>
    %787 = arith.mulf %780, %786 : vector<2x16xf32>
    %c0_183 = arith.constant 0 : index
    %c0_184 = arith.constant 0 : index
    %788 = vector.load %arg12[%c0_183, %c0_184] : memref<16x32xf32, #tpu.memory_space<vmem>>, vector<2x16xf32>
    tpu.vector_store %arg12[%c0_183, %c0_184], %787 {strides = array<i32>} : memref<16x32xf32, #tpu.memory_space<vmem>>, vector<2x16xf32>,
    %789 = vector.extract_strided_slice %764 {offsets = [2, 0], sizes = [2, 64], strides = [1, 1]} : vector<16x64xf32> to vector<2x64xf32>
    %cst_185 = arith.constant dense<0.000000e+00> : vector<2x64xf32>
    %790 = tpu.matmul %787, %766, %cst_185 {dimension_numbers = #tpu.dot_dimension_numbers<[1], [0], [0], [1], [0, 0, 1, 1], [], []>} : vector<2x16xf32>, vector<16x64xf32>, vector<2x64xf32> -> vector<2x64xf32>
    %791 = arith.addf %789, %790 : vector<2x64xf32>
    %792 = vector.extract_strided_slice %791 {offsets = [0, 0], sizes = [2, 48], strides = [1, 1]} : vector<2x64xf32> to vector<2x48xf32>
    %793 = arith.negf %792 : vector<2x48xf32>
    %794 = math.exp %793 : vector<2x48xf32>
    %cst_186 = arith.constant 1.000000e+00 : f32
    %795 = vector.broadcast %cst_186 : f32 to vector<2x48xf32>
    %796 = arith.addf %795, %794 : vector<2x48xf32>
    %797 = arith.divf %795, %796 : vector<2x48xf32>
    %798 = vector.extract_strided_slice %797 {offsets = [0, 0], sizes = [2, 16], strides = [1, 1]} : vector<2x48xf32> to vector<2x16xf32>
    %799 = vector.extract_strided_slice %797 {offsets = [0, 16], sizes = [2, 16], strides = [1, 1]} : vector<2x48xf32> to vector<2x16xf32>
    %800 = vector.extract_strided_slice %797 {offsets = [0, 32], sizes = [2, 16], strides = [1, 1]} : vector<2x48xf32> to vector<2x16xf32>
    %801 = vector.extract_strided_slice %791 {offsets = [0, 48], sizes = [2, 16], strides = [1, 1]} : vector<2x64xf32> to vector<2x16xf32>
    %802 = math.tanh %801 : vector<2x16xf32>
    %803 = arith.mulf %799, %785 : vector<2x16xf32>
    %804 = arith.mulf %798, %802 : vector<2x16xf32>
    %805 = arith.addf %803, %804 : vector<2x16xf32>
    %806 = math.tanh %805 : vector<2x16xf32>
    %807 = arith.mulf %800, %806 : vector<2x16xf32>
    %808 = vector.extract_strided_slice %761 {offsets = [2, 0], sizes = [2, 16], strides = [1, 1]} : vector<16x16xf32> to vector<2x16xf32>
    %809 = arith.mulf %808, %787 : vector<2x16xf32>
    %810 = arith.addf %807, %809 : vector<2x16xf32>
    %c2_187 = arith.constant 2 : index
    %c0_188 = arith.constant 0 : index
    %811 = vector.load %arg12[%c2_187, %c0_188] : memref<16x32xf32, #tpu.memory_space<vmem>>, vector<2x16xf32>
    tpu.vector_store %arg12[%c2_187, %c0_188], %810 {strides = array<i32>} : memref<16x32xf32, #tpu.memory_space<vmem>>, vector<2x16xf32>,
    %812 = vector.extract_strided_slice %764 {offsets = [4, 0], sizes = [2, 64], strides = [1, 1]} : vector<16x64xf32> to vector<2x64xf32>
    %cst_189 = arith.constant dense<0.000000e+00> : vector<2x64xf32>
    %813 = tpu.matmul %810, %766, %cst_189 {dimension_numbers = #tpu.dot_dimension_numbers<[1], [0], [0], [1], [0, 0, 1, 1], [], []>} : vector<2x16xf32>, vector<16x64xf32>, vector<2x64xf32> -> vector<2x64xf32>
    %814 = arith.addf %812, %813 : vector<2x64xf32>
    %815 = vector.extract_strided_slice %814 {offsets = [0, 0], sizes = [2, 48], strides = [1, 1]} : vector<2x64xf32> to vector<2x48xf32>
    %816 = arith.negf %815 : vector<2x48xf32>
    %817 = math.exp %816 : vector<2x48xf32>
    %cst_190 = arith.constant 1.000000e+00 : f32
    %818 = vector.broadcast %cst_190 : f32 to vector<2x48xf32>
    %819 = arith.addf %818, %817 : vector<2x48xf32>
    %820 = arith.divf %818, %819 : vector<2x48xf32>
    %821 = vector.extract_strided_slice %820 {offsets = [0, 0], sizes = [2, 16], strides = [1, 1]} : vector<2x48xf32> to vector<2x16xf32>
    %822 = vector.extract_strided_slice %820 {offsets = [0, 16], sizes = [2, 16], strides = [1, 1]} : vector<2x48xf32> to vector<2x16xf32>
    %823 = vector.extract_strided_slice %820 {offsets = [0, 32], sizes = [2, 16], strides = [1, 1]} : vector<2x48xf32> to vector<2x16xf32>
    %824 = vector.extract_strided_slice %814 {offsets = [0, 48], sizes = [2, 16], strides = [1, 1]} : vector<2x64xf32> to vector<2x16xf32>
    %825 = math.tanh %824 : vector<2x16xf32>
    %826 = arith.mulf %822, %805 : vector<2x16xf32>
    %827 = arith.mulf %821, %825 : vector<2x16xf32>
    %828 = arith.addf %826, %827 : vector<2x16xf32>
    %829 = math.tanh %828 : vector<2x16xf32>
    %830 = arith.mulf %823, %829 : vector<2x16xf32>
    %831 = vector.extract_strided_slice %761 {offsets = [4, 0], sizes = [2, 16], strides = [1, 1]} : vector<16x16xf32> to vector<2x16xf32>
    %832 = arith.mulf %831, %810 : vector<2x16xf32>
    %833 = arith.addf %830, %832 : vector<2x16xf32>
    %c4_191 = arith.constant 4 : index
    %c0_192 = arith.constant 0 : index
    %834 = vector.load %arg12[%c4_191, %c0_192] : memref<16x32xf32, #tpu.memory_space<vmem>>, vector<2x16xf32>
    tpu.vector_store %arg12[%c4_191, %c0_192], %833 {strides = array<i32>} : memref<16x32xf32, #tpu.memory_space<vmem>>, vector<2x16xf32>,
    %835 = vector.extract_strided_slice %764 {offsets = [6, 0], sizes = [2, 64], strides = [1, 1]} : vector<16x64xf32> to vector<2x64xf32>
    %cst_193 = arith.constant dense<0.000000e+00> : vector<2x64xf32>
    %836 = tpu.matmul %833, %766, %cst_193 {dimension_numbers = #tpu.dot_dimension_numbers<[1], [0], [0], [1], [0, 0, 1, 1], [], []>} : vector<2x16xf32>, vector<16x64xf32>, vector<2x64xf32> -> vector<2x64xf32>
    %837 = arith.addf %835, %836 : vector<2x64xf32>
    %838 = vector.extract_strided_slice %837 {offsets = [0, 0], sizes = [2, 48], strides = [1, 1]} : vector<2x64xf32> to vector<2x48xf32>
    %839 = arith.negf %838 : vector<2x48xf32>
    %840 = math.exp %839 : vector<2x48xf32>
    %cst_194 = arith.constant 1.000000e+00 : f32
    %841 = vector.broadcast %cst_194 : f32 to vector<2x48xf32>
    %842 = arith.addf %841, %840 : vector<2x48xf32>
    %843 = arith.divf %841, %842 : vector<2x48xf32>
    %844 = vector.extract_strided_slice %843 {offsets = [0, 0], sizes = [2, 16], strides = [1, 1]} : vector<2x48xf32> to vector<2x16xf32>
    %845 = vector.extract_strided_slice %843 {offsets = [0, 16], sizes = [2, 16], strides = [1, 1]} : vector<2x48xf32> to vector<2x16xf32>
    %846 = vector.extract_strided_slice %843 {offsets = [0, 32], sizes = [2, 16], strides = [1, 1]} : vector<2x48xf32> to vector<2x16xf32>
    %847 = vector.extract_strided_slice %837 {offsets = [0, 48], sizes = [2, 16], strides = [1, 1]} : vector<2x64xf32> to vector<2x16xf32>
    %848 = math.tanh %847 : vector<2x16xf32>
    %849 = arith.mulf %845, %828 : vector<2x16xf32>
    %850 = arith.mulf %844, %848 : vector<2x16xf32>
    %851 = arith.addf %849, %850 : vector<2x16xf32>
    %852 = math.tanh %851 : vector<2x16xf32>
    %853 = arith.mulf %846, %852 : vector<2x16xf32>
    %854 = vector.extract_strided_slice %761 {offsets = [6, 0], sizes = [2, 16], strides = [1, 1]} : vector<16x16xf32> to vector<2x16xf32>
    %855 = arith.mulf %854, %833 : vector<2x16xf32>
    %856 = arith.addf %853, %855 : vector<2x16xf32>
    %c6_195 = arith.constant 6 : index
    %c0_196 = arith.constant 0 : index
    %857 = vector.load %arg12[%c6_195, %c0_196] : memref<16x32xf32, #tpu.memory_space<vmem>>, vector<2x16xf32>
    tpu.vector_store %arg12[%c6_195, %c0_196], %856 {strides = array<i32>} : memref<16x32xf32, #tpu.memory_space<vmem>>, vector<2x16xf32>,
    %858 = vector.extract_strided_slice %764 {offsets = [8, 0], sizes = [2, 64], strides = [1, 1]} : vector<16x64xf32> to vector<2x64xf32>
    %cst_197 = arith.constant dense<0.000000e+00> : vector<2x64xf32>
    %859 = tpu.matmul %856, %766, %cst_197 {dimension_numbers = #tpu.dot_dimension_numbers<[1], [0], [0], [1], [0, 0, 1, 1], [], []>} : vector<2x16xf32>, vector<16x64xf32>, vector<2x64xf32> -> vector<2x64xf32>
    %860 = arith.addf %858, %859 : vector<2x64xf32>
    %861 = vector.extract_strided_slice %860 {offsets = [0, 0], sizes = [2, 48], strides = [1, 1]} : vector<2x64xf32> to vector<2x48xf32>
    %862 = arith.negf %861 : vector<2x48xf32>
    %863 = math.exp %862 : vector<2x48xf32>
    %cst_198 = arith.constant 1.000000e+00 : f32
    %864 = vector.broadcast %cst_198 : f32 to vector<2x48xf32>
    %865 = arith.addf %864, %863 : vector<2x48xf32>
    %866 = arith.divf %864, %865 : vector<2x48xf32>
    %867 = vector.extract_strided_slice %866 {offsets = [0, 0], sizes = [2, 16], strides = [1, 1]} : vector<2x48xf32> to vector<2x16xf32>
    %868 = vector.extract_strided_slice %866 {offsets = [0, 16], sizes = [2, 16], strides = [1, 1]} : vector<2x48xf32> to vector<2x16xf32>
    %869 = vector.extract_strided_slice %866 {offsets = [0, 32], sizes = [2, 16], strides = [1, 1]} : vector<2x48xf32> to vector<2x16xf32>
    %870 = vector.extract_strided_slice %860 {offsets = [0, 48], sizes = [2, 16], strides = [1, 1]} : vector<2x64xf32> to vector<2x16xf32>
    %871 = math.tanh %870 : vector<2x16xf32>
    %872 = arith.mulf %868, %851 : vector<2x16xf32>
    %873 = arith.mulf %867, %871 : vector<2x16xf32>
    %874 = arith.addf %872, %873 : vector<2x16xf32>
    %875 = math.tanh %874 : vector<2x16xf32>
    %876 = arith.mulf %869, %875 : vector<2x16xf32>
    %877 = vector.extract_strided_slice %761 {offsets = [8, 0], sizes = [2, 16], strides = [1, 1]} : vector<16x16xf32> to vector<2x16xf32>
    %878 = arith.mulf %877, %856 : vector<2x16xf32>
    %879 = arith.addf %876, %878 : vector<2x16xf32>
    %c8_199 = arith.constant 8 : index
    %c0_200 = arith.constant 0 : index
    %880 = vector.load %arg12[%c8_199, %c0_200] : memref<16x32xf32, #tpu.memory_space<vmem>>, vector<2x16xf32>
    tpu.vector_store %arg12[%c8_199, %c0_200], %879 {strides = array<i32>} : memref<16x32xf32, #tpu.memory_space<vmem>>, vector<2x16xf32>,
    %881 = vector.extract_strided_slice %764 {offsets = [10, 0], sizes = [2, 64], strides = [1, 1]} : vector<16x64xf32> to vector<2x64xf32>
    %cst_201 = arith.constant dense<0.000000e+00> : vector<2x64xf32>
    %882 = tpu.matmul %879, %766, %cst_201 {dimension_numbers = #tpu.dot_dimension_numbers<[1], [0], [0], [1], [0, 0, 1, 1], [], []>} : vector<2x16xf32>, vector<16x64xf32>, vector<2x64xf32> -> vector<2x64xf32>
    %883 = arith.addf %881, %882 : vector<2x64xf32>
    %884 = vector.extract_strided_slice %883 {offsets = [0, 0], sizes = [2, 48], strides = [1, 1]} : vector<2x64xf32> to vector<2x48xf32>
    %885 = arith.negf %884 : vector<2x48xf32>
    %886 = math.exp %885 : vector<2x48xf32>
    %cst_202 = arith.constant 1.000000e+00 : f32
    %887 = vector.broadcast %cst_202 : f32 to vector<2x48xf32>
    %888 = arith.addf %887, %886 : vector<2x48xf32>
    %889 = arith.divf %887, %888 : vector<2x48xf32>
    %890 = vector.extract_strided_slice %889 {offsets = [0, 0], sizes = [2, 16], strides = [1, 1]} : vector<2x48xf32> to vector<2x16xf32>
    %891 = vector.extract_strided_slice %889 {offsets = [0, 16], sizes = [2, 16], strides = [1, 1]} : vector<2x48xf32> to vector<2x16xf32>
    %892 = vector.extract_strided_slice %889 {offsets = [0, 32], sizes = [2, 16], strides = [1, 1]} : vector<2x48xf32> to vector<2x16xf32>
    %893 = vector.extract_strided_slice %883 {offsets = [0, 48], sizes = [2, 16], strides = [1, 1]} : vector<2x64xf32> to vector<2x16xf32>
    %894 = math.tanh %893 : vector<2x16xf32>
    %895 = arith.mulf %891, %874 : vector<2x16xf32>
    %896 = arith.mulf %890, %894 : vector<2x16xf32>
    %897 = arith.addf %895, %896 : vector<2x16xf32>
    %898 = math.tanh %897 : vector<2x16xf32>
    %899 = arith.mulf %892, %898 : vector<2x16xf32>
    %900 = vector.extract_strided_slice %761 {offsets = [10, 0], sizes = [2, 16], strides = [1, 1]} : vector<16x16xf32> to vector<2x16xf32>
    %901 = arith.mulf %900, %879 : vector<2x16xf32>
    %902 = arith.addf %899, %901 : vector<2x16xf32>
    %c10_203 = arith.constant 10 : index
    %c0_204 = arith.constant 0 : index
    %903 = vector.load %arg12[%c10_203, %c0_204] : memref<16x32xf32, #tpu.memory_space<vmem>>, vector<2x16xf32>
    tpu.vector_store %arg12[%c10_203, %c0_204], %902 {strides = array<i32>} : memref<16x32xf32, #tpu.memory_space<vmem>>, vector<2x16xf32>,
    %904 = vector.extract_strided_slice %764 {offsets = [12, 0], sizes = [2, 64], strides = [1, 1]} : vector<16x64xf32> to vector<2x64xf32>
    %cst_205 = arith.constant dense<0.000000e+00> : vector<2x64xf32>
    %905 = tpu.matmul %902, %766, %cst_205 {dimension_numbers = #tpu.dot_dimension_numbers<[1], [0], [0], [1], [0, 0, 1, 1], [], []>} : vector<2x16xf32>, vector<16x64xf32>, vector<2x64xf32> -> vector<2x64xf32>
    %906 = arith.addf %904, %905 : vector<2x64xf32>
    %907 = vector.extract_strided_slice %906 {offsets = [0, 0], sizes = [2, 48], strides = [1, 1]} : vector<2x64xf32> to vector<2x48xf32>
    %908 = arith.negf %907 : vector<2x48xf32>
    %909 = math.exp %908 : vector<2x48xf32>
    %cst_206 = arith.constant 1.000000e+00 : f32
    %910 = vector.broadcast %cst_206 : f32 to vector<2x48xf32>
    %911 = arith.addf %910, %909 : vector<2x48xf32>
    %912 = arith.divf %910, %911 : vector<2x48xf32>
    %913 = vector.extract_strided_slice %912 {offsets = [0, 0], sizes = [2, 16], strides = [1, 1]} : vector<2x48xf32> to vector<2x16xf32>
    %914 = vector.extract_strided_slice %912 {offsets = [0, 16], sizes = [2, 16], strides = [1, 1]} : vector<2x48xf32> to vector<2x16xf32>
    %915 = vector.extract_strided_slice %912 {offsets = [0, 32], sizes = [2, 16], strides = [1, 1]} : vector<2x48xf32> to vector<2x16xf32>
    %916 = vector.extract_strided_slice %906 {offsets = [0, 48], sizes = [2, 16], strides = [1, 1]} : vector<2x64xf32> to vector<2x16xf32>
    %917 = math.tanh %916 : vector<2x16xf32>
    %918 = arith.mulf %914, %897 : vector<2x16xf32>
    %919 = arith.mulf %913, %917 : vector<2x16xf32>
    %920 = arith.addf %918, %919 : vector<2x16xf32>
    %921 = math.tanh %920 : vector<2x16xf32>
    %922 = arith.mulf %915, %921 : vector<2x16xf32>
    %923 = vector.extract_strided_slice %761 {offsets = [12, 0], sizes = [2, 16], strides = [1, 1]} : vector<16x16xf32> to vector<2x16xf32>
    %924 = arith.mulf %923, %902 : vector<2x16xf32>
    %925 = arith.addf %922, %924 : vector<2x16xf32>
    %c12_207 = arith.constant 12 : index
    %c0_208 = arith.constant 0 : index
    %926 = vector.load %arg12[%c12_207, %c0_208] : memref<16x32xf32, #tpu.memory_space<vmem>>, vector<2x16xf32>
    tpu.vector_store %arg12[%c12_207, %c0_208], %925 {strides = array<i32>} : memref<16x32xf32, #tpu.memory_space<vmem>>, vector<2x16xf32>,
    %927 = vector.extract_strided_slice %764 {offsets = [14, 0], sizes = [2, 64], strides = [1, 1]} : vector<16x64xf32> to vector<2x64xf32>
    %cst_209 = arith.constant dense<0.000000e+00> : vector<2x64xf32>
    %928 = tpu.matmul %925, %766, %cst_209 {dimension_numbers = #tpu.dot_dimension_numbers<[1], [0], [0], [1], [0, 0, 1, 1], [], []>} : vector<2x16xf32>, vector<16x64xf32>, vector<2x64xf32> -> vector<2x64xf32>
    %929 = arith.addf %927, %928 : vector<2x64xf32>
    %930 = vector.extract_strided_slice %929 {offsets = [0, 0], sizes = [2, 48], strides = [1, 1]} : vector<2x64xf32> to vector<2x48xf32>
    %931 = arith.negf %930 : vector<2x48xf32>
    %932 = math.exp %931 : vector<2x48xf32>
    %cst_210 = arith.constant 1.000000e+00 : f32
    %933 = vector.broadcast %cst_210 : f32 to vector<2x48xf32>
    %934 = arith.addf %933, %932 : vector<2x48xf32>
    %935 = arith.divf %933, %934 : vector<2x48xf32>
    %936 = vector.extract_strided_slice %935 {offsets = [0, 0], sizes = [2, 16], strides = [1, 1]} : vector<2x48xf32> to vector<2x16xf32>
    %937 = vector.extract_strided_slice %935 {offsets = [0, 16], sizes = [2, 16], strides = [1, 1]} : vector<2x48xf32> to vector<2x16xf32>
    %938 = vector.extract_strided_slice %935 {offsets = [0, 32], sizes = [2, 16], strides = [1, 1]} : vector<2x48xf32> to vector<2x16xf32>
    %939 = vector.extract_strided_slice %929 {offsets = [0, 48], sizes = [2, 16], strides = [1, 1]} : vector<2x64xf32> to vector<2x16xf32>
    %940 = math.tanh %939 : vector<2x16xf32>
    %941 = arith.mulf %937, %920 : vector<2x16xf32>
    %942 = arith.mulf %936, %940 : vector<2x16xf32>
    %943 = arith.addf %941, %942 : vector<2x16xf32>
    %944 = math.tanh %943 : vector<2x16xf32>
    %945 = arith.mulf %938, %944 : vector<2x16xf32>
    %946 = vector.extract_strided_slice %761 {offsets = [14, 0], sizes = [2, 16], strides = [1, 1]} : vector<16x16xf32> to vector<2x16xf32>
    %947 = arith.mulf %946, %925 : vector<2x16xf32>
    %948 = arith.addf %945, %947 : vector<2x16xf32>
    %c14_211 = arith.constant 14 : index
    %c0_212 = arith.constant 0 : index
    %949 = vector.load %arg12[%c14_211, %c0_212] : memref<16x32xf32, #tpu.memory_space<vmem>>, vector<2x16xf32>
    tpu.vector_store %arg12[%c14_211, %c0_212], %948 {strides = array<i32>} : memref<16x32xf32, #tpu.memory_space<vmem>>, vector<2x16xf32>,
    %950 = vector.extract_strided_slice %759 {offsets = [0, 64], sizes = [16, 64], strides = [1, 1]} : vector<16x128xf32> to vector<16x64xf32>
    %c1_213 = arith.constant 1 : index
    %c0_214 = arith.constant 0 : index
    %c0_215 = arith.constant 0 : index
    %951 = vector.load %arg10[%c1_213, %c0_214, %c0_215] : memref<2x16x64xf32, #tpu.memory_space<vmem>>, vector<1x16x64xf32>
    %952 = vector.shape_cast %951 : vector<1x16x64xf32> to vector<16x64xf32>
    %cst_216 = arith.constant 0.000000e+00 : f32
    %953 = vector.broadcast %cst_216 : f32 to vector<2x16xf32>
    %cst_217 = arith.constant 0.000000e+00 : f32
    %954 = vector.broadcast %cst_217 : f32 to vector<2x16xf32>
    %955 = vector.extract_strided_slice %950 {offsets = [14, 0], sizes = [2, 64], strides = [1, 1]} : vector<16x64xf32> to vector<2x64xf32>
    %cst_218 = arith.constant dense<0.000000e+00> : vector<2x64xf32>
    %956 = tpu.matmul %953, %952, %cst_218 {dimension_numbers = #tpu.dot_dimension_numbers<[1], [0], [0], [1], [0, 0, 1, 1], [], []>} : vector<2x16xf32>, vector<16x64xf32>, vector<2x64xf32> -> vector<2x64xf32>
    %957 = arith.addf %955, %956 : vector<2x64xf32>
    %958 = vector.extract_strided_slice %957 {offsets = [0, 0], sizes = [2, 48], strides = [1, 1]} : vector<2x64xf32> to vector<2x48xf32>
    %959 = arith.negf %958 : vector<2x48xf32>
    %960 = math.exp %959 : vector<2x48xf32>
    %cst_219 = arith.constant 1.000000e+00 : f32
    %961 = vector.broadcast %cst_219 : f32 to vector<2x48xf32>
    %962 = arith.addf %961, %960 : vector<2x48xf32>
    %963 = arith.divf %961, %962 : vector<2x48xf32>
    %964 = vector.extract_strided_slice %963 {offsets = [0, 0], sizes = [2, 16], strides = [1, 1]} : vector<2x48xf32> to vector<2x16xf32>
    %965 = vector.extract_strided_slice %963 {offsets = [0, 16], sizes = [2, 16], strides = [1, 1]} : vector<2x48xf32> to vector<2x16xf32>
    %966 = vector.extract_strided_slice %963 {offsets = [0, 32], sizes = [2, 16], strides = [1, 1]} : vector<2x48xf32> to vector<2x16xf32>
    %967 = vector.extract_strided_slice %957 {offsets = [0, 48], sizes = [2, 16], strides = [1, 1]} : vector<2x64xf32> to vector<2x16xf32>
    %968 = math.tanh %967 : vector<2x16xf32>
    %969 = arith.mulf %965, %954 : vector<2x16xf32>
    %970 = arith.mulf %964, %968 : vector<2x16xf32>
    %971 = arith.addf %969, %970 : vector<2x16xf32>
    %972 = math.tanh %971 : vector<2x16xf32>
    %973 = arith.mulf %966, %972 : vector<2x16xf32>
    %c14_220 = arith.constant 14 : index
    %c16_221 = arith.constant 16 : index
    %974 = vector.load %arg12[%c14_220, %c16_221] : memref<16x32xf32, #tpu.memory_space<vmem>>, vector<2x16xf32>
    tpu.vector_store %arg12[%c14_220, %c16_221], %973 {strides = array<i32>} : memref<16x32xf32, #tpu.memory_space<vmem>>, vector<2x16xf32>,
    %975 = vector.extract_strided_slice %950 {offsets = [12, 0], sizes = [2, 64], strides = [1, 1]} : vector<16x64xf32> to vector<2x64xf32>
    %cst_222 = arith.constant dense<0.000000e+00> : vector<2x64xf32>
    %976 = tpu.matmul %973, %952, %cst_222 {dimension_numbers = #tpu.dot_dimension_numbers<[1], [0], [0], [1], [0, 0, 1, 1], [], []>} : vector<2x16xf32>, vector<16x64xf32>, vector<2x64xf32> -> vector<2x64xf32>
    %977 = arith.addf %975, %976 : vector<2x64xf32>
    %978 = vector.extract_strided_slice %977 {offsets = [0, 0], sizes = [2, 48], strides = [1, 1]} : vector<2x64xf32> to vector<2x48xf32>
    %979 = arith.negf %978 : vector<2x48xf32>
    %980 = math.exp %979 : vector<2x48xf32>
    %cst_223 = arith.constant 1.000000e+00 : f32
    %981 = vector.broadcast %cst_223 : f32 to vector<2x48xf32>
    %982 = arith.addf %981, %980 : vector<2x48xf32>
    %983 = arith.divf %981, %982 : vector<2x48xf32>
    %984 = vector.extract_strided_slice %983 {offsets = [0, 0], sizes = [2, 16], strides = [1, 1]} : vector<2x48xf32> to vector<2x16xf32>
    %985 = vector.extract_strided_slice %983 {offsets = [0, 16], sizes = [2, 16], strides = [1, 1]} : vector<2x48xf32> to vector<2x16xf32>
    %986 = vector.extract_strided_slice %983 {offsets = [0, 32], sizes = [2, 16], strides = [1, 1]} : vector<2x48xf32> to vector<2x16xf32>
    %987 = vector.extract_strided_slice %977 {offsets = [0, 48], sizes = [2, 16], strides = [1, 1]} : vector<2x64xf32> to vector<2x16xf32>
    %988 = math.tanh %987 : vector<2x16xf32>
    %989 = arith.mulf %985, %971 : vector<2x16xf32>
    %990 = arith.mulf %984, %988 : vector<2x16xf32>
    %991 = arith.addf %989, %990 : vector<2x16xf32>
    %992 = math.tanh %991 : vector<2x16xf32>
    %993 = arith.mulf %986, %992 : vector<2x16xf32>
    %994 = vector.extract_strided_slice %763 {offsets = [2, 0], sizes = [2, 16], strides = [1, 1]} : vector<16x16xf32> to vector<2x16xf32>
    %995 = arith.mulf %994, %973 : vector<2x16xf32>
    %996 = arith.addf %993, %995 : vector<2x16xf32>
    %c12_224 = arith.constant 12 : index
    %c16_225 = arith.constant 16 : index
    %997 = vector.load %arg12[%c12_224, %c16_225] : memref<16x32xf32, #tpu.memory_space<vmem>>, vector<2x16xf32>
    tpu.vector_store %arg12[%c12_224, %c16_225], %996 {strides = array<i32>} : memref<16x32xf32, #tpu.memory_space<vmem>>, vector<2x16xf32>,
    %998 = vector.extract_strided_slice %950 {offsets = [10, 0], sizes = [2, 64], strides = [1, 1]} : vector<16x64xf32> to vector<2x64xf32>
    %cst_226 = arith.constant dense<0.000000e+00> : vector<2x64xf32>
    %999 = tpu.matmul %996, %952, %cst_226 {dimension_numbers = #tpu.dot_dimension_numbers<[1], [0], [0], [1], [0, 0, 1, 1], [], []>} : vector<2x16xf32>, vector<16x64xf32>, vector<2x64xf32> -> vector<2x64xf32>
    %1000 = arith.addf %998, %999 : vector<2x64xf32>
    %1001 = vector.extract_strided_slice %1000 {offsets = [0, 0], sizes = [2, 48], strides = [1, 1]} : vector<2x64xf32> to vector<2x48xf32>
    %1002 = arith.negf %1001 : vector<2x48xf32>
    %1003 = math.exp %1002 : vector<2x48xf32>
    %cst_227 = arith.constant 1.000000e+00 : f32
    %1004 = vector.broadcast %cst_227 : f32 to vector<2x48xf32>
    %1005 = arith.addf %1004, %1003 : vector<2x48xf32>
    %1006 = arith.divf %1004, %1005 : vector<2x48xf32>
    %1007 = vector.extract_strided_slice %1006 {offsets = [0, 0], sizes = [2, 16], strides = [1, 1]} : vector<2x48xf32> to vector<2x16xf32>
    %1008 = vector.extract_strided_slice %1006 {offsets = [0, 16], sizes = [2, 16], strides = [1, 1]} : vector<2x48xf32> to vector<2x16xf32>
    %1009 = vector.extract_strided_slice %1006 {offsets = [0, 32], sizes = [2, 16], strides = [1, 1]} : vector<2x48xf32> to vector<2x16xf32>
    %1010 = vector.extract_strided_slice %1000 {offsets = [0, 48], sizes = [2, 16], strides = [1, 1]} : vector<2x64xf32> to vector<2x16xf32>
    %1011 = math.tanh %1010 : vector<2x16xf32>
    %1012 = arith.mulf %1008, %991 : vector<2x16xf32>
    %1013 = arith.mulf %1007, %1011 : vector<2x16xf32>
    %1014 = arith.addf %1012, %1013 : vector<2x16xf32>
    %1015 = math.tanh %1014 : vector<2x16xf32>
    %1016 = arith.mulf %1009, %1015 : vector<2x16xf32>
    %1017 = vector.extract_strided_slice %763 {offsets = [4, 0], sizes = [2, 16], strides = [1, 1]} : vector<16x16xf32> to vector<2x16xf32>
    %1018 = arith.mulf %1017, %996 : vector<2x16xf32>
    %1019 = arith.addf %1016, %1018 : vector<2x16xf32>
    %c10_228 = arith.constant 10 : index
    %c16_229 = arith.constant 16 : index
    %1020 = vector.load %arg12[%c10_228, %c16_229] : memref<16x32xf32, #tpu.memory_space<vmem>>, vector<2x16xf32>
    tpu.vector_store %arg12[%c10_228, %c16_229], %1019 {strides = array<i32>} : memref<16x32xf32, #tpu.memory_space<vmem>>, vector<2x16xf32>,
    %1021 = vector.extract_strided_slice %950 {offsets = [8, 0], sizes = [2, 64], strides = [1, 1]} : vector<16x64xf32> to vector<2x64xf32>
    %cst_230 = arith.constant dense<0.000000e+00> : vector<2x64xf32>
    %1022 = tpu.matmul %1019, %952, %cst_230 {dimension_numbers = #tpu.dot_dimension_numbers<[1], [0], [0], [1], [0, 0, 1, 1], [], []>} : vector<2x16xf32>, vector<16x64xf32>, vector<2x64xf32> -> vector<2x64xf32>
    %1023 = arith.addf %1021, %1022 : vector<2x64xf32>
    %1024 = vector.extract_strided_slice %1023 {offsets = [0, 0], sizes = [2, 48], strides = [1, 1]} : vector<2x64xf32> to vector<2x48xf32>
    %1025 = arith.negf %1024 : vector<2x48xf32>
    %1026 = math.exp %1025 : vector<2x48xf32>
    %cst_231 = arith.constant 1.000000e+00 : f32
    %1027 = vector.broadcast %cst_231 : f32 to vector<2x48xf32>
    %1028 = arith.addf %1027, %1026 : vector<2x48xf32>
    %1029 = arith.divf %1027, %1028 : vector<2x48xf32>
    %1030 = vector.extract_strided_slice %1029 {offsets = [0, 0], sizes = [2, 16], strides = [1, 1]} : vector<2x48xf32> to vector<2x16xf32>
    %1031 = vector.extract_strided_slice %1029 {offsets = [0, 16], sizes = [2, 16], strides = [1, 1]} : vector<2x48xf32> to vector<2x16xf32>
    %1032 = vector.extract_strided_slice %1029 {offsets = [0, 32], sizes = [2, 16], strides = [1, 1]} : vector<2x48xf32> to vector<2x16xf32>
    %1033 = vector.extract_strided_slice %1023 {offsets = [0, 48], sizes = [2, 16], strides = [1, 1]} : vector<2x64xf32> to vector<2x16xf32>
    %1034 = math.tanh %1033 : vector<2x16xf32>
    %1035 = arith.mulf %1031, %1014 : vector<2x16xf32>
    %1036 = arith.mulf %1030, %1034 : vector<2x16xf32>
    %1037 = arith.addf %1035, %1036 : vector<2x16xf32>
    %1038 = math.tanh %1037 : vector<2x16xf32>
    %1039 = arith.mulf %1032, %1038 : vector<2x16xf32>
    %1040 = vector.extract_strided_slice %763 {offsets = [6, 0], sizes = [2, 16], strides = [1, 1]} : vector<16x16xf32> to vector<2x16xf32>
    %1041 = arith.mulf %1040, %1019 : vector<2x16xf32>
    %1042 = arith.addf %1039, %1041 : vector<2x16xf32>
    %c8_232 = arith.constant 8 : index
    %c16_233 = arith.constant 16 : index
    %1043 = vector.load %arg12[%c8_232, %c16_233] : memref<16x32xf32, #tpu.memory_space<vmem>>, vector<2x16xf32>
    tpu.vector_store %arg12[%c8_232, %c16_233], %1042 {strides = array<i32>} : memref<16x32xf32, #tpu.memory_space<vmem>>, vector<2x16xf32>,
    %1044 = vector.extract_strided_slice %950 {offsets = [6, 0], sizes = [2, 64], strides = [1, 1]} : vector<16x64xf32> to vector<2x64xf32>
    %cst_234 = arith.constant dense<0.000000e+00> : vector<2x64xf32>
    %1045 = tpu.matmul %1042, %952, %cst_234 {dimension_numbers = #tpu.dot_dimension_numbers<[1], [0], [0], [1], [0, 0, 1, 1], [], []>} : vector<2x16xf32>, vector<16x64xf32>, vector<2x64xf32> -> vector<2x64xf32>
    %1046 = arith.addf %1044, %1045 : vector<2x64xf32>
    %1047 = vector.extract_strided_slice %1046 {offsets = [0, 0], sizes = [2, 48], strides = [1, 1]} : vector<2x64xf32> to vector<2x48xf32>
    %1048 = arith.negf %1047 : vector<2x48xf32>
    %1049 = math.exp %1048 : vector<2x48xf32>
    %cst_235 = arith.constant 1.000000e+00 : f32
    %1050 = vector.broadcast %cst_235 : f32 to vector<2x48xf32>
    %1051 = arith.addf %1050, %1049 : vector<2x48xf32>
    %1052 = arith.divf %1050, %1051 : vector<2x48xf32>
    %1053 = vector.extract_strided_slice %1052 {offsets = [0, 0], sizes = [2, 16], strides = [1, 1]} : vector<2x48xf32> to vector<2x16xf32>
    %1054 = vector.extract_strided_slice %1052 {offsets = [0, 16], sizes = [2, 16], strides = [1, 1]} : vector<2x48xf32> to vector<2x16xf32>
    %1055 = vector.extract_strided_slice %1052 {offsets = [0, 32], sizes = [2, 16], strides = [1, 1]} : vector<2x48xf32> to vector<2x16xf32>
    %1056 = vector.extract_strided_slice %1046 {offsets = [0, 48], sizes = [2, 16], strides = [1, 1]} : vector<2x64xf32> to vector<2x16xf32>
    %1057 = math.tanh %1056 : vector<2x16xf32>
    %1058 = arith.mulf %1054, %1037 : vector<2x16xf32>
    %1059 = arith.mulf %1053, %1057 : vector<2x16xf32>
    %1060 = arith.addf %1058, %1059 : vector<2x16xf32>
    %1061 = math.tanh %1060 : vector<2x16xf32>
    %1062 = arith.mulf %1055, %1061 : vector<2x16xf32>
    %1063 = vector.extract_strided_slice %763 {offsets = [8, 0], sizes = [2, 16], strides = [1, 1]} : vector<16x16xf32> to vector<2x16xf32>
    %1064 = arith.mulf %1063, %1042 : vector<2x16xf32>
    %1065 = arith.addf %1062, %1064 : vector<2x16xf32>
    %c6_236 = arith.constant 6 : index
    %c16_237 = arith.constant 16 : index
    %1066 = vector.load %arg12[%c6_236, %c16_237] : memref<16x32xf32, #tpu.memory_space<vmem>>, vector<2x16xf32>
    tpu.vector_store %arg12[%c6_236, %c16_237], %1065 {strides = array<i32>} : memref<16x32xf32, #tpu.memory_space<vmem>>, vector<2x16xf32>,
    %1067 = vector.extract_strided_slice %950 {offsets = [4, 0], sizes = [2, 64], strides = [1, 1]} : vector<16x64xf32> to vector<2x64xf32>
    %cst_238 = arith.constant dense<0.000000e+00> : vector<2x64xf32>
    %1068 = tpu.matmul %1065, %952, %cst_238 {dimension_numbers = #tpu.dot_dimension_numbers<[1], [0], [0], [1], [0, 0, 1, 1], [], []>} : vector<2x16xf32>, vector<16x64xf32>, vector<2x64xf32> -> vector<2x64xf32>
    %1069 = arith.addf %1067, %1068 : vector<2x64xf32>
    %1070 = vector.extract_strided_slice %1069 {offsets = [0, 0], sizes = [2, 48], strides = [1, 1]} : vector<2x64xf32> to vector<2x48xf32>
    %1071 = arith.negf %1070 : vector<2x48xf32>
    %1072 = math.exp %1071 : vector<2x48xf32>
    %cst_239 = arith.constant 1.000000e+00 : f32
    %1073 = vector.broadcast %cst_239 : f32 to vector<2x48xf32>
    %1074 = arith.addf %1073, %1072 : vector<2x48xf32>
    %1075 = arith.divf %1073, %1074 : vector<2x48xf32>
    %1076 = vector.extract_strided_slice %1075 {offsets = [0, 0], sizes = [2, 16], strides = [1, 1]} : vector<2x48xf32> to vector<2x16xf32>
    %1077 = vector.extract_strided_slice %1075 {offsets = [0, 16], sizes = [2, 16], strides = [1, 1]} : vector<2x48xf32> to vector<2x16xf32>
    %1078 = vector.extract_strided_slice %1075 {offsets = [0, 32], sizes = [2, 16], strides = [1, 1]} : vector<2x48xf32> to vector<2x16xf32>
    %1079 = vector.extract_strided_slice %1069 {offsets = [0, 48], sizes = [2, 16], strides = [1, 1]} : vector<2x64xf32> to vector<2x16xf32>
    %1080 = math.tanh %1079 : vector<2x16xf32>
    %1081 = arith.mulf %1077, %1060 : vector<2x16xf32>
    %1082 = arith.mulf %1076, %1080 : vector<2x16xf32>
    %1083 = arith.addf %1081, %1082 : vector<2x16xf32>
    %1084 = math.tanh %1083 : vector<2x16xf32>
    %1085 = arith.mulf %1078, %1084 : vector<2x16xf32>
    %1086 = vector.extract_strided_slice %763 {offsets = [10, 0], sizes = [2, 16], strides = [1, 1]} : vector<16x16xf32> to vector<2x16xf32>
    %1087 = arith.mulf %1086, %1065 : vector<2x16xf32>
    %1088 = arith.addf %1085, %1087 : vector<2x16xf32>
    %c4_240 = arith.constant 4 : index
    %c16_241 = arith.constant 16 : index
    %1089 = vector.load %arg12[%c4_240, %c16_241] : memref<16x32xf32, #tpu.memory_space<vmem>>, vector<2x16xf32>
    tpu.vector_store %arg12[%c4_240, %c16_241], %1088 {strides = array<i32>} : memref<16x32xf32, #tpu.memory_space<vmem>>, vector<2x16xf32>,
    %1090 = vector.extract_strided_slice %950 {offsets = [2, 0], sizes = [2, 64], strides = [1, 1]} : vector<16x64xf32> to vector<2x64xf32>
    %cst_242 = arith.constant dense<0.000000e+00> : vector<2x64xf32>
    %1091 = tpu.matmul %1088, %952, %cst_242 {dimension_numbers = #tpu.dot_dimension_numbers<[1], [0], [0], [1], [0, 0, 1, 1], [], []>} : vector<2x16xf32>, vector<16x64xf32>, vector<2x64xf32> -> vector<2x64xf32>
    %1092 = arith.addf %1090, %1091 : vector<2x64xf32>
    %1093 = vector.extract_strided_slice %1092 {offsets = [0, 0], sizes = [2, 48], strides = [1, 1]} : vector<2x64xf32> to vector<2x48xf32>
    %1094 = arith.negf %1093 : vector<2x48xf32>
    %1095 = math.exp %1094 : vector<2x48xf32>
    %cst_243 = arith.constant 1.000000e+00 : f32
    %1096 = vector.broadcast %cst_243 : f32 to vector<2x48xf32>
    %1097 = arith.addf %1096, %1095 : vector<2x48xf32>
    %1098 = arith.divf %1096, %1097 : vector<2x48xf32>
    %1099 = vector.extract_strided_slice %1098 {offsets = [0, 0], sizes = [2, 16], strides = [1, 1]} : vector<2x48xf32> to vector<2x16xf32>
    %1100 = vector.extract_strided_slice %1098 {offsets = [0, 16], sizes = [2, 16], strides = [1, 1]} : vector<2x48xf32> to vector<2x16xf32>
    %1101 = vector.extract_strided_slice %1098 {offsets = [0, 32], sizes = [2, 16], strides = [1, 1]} : vector<2x48xf32> to vector<2x16xf32>
    %1102 = vector.extract_strided_slice %1092 {offsets = [0, 48], sizes = [2, 16], strides = [1, 1]} : vector<2x64xf32> to vector<2x16xf32>
    %1103 = math.tanh %1102 : vector<2x16xf32>
    %1104 = arith.mulf %1100, %1083 : vector<2x16xf32>
    %1105 = arith.mulf %1099, %1103 : vector<2x16xf32>
    %1106 = arith.addf %1104, %1105 : vector<2x16xf32>
    %1107 = math.tanh %1106 : vector<2x16xf32>
    %1108 = arith.mulf %1101, %1107 : vector<2x16xf32>
    %1109 = vector.extract_strided_slice %763 {offsets = [12, 0], sizes = [2, 16], strides = [1, 1]} : vector<16x16xf32> to vector<2x16xf32>
    %1110 = arith.mulf %1109, %1088 : vector<2x16xf32>
    %1111 = arith.addf %1108, %1110 : vector<2x16xf32>
    %c2_244 = arith.constant 2 : index
    %c16_245 = arith.constant 16 : index
    %1112 = vector.load %arg12[%c2_244, %c16_245] : memref<16x32xf32, #tpu.memory_space<vmem>>, vector<2x16xf32>
    tpu.vector_store %arg12[%c2_244, %c16_245], %1111 {strides = array<i32>} : memref<16x32xf32, #tpu.memory_space<vmem>>, vector<2x16xf32>,
    %1113 = vector.extract_strided_slice %950 {offsets = [0, 0], sizes = [2, 64], strides = [1, 1]} : vector<16x64xf32> to vector<2x64xf32>
    %cst_246 = arith.constant dense<0.000000e+00> : vector<2x64xf32>
    %1114 = tpu.matmul %1111, %952, %cst_246 {dimension_numbers = #tpu.dot_dimension_numbers<[1], [0], [0], [1], [0, 0, 1, 1], [], []>} : vector<2x16xf32>, vector<16x64xf32>, vector<2x64xf32> -> vector<2x64xf32>
    %1115 = arith.addf %1113, %1114 : vector<2x64xf32>
    %1116 = vector.extract_strided_slice %1115 {offsets = [0, 0], sizes = [2, 48], strides = [1, 1]} : vector<2x64xf32> to vector<2x48xf32>
    %1117 = arith.negf %1116 : vector<2x48xf32>
    %1118 = math.exp %1117 : vector<2x48xf32>
    %cst_247 = arith.constant 1.000000e+00 : f32
    %1119 = vector.broadcast %cst_247 : f32 to vector<2x48xf32>
    %1120 = arith.addf %1119, %1118 : vector<2x48xf32>
    %1121 = arith.divf %1119, %1120 : vector<2x48xf32>
    %1122 = vector.extract_strided_slice %1121 {offsets = [0, 0], sizes = [2, 16], strides = [1, 1]} : vector<2x48xf32> to vector<2x16xf32>
    %1123 = vector.extract_strided_slice %1121 {offsets = [0, 16], sizes = [2, 16], strides = [1, 1]} : vector<2x48xf32> to vector<2x16xf32>
    %1124 = vector.extract_strided_slice %1121 {offsets = [0, 32], sizes = [2, 16], strides = [1, 1]} : vector<2x48xf32> to vector<2x16xf32>
    %1125 = vector.extract_strided_slice %1115 {offsets = [0, 48], sizes = [2, 16], strides = [1, 1]} : vector<2x64xf32> to vector<2x16xf32>
    %1126 = math.tanh %1125 : vector<2x16xf32>
    %1127 = arith.mulf %1123, %1106 : vector<2x16xf32>
    %1128 = arith.mulf %1122, %1126 : vector<2x16xf32>
    %1129 = arith.addf %1127, %1128 : vector<2x16xf32>
    %1130 = math.tanh %1129 : vector<2x16xf32>
    %1131 = arith.mulf %1124, %1130 : vector<2x16xf32>
    %1132 = vector.extract_strided_slice %763 {offsets = [14, 0], sizes = [2, 16], strides = [1, 1]} : vector<16x16xf32> to vector<2x16xf32>
    %1133 = arith.mulf %1132, %1111 : vector<2x16xf32>
    %1134 = arith.addf %1131, %1133 : vector<2x16xf32>
    %c0_248 = arith.constant 0 : index
    %c16_249 = arith.constant 16 : index
    %1135 = vector.load %arg12[%c0_248, %c16_249] : memref<16x32xf32, #tpu.memory_space<vmem>>, vector<2x16xf32>
    tpu.vector_store %arg12[%c0_248, %c16_249], %1134 {strides = array<i32>} : memref<16x32xf32, #tpu.memory_space<vmem>>, vector<2x16xf32>,
    return
  }
}

</mosaic_0001>

<bundles_post_ra>
// kernel: dtrn_forward.1
= control target key start
LH: loop header
LB: loop body
LE: loop exit
PB: predicated region body
PF: predicated region fallthrough
CT: control target
= control target key end

     0   :  { %17 = vsyncpa [#allocation5], 0  ;;  %s8488_s0 = inlined_call_operand.vmem [shape: f32[16,8], index: 0, kind: input, shape index: {}]   ;;  %s8489_s1 = inlined_call_operand.vmem [shape: f32[8,128], index: 1, kind: input, shape index: {}]   ;;  %s8490_s2 = inlined_call_operand.vmem [shape: f32[2,16,64], index: 2, kind: input, shape index: {}]   ;;  %s8491_s3 = inlined_call_operand.hbm [shape: f32[1,128], index: 3, kind: input, shape index: {}]   ;;  %s8492_s4 = inlined_call_operand.hbm [shape: f32[2,1,16], index: 4, kind: input, shape index: {}]   ;;  %s8493_s5 = inlined_call_operand.vmem [shape: f32[2,1,1], index: 5, kind: input, shape index: {}]   ;;  %s8494_s6 = inlined_call_operand.vmem [shape: f32[8,128], index: 6, kind: input, shape index: {}]   ;;  %s8495_s7 = inlined_call_operand.hbm [shape: f32[2,16,64], index: 7, kind: input, shape index: {}]   ;;  %s8496_s8 = inlined_call_operand.hbm [shape: f32[1,128], index: 8, kind: input, shape index: {}]   ;;  %s8497_s9 = inlined_call_operand.hbm [shape: f32[32,128], index: 9, kind: input, shape index: {}]   ;;  %s8498_s10 = inlined_call_operand.hbm [shape: f32[2,16,64], index: 10, kind: input, shape index: {}]   ;;  %s8499_s11 = inlined_call_operand.vmem [shape: f32[1,128], index: 11, kind: input, shape index: {}]   ;;  %s8500_s12 = inlined_call_operand.vmem [shape: f32[16,32], index: 12, kind: output, shape index: {}]  }
   0x1   :  { %18 = vsyncpa [#allocation7], 0 }
   0x2   :  { %19 = vsyncpa [#allocation10], 0 }
   0x3   :  { %20 = vsyncpa [#allocation13], 0  ;;  %s7241_s21 = smov [#allocation6]  }
   0x4   :  { %s42_s22 = sshll.u32 %s7241_s21, 4  ;;  %s43_s22 = int_to_ptr.vmem [resolvable:$true] %s42_s22 }
   0x5   :  { %s7121_s23 = scalar_lea.vmem %s43_s22, 32  ;;  %p7126_p1 = scmp.lt.s32.totalorder %s43_s22, %s43_s22 }
   0x6   :  { %p7122_p0 = scmp.ne.s32.totalorder %s43_s22, %s7121_s23  ;;  %p7127_p2 = scmp.lt.s32.totalorder %s7121_s23, %s7121_s23 }
   0x8   :  { %p7128_p3 = por %p7127_p2, %p7126_p1 }
   0xa   :  { %p7129_p4 = pnand %p7128_p3, %p7122_p0 }
   0xc   :  { %7132 = shalt.err (!%p7129_p4)
}
   0xd   :  { %s7242_s24 = smov 16   ;;  %s7243_s25 = smov 1  }
   0xe   :  { %48 = dma.hbm_to_vmem [thread:$0]  %s8492_s4, 32, %s43_s22, [#allocation7], %s7242_s24, %s7242_s24, %s7243_s25  }
   0xf   :  { %s7244_s28 = smov [#allocation9]   ;;  %s7245_s30 = smov [#allocation4]  }
  0x10   :  { %s71_s29 = sshll.u32 %s7244_s28, 4  ;;  %s33_s13 = sshll.u32 %s7245_s30, 4  ;;  %s72_s29 = int_to_ptr.vmem [resolvable:$true] %s71_s29  ;;  %s34_s13 = int_to_ptr.vmem [resolvable:$true] %s33_s13 }
  0x11   :  { %s7141_s14 = scalar_lea.vmem %s72_s29, 16  ;;  %s7145_s15 = scalar_lea.vmem %s72_s29, 32 }
  0x12   :  { %p7142_p5 = scmp.ne.s32.totalorder %s72_s29, %s7141_s14  ;;  %p7146_p6 = scmp.lt.s32.totalorder %s72_s29, %s72_s29 }
  0x13   :  { %p7147_p7 = scmp.lt.s32.totalorder %s7145_s15, %s7141_s14 }
  0x15   :  { %p7148_p8 = por %p7147_p7, %p7146_p6 }
  0x17   :  { %p7149_p9 = pnand %p7148_p8, %p7142_p5 }
  0x19   :  { %7152 = shalt.err (!%p7149_p9)
}
  0x1a   :  { %74 = dma.hbm_to_vmem [thread:$0]  %s8496_s8, 16, %s72_s29, [#allocation10]  }
  0x1b   :  { %s7161_s18 = scalar_lea.vmem %s34_s13, 16  ;;  %s7165_s4 = scalar_lea.vmem %s34_s13, 32 }
  0x1c   :  { %p7162_p10 = scmp.ne.s32.totalorder %s34_s13, %s7161_s18  ;;  %p7166_p11 = scmp.lt.s32.totalorder %s34_s13, %s34_s13 }
  0x1d   :  { %p7167_p12 = scmp.lt.s32.totalorder %s7165_s4, %s7161_s18 }
  0x1f   :  { %p7168_p13 = por %p7167_p12, %p7166_p11 }
  0x21   :  { %p7169_p0 = pnand %p7168_p13, %p7162_p10 }
  0x23   :  { %7172 = shalt.err (!%p7169_p0)
}
  0x24   :  { %36 = dma.hbm_to_vmem [thread:$0]  %s8491_s3, 16, %s34_s13, [#allocation5]  }
  0x25   :  { %s7246_s21 = smov [#allocation8]  }
  0x26   :  { %s58_s22 = sshll.u32 %s7246_s21, 4  ;;  %s59_s22 = int_to_ptr.vmem [resolvable:$true] %s58_s22 }
  0x27   :  { %s7181_s23 = scalar_lea.vmem %s59_s22, 512  ;;  %p7186_p2 = scmp.lt.s32.totalorder %s59_s22, %s59_s22 }
  0x28   :  { %p7182_p1 = scmp.ne.s32.totalorder %s59_s22, %s7181_s23  ;;  %p7187_p3 = scmp.lt.s32.totalorder %s7181_s23, %s7181_s23 }
  0x2a   :  { %p7188_p4 = por %p7187_p3, %p7186_p2 }
  0x2c   :  { %p7189_p5 = pnand %p7188_p4, %p7182_p1 }
  0x2e   :  { %7192 = shalt.err (!%p7189_p5)
}
  0x2f   :  { %s7247_s8 = smov 128   ;;  %s7248_s25 = smov 8  }
  0x30   :  { %64 = dma.hbm_to_vmem [thread:$0]  %s8495_s7, 512, %s59_s22, [#allocation7], %s7247_s8, %s7247_s8, %s7248_s25  }
  0x31   :  { %s7249_s28 = smov [#allocation11]   ;;  %s7250_s30 = smov [#allocation12]  }
  0x32   :  { %s80_s29 = sshll.u32 %s7249_s28, 4  ;;  %s92_s3 = sshll.u32 %s7250_s30, 4  ;;  %s81_s29 = int_to_ptr.vmem [resolvable:$true] %s80_s29  ;;  %s93_s3 = int_to_ptr.vmem [resolvable:$true] %s92_s3 }
  0x33   :  { %s7201_s13 = scalar_lea.vmem %s81_s29, 512  ;;  %p7206_p7 = scmp.lt.s32.totalorder %s81_s29, %s81_s29 }
  0x34   :  { %p7202_p6 = scmp.ne.s32.totalorder %s81_s29, %s7201_s13  ;;  %p7207_p8 = scmp.lt.s32.totalorder %s7201_s13, %s7201_s13 }
  0x36   :  { %p7208_p9 = por %p7207_p8, %p7206_p7 }
  0x38   :  { %p7209_p10 = pnand %p7208_p9, %p7202_p6 }
  0x3a   :  { %7212 = shalt.err (!%p7209_p10)
}
  0x3b   :  { %86 = dma.hbm_to_vmem [thread:$0]  %s8497_s9, 512, %s81_s29, [#allocation10], %s7247_s8, %s7247_s8, %s7248_s25  }
  0x3c   :  { %s7221_s16 = scalar_lea.vmem %s93_s3, 512  ;;  %p7226_p12 = scmp.lt.s32.totalorder %s93_s3, %s93_s3 }
  0x3d   :  { %p7222_p11 = scmp.ne.s32.totalorder %s93_s3, %s7221_s16  ;;  %p7227_p13 = scmp.lt.s32.totalorder %s7221_s16, %s7221_s16 }
  0x3f   :  { %p7228_p0 = por %p7227_p13, %p7226_p12 }
  0x41   :  { %p7229_p1 = pnand %p7228_p0, %p7222_p11 }
  0x43   :  { %7232 = shalt.err (!%p7229_p1)
}
  0x44   :  { %98 = dma.hbm_to_vmem [thread:$0]  %s8498_s10, 512, %s93_s3, [#allocation13], %s7247_s8, %s7247_s8, %s7248_s25  }
  0x45   :  { %7233 = dma.done.wait [#allocation5], 16  }
  0x46   :  { %7234 = vsyncadd [#allocation5], 4294967280 }
  0x47   :  { %7235 = dma.done.wait [#allocation7], 544  }
  0x48   :  { %7236 = vsyncadd [#allocation7], 4294966752 }
  0x49   :  { %7237 = dma.done.wait [#allocation10], 528  }
  0x4a   :  { %7238 = vsyncadd [#allocation10], 4294966768 }
  0x4b   :  { %7239 = dma.done.wait [#allocation13], 512  }
  0x4c   :  { %7240 = vsyncadd [#allocation13], 4294966784  ;;  %v7251_v0 = vmov 0.0   ;;  %vm7252_vm0 = vmmov 0   ;;  %vm129_vm1 = vcmask 64512   ;;  %v121_v1 = vld [vmem:[%s8489_s1] sm:$0xff] }
  0x4d   :  { %6340 = vmatprep.subr.mxu1 %v7251_v0  ;;  %6344 = vmatprep.mubr.msk.f32.mxu1 %vm7252_vm0, %v7251_v0  ;;  %v7354_v2 = vld [vmem:[%s8488_s0] sm:$0xff]  ;;  %v7359_v3 = vld [vmem:[%s8490_s2 + $0x8] sm:$0xff]  ;;  %s7254_s8 = smov 96   ;;  %vm316_vm2 = vcmask 123904   ;;  %vm213_vm3 = vcmask 130048   ;;  %s7256_s29 = smov 32  }
  0x4e   :  { %6335 = vmatprep.subr.mxu0 %v121_v1  ;;  %6337 = vmatprep.mubr.msk.f32.mxu0 %vm129_vm1, %v7354_v2  ;;  %v7366_v4 = vld [vmem:[%s8488_s0 + $0x8] sm:$0xff]  ;;  %v7371_v5 = vld [vmem:[%s8490_s2] sm:$0xff]  ;;  %s7253_s0 = smov 80   ;;  %vm425_vm4 = vcmask 125954   ;;  %vm649_vm5 = vcmask 130054   ;;  %vm1310_vm6 = vcmask 259204  }
  0x4f   :  { %6336 = vmatpush3.msra.mxu0 %v121_v1  ;;  %6341 = vmatpush3.msra.mxu1 %v7359_v3  ;;  %v6069_v6 = vld [vmem:[#allocation4] ss:$0 sm:$0xff]  ;;  %vm1537_vm7 = vcmask 255104   ;;  %vm537_vm8 = vcmask 128004   ;;  %vm1196_vm9 = vcmask 261254   ;;  %vm1424_vm10 = vcmask 257154  }
  0x50   :  { %6338 = vmatmul.mubr.msk.f32.vlgmr.msra.gmra.mxu0 %vm129_vm1, %v7366_v4  ;;  %6342 = vmatprep.subr.mxu1 %v7251_v0  ;;  %s7259_s15 = smov 112   ;;  %vm4087_vm11 = vcmask 261120  }
  0x51   :  { %6343 = vmatpush3.msra.mxu1 %v7371_v5  ;;  %6347 = vmatprep.subr.mxu0 %v7251_v0 }
  0x52   :  { %6345 = vmatmul.mubr.f32.vlgmr.msra.gmra.mxu1 %v7251_v0  ;;  %6348 = vmatpush3.msra.mxu0 %v7359_v3 }
  0x53   :  { %6349 = vmatprep.subr.mxu0 %v7251_v0  ;;  %6351 = vmatprep.mubr.msk.f32.mxu0 %vm7252_vm0, %v7251_v0 }
  0x54   :  { %6350 = vmatpush3.msra.mxu0 %v7371_v5  ;;  %6354 = vmatprep.subr.mxu1 %v7251_v0 }
  0x55   :  { %6355 = vmatpush3.msra.mxu1 %v7359_v3  ;;  %6358 = vmatprep.mubr.msk.f32.mxu1 %vm7252_vm0, %v7251_v0 }
  0x56   :  { %6356 = vmatprep.subr.mxu1 %v7251_v0  ;;  %6361 = vmatprep.subr.mxu0 %v7251_v0 }
  0x57   :  { %6357 = vmatpush3.msra.mxu1 %v7371_v5 }
  0x58   :  { %6368 = vmatprep.subr.mxu1 %v7251_v0 }
 0x110   :  { %v6339_v7 = vpop.f32.mrf.mxu0 }
 0x111   :  { %v7393_v8 = vadd.f32 %v6339_v7, %v6069_v6 }
 0x112   :  { %v202_v9 = vpop.f32.mrf.mxu0  ;;  %v283_v10 = vpop.f32.mrf.mxu1 }
 0x113   :  { %v7395_v11 = vadd.f32 %v6069_v6, %v202_v9 }
 0x114   :  { %v6346_v12 = vpop.f32.mrf.mxu1 }
 0x115   :  { %v287_v13 = vadd.f32 %v283_v10, %v7395_v11 }
 0x117   :  { %6713 = vtanh.f32 %v287_v13  ;;  %v6072_v15 = vmul.f32 -1.442695, %v287_v13 }
 0x119   :  { %6715 = vpow2.f32 %v6072_v15 }
 0x124   :  { %v6714_v14 = vpop.eup %6713 }
 0x125   :  { %297 = vrot.lane.b32.xlu0 %v6714_v14, %s7253_s0 }
 0x126   :  { %v6716_v16 = vpop.eup %6715 }
 0x127   :  { %v291_v17 = vadd.f32 1.0, %v6716_v16 }
 0x129   :  { %6717 = vrcp.f32 %v291_v17 }
 0x136   :  { %v6718_v18 = vpop.eup %6717 }
 0x137   :  { %v295_v21 = vmul.f32 0.0, %v6718_v18 }
 0x197   :  { %v298_v19 = vpop.permute.xlu0 %297 }
 0x198   :  { %v300_v20 = vmul.f32 %v6718_v18, %v298_v19 }
 0x19a   :  { %302 = vrot.lane.b32.xlu0 %v300_v20, %s7242_s24 }
 0x20c   :  { %v303_v22 = vpop.permute.xlu0 %302 }
 0x20d   :  { %v305_v23 = vadd.f32 %v303_v22, %v295_v21 }
 0x20f   :  { %6719 = vtanh.f32 %v305_v23  ;;  %v402_v39 = vrot.slane %v305_v23, 6 }
 0x21c   :  { %v6720_v24 = vpop.eup %6719 }
 0x21d   :  { %308 = vrot.lane.b32.xlu1 %v6720_v24, %s7242_s24 }
 0x28f   :  { %v309_v25 = vpop.permute.xlu1 %308 }
 0x290   :  { %v311_v26 = vmul.f32 %v6718_v18, %v309_v25 }
 0x292   :  { %313 = vrot.lane.b32.xlu1 %v311_v26, %s7254_s8 }
 0x304   :  { %v314_v27 = vpop.permute.xlu1 %313 }
 0x305   :  { %317 = vst.msk [vmem:[#allocation2] sm:$0x3] %vm316_vm2, %v314_v27  ;;  %6352 = vmatmul.mubr.msk.f32.vlgmr.msra.gmra.mxu0 %vm213_vm3, %v314_v27 }
 0x306   :  { %6362 = vmatpush3.msra.mxu0 %v7359_v3  ;;  %6365 = vmatprep.mubr.msk.f32.mxu0 %vm7252_vm0, %v7251_v0 }
 0x307   :  { %6363 = vmatprep.subr.mxu0 %v7251_v0 }
 0x308   :  { %6364 = vmatpush3.msra.mxu0 %v7371_v5 }
 0x309   :  { %6375 = vmatprep.subr.mxu0 %v7251_v0 }
 0x3c5   :  { %v386_v28 = vpop.f32.mrf.mxu0 }
 0x3c6   :  { %v391_v29 = vrot.slane %v386_v28, 6 }
 0x3c7   :  { %v6353_v30 = vpop.f32.mrf.mxu0 }
 0x3c8   :  { %v393_v31 = vadd.f32 %v391_v29, %v7395_v11 }
 0x3ca   :  { %6721 = vtanh.f32 %v393_v31  ;;  %v6074_v33 = vmul.f32 -1.442695, %v393_v31 }
 0x3cc   :  { %6723 = vpow2.f32 %v6074_v33 }
 0x3d7   :  { %v6722_v32 = vpop.eup %6721 }
 0x3d8   :  { %406 = vrot.lane.b32.xlu0 %v6722_v32, %s7253_s0 }
 0x3d9   :  { %v6724_v34 = vpop.eup %6723 }
 0x3da   :  { %v397_v35 = vadd.f32 1.0, %v6724_v34 }
 0x3dc   :  { %6725 = vrcp.f32 %v397_v35 }
 0x3e9   :  { %v6726_v36 = vpop.eup %6725 }
 0x3ea   :  { %v404_v40 = vmul.f32 %v6726_v36, %v402_v39 }
 0x44a   :  { %v407_v37 = vpop.permute.xlu0 %406 }
 0x44b   :  { %v409_v38 = vmul.f32 %v6726_v36, %v407_v37 }
 0x44d   :  { %411 = vrot.lane.b32.xlu1 %v409_v38, %s7242_s24 }
 0x4bf   :  { %v412_v41 = vpop.permute.xlu1 %411 }
 0x4c0   :  { %v414_v42 = vadd.f32 %v412_v41, %v404_v40 }
 0x4c2   :  { %6727 = vtanh.f32 %v414_v42  ;;  %v514_v59 = vrot.slane %v414_v42, 6 }
 0x4cf   :  { %v6728_v43 = vpop.eup %6727 }
 0x4d0   :  { %417 = vrot.lane.b32.xlu0 %v6728_v43, %s7242_s24 }
 0x542   :  { %v418_v44 = vpop.permute.xlu0 %417 }
 0x543   :  { %v7414_v45 = vmul.f32 %v6726_v36, %v418_v44 }
 0x545   :  { %v427_v46 = vrot.slane %v7414_v45, 2 }
 0x547   :  { %428 = vrot.lane.b32.xlu1 %v427_v46, %s7254_s8 }
 0x5b9   :  { %v429_v47 = vpop.permute.xlu1 %428 }
 0x5ba   :  { %6359 = vmatmul.mubr.msk.f32.vlgmr.msra.gmra.mxu1 %vm213_vm3, %v429_v47 }
 0x5bb   :  { %6369 = vmatpush3.msra.mxu1 %v7359_v3  ;;  %6372 = vmatprep.mubr.msk.f32.mxu1 %vm7252_vm0, %v7251_v0 }
 0x5bc   :  { %6370 = vmatprep.subr.mxu1 %v7251_v0 }
 0x5bd   :  { %6371 = vmatpush3.msra.mxu1 %v7371_v5 }
 0x5be   :  { %6382 = vmatprep.subr.mxu1 %v7251_v0 }
 0x67a   :  { %v498_v48 = vpop.f32.mrf.mxu1 }
 0x67b   :  { %v503_v49 = vrot.slane %v498_v48, 4 }
 0x67c   :  { %v6360_v50 = vpop.f32.mrf.mxu1 }
 0x67d   :  { %v505_v51 = vadd.f32 %v503_v49, %v7395_v11 }
 0x67f   :  { %6729 = vtanh.f32 %v505_v51  ;;  %v6076_v53 = vmul.f32 -1.442695, %v505_v51 }
 0x681   :  { %6731 = vpow2.f32 %v6076_v53 }
 0x68c   :  { %v6730_v52 = vpop.eup %6729 }
 0x68d   :  { %518 = vrot.lane.b32.xlu0 %v6730_v52, %s7253_s0 }
 0x68e   :  { %v6732_v54 = vpop.eup %6731 }
 0x68f   :  { %v509_v55 = vadd.f32 1.0, %v6732_v54 }
 0x691   :  { %6733 = vrcp.f32 %v509_v55 }
 0x69e   :  { %v6734_v56 = vpop.eup %6733 }
 0x69f   :  { %v516_v60 = vmul.f32 %v6734_v56, %v514_v59 }
 0x6ff   :  { %v519_v57 = vpop.permute.xlu0 %518 }
 0x700   :  { %v521_v58 = vmul.f32 %v6734_v56, %v519_v57 }
 0x702   :  { %523 = vrot.lane.b32.xlu1 %v521_v58, %s7242_s24 }
 0x774   :  { %v524_v61 = vpop.permute.xlu1 %523 }
 0x775   :  { %v526_v62 = vadd.f32 %v524_v61, %v516_v60 }
 0x777   :  { %6735 = vtanh.f32 %v526_v62  ;;  %v626_v22 = vrot.slane %v526_v62, 6 }
 0x784   :  { %v6736_v63 = vpop.eup %6735 }
 0x785   :  { %529 = vrot.lane.b32.xlu0 %v6736_v63, %s7242_s24 }
 0x7f7   :  { %v530_v1 = vpop.permute.xlu0 %529 }
 0x7f8   :  { %v7429_v6 = vmul.f32 %v6734_v56, %v530_v1 }
 0x7fa   :  { %v539_v7 = vrot.slane %v7429_v6, 4 }
 0x7fc   :  { %540 = vrot.lane.b32.xlu1 %v539_v7, %s7254_s8 }
 0x86e   :  { %v541_v9 = vpop.permute.xlu1 %540 }
 0x86f   :  { %6366 = vmatmul.mubr.msk.f32.vlgmr.msra.gmra.mxu0 %vm213_vm3, %v541_v9 }
 0x870   :  { %6376 = vmatpush3.msra.mxu0 %v7359_v3  ;;  %6379 = vmatprep.mubr.msk.f32.mxu0 %vm7252_vm0, %v7251_v0 }
 0x871   :  { %6377 = vmatprep.subr.mxu0 %v7251_v0 }
 0x872   :  { %6378 = vmatpush3.msra.mxu0 %v7371_v5 }
 0x873   :  { %6389 = vmatprep.subr.mxu0 %v7251_v0 }
 0x92f   :  { %v610_v10 = vpop.f32.mrf.mxu0 }
 0x930   :  { %v615_v12 = vrot.slane %v610_v10, 2  ;;  %v7479_v10 = vld [vmem:[%s8490_s2 + $0x18] sm:$0xff] }
 0x931   :  { %v6367_v13 = vpop.f32.mrf.mxu0 }
 0x932   :  { %v617_v14 = vadd.f32 %v615_v12, %v7395_v11  ;;  %v7485_v13 = vld [vmem:[%s8490_s2 + $0x10] sm:$0xff]  ;;  %s7255_s2 = smov 64  }
 0x934   :  { %6737 = vtanh.f32 %v617_v14  ;;  %v6078_v16 = vmul.f32 -1.442695, %v617_v14 }
 0x936   :  { %6739 = vpow2.f32 %v6078_v16 }
 0x941   :  { %v6738_v15 = vpop.eup %6737 }
 0x942   :  { %630 = vrot.lane.b32.xlu0 %v6738_v15, %s7253_s0 }
 0x943   :  { %v6740_v17 = vpop.eup %6739 }
 0x944   :  { %v621_v18 = vadd.f32 1.0, %v6740_v17 }
 0x946   :  { %6741 = vrcp.f32 %v621_v18 }
 0x953   :  { %v6742_v19 = vpop.eup %6741 }
 0x954   :  { %v628_v23 = vmul.f32 %v6742_v19, %v626_v22 }
 0x9b4   :  { %v631_v20 = vpop.permute.xlu0 %630 }
 0x9b5   :  { %v633_v21 = vmul.f32 %v6742_v19, %v631_v20 }
 0x9b7   :  { %635 = vrot.lane.b32.xlu1 %v633_v21, %s7242_s24 }
 0xa29   :  { %v636_v24 = vpop.permute.xlu1 %635 }
 0xa2a   :  { %v638_v25 = vadd.f32 %v636_v24, %v628_v23 }
 0xa2c   :  { %6743 = vtanh.f32 %v638_v25  ;;  %v735_v41 = vrot.slane %v638_v25, 6 }
 0xa39   :  { %v6744_v26 = vpop.eup %6743 }
 0xa3a   :  { %641 = vrot.lane.b32.xlu0 %v6744_v26, %s7242_s24 }
 0xaac   :  { %v642_v27 = vpop.permute.xlu0 %641 }
 0xaad   :  { %v7444_v28 = vmul.f32 %v6742_v19, %v642_v27 }
 0xaaf   :  { %v651_v29 = vrot.slane %v7444_v28, 6 }
 0xab1   :  { %652 = vrot.lane.b32.xlu1 %v651_v29, %s7254_s8 }
 0xb23   :  { %v653_v30 = vpop.permute.xlu1 %652 }
 0xb24   :  { %6373 = vmatmul.mubr.msk.f32.vlgmr.msra.gmra.mxu1 %vm213_vm3, %v653_v30 }
 0xb25   :  { %6383 = vmatpush3.msra.mxu1 %v7359_v3  ;;  %6386 = vmatprep.mubr.msk.f32.mxu1 %vm7252_vm0, %v7251_v0 }
 0xb26   :  { %6384 = vmatprep.subr.mxu1 %v7251_v0 }
 0xb27   :  { %6385 = vmatpush3.msra.mxu1 %v7371_v5 }
 0xb28   :  { %6396 = vmatprep.subr.mxu1 %v7251_v0 }
 0xbe4   :  { %v722_v31 = vpop.f32.mrf.mxu1 }
 0xbe5   :  { %v726_v32 = vadd.f32 %v722_v31, %v7393_v8 }
 0xbe6   :  { %v6374_v33 = vpop.f32.mrf.mxu1 }
 0xbe7   :  { %6745 = vtanh.f32 %v726_v32  ;;  %v6080_v35 = vmul.f32 -1.442695, %v726_v32 }
 0xbe9   :  { %6747 = vpow2.f32 %v6080_v35 }
 0xbf4   :  { %v6746_v34 = vpop.eup %6745 }
 0xbf5   :  { %739 = vrot.lane.b32.xlu0 %v6746_v34, %s7253_s0 }
 0xbf6   :  { %v6748_v36 = vpop.eup %6747 }
 0xbf7   :  { %v730_v37 = vadd.f32 1.0, %v6748_v36 }
 0xbf9   :  { %6749 = vrcp.f32 %v730_v37 }
 0xc06   :  { %v6750_v38 = vpop.eup %6749 }
 0xc07   :  { %v737_v42 = vmul.f32 %v6750_v38, %v735_v41 }
 0xc67   :  { %v740_v39 = vpop.permute.xlu0 %739 }
 0xc68   :  { %v742_v40 = vmul.f32 %v6750_v38, %v740_v39 }
 0xc6a   :  { %744 = vrot.lane.b32.xlu1 %v742_v40, %s7242_s24 }
 0xcdc   :  { %v745_v43 = vpop.permute.xlu1 %744 }
 0xcdd   :  { %v747_v44 = vadd.f32 %v745_v43, %v737_v42 }
 0xcdf   :  { %6751 = vtanh.f32 %v747_v44 }
 0xcec   :  { %v6752_v46 = vpop.eup %6751 }
 0xced   :  { %750 = vrot.lane.b32.xlu0 %v6752_v46, %s7242_s24 }
 0xd5f   :  { %v751_v47 = vpop.permute.xlu0 %750 }
 0xd60   :  { %v753_v48 = vmul.f32 %v6750_v38, %v751_v47 }
 0xd62   :  { %755 = vrot.lane.b32.xlu1 %v753_v48, %s7254_s8 }
 0xdd4   :  { %v756_v49 = vpop.permute.xlu1 %755 }
 0xdd5   :  { %758 = vst.msk [vmem:[#allocation2 + $0x8] sm:$0x3] %vm316_vm2, %v756_v49  ;;  %6380 = vmatmul.mubr.msk.f32.vlgmr.msra.gmra.mxu0 %vm213_vm3, %v756_v49 }
 0xdd6   :  { %6390 = vmatpush3.msra.mxu0 %v7359_v3  ;;  %6393 = vmatprep.mubr.msk.f32.mxu0 %vm7252_vm0, %v7251_v0 }
 0xdd7   :  { %6391 = vmatprep.subr.mxu0 %v7251_v0 }
 0xdd8   :  { %6392 = vmatpush3.msra.mxu0 %v7371_v5  ;;  %v843_v5 = vrot.slane %v747_v44, 6 }
 0xdd9   :  { %6403 = vmatprep.subr.mxu0 %v7251_v0 }
 0xe95   :  { %v827_v50 = vpop.f32.mrf.mxu0 }
 0xe96   :  { %v832_v51 = vrot.slane %v827_v50, 6 }
 0xe97   :  { %v6381_v52 = vpop.f32.mrf.mxu0 }
 0xe98   :  { %v834_v53 = vadd.f32 %v832_v51, %v7393_v8 }
 0xe9a   :  { %6753 = vtanh.f32 %v834_v53  ;;  %v6082_v55 = vmul.f32 -1.442695, %v834_v53 }
 0xe9c   :  { %6755 = vpow2.f32 %v6082_v55 }
 0xea7   :  { %v6754_v54 = vpop.eup %6753 }
 0xea8   :  { %847 = vrot.lane.b32.xlu0 %v6754_v54, %s7253_s0 }
 0xea9   :  { %v6756_v3 = vpop.eup %6755 }
 0xeaa   :  { %v838_v56 = vadd.f32 1.0, %v6756_v3 }
 0xeac   :  { %6757 = vrcp.f32 %v838_v56 }
 0xeb9   :  { %v6758_v57 = vpop.eup %6757 }
 0xeba   :  { %v845_v60 = vmul.f32 %v6758_v57, %v843_v5 }
 0xf1a   :  { %v848_v58 = vpop.permute.xlu0 %847 }
 0xf1b   :  { %v850_v59 = vmul.f32 %v6758_v57, %v848_v58 }
 0xf1d   :  { %852 = vrot.lane.b32.xlu1 %v850_v59, %s7242_s24 }
 0xf8f   :  { %v853_v61 = vpop.permute.xlu1 %852 }
 0xf90   :  { %v855_v62 = vadd.f32 %v853_v61, %v845_v60 }
 0xf92   :  { %6759 = vtanh.f32 %v855_v62  ;;  %v954_v35 = vrot.slane %v855_v62, 6 }
 0xf9f   :  { %v6760_v63 = vpop.eup %6759 }
 0xfa0   :  { %858 = vrot.lane.b32.xlu0 %v6760_v63, %s7242_s24 }
0x1012   :  { %v859_v1 = vpop.permute.xlu0 %858 }
0x1013   :  { %v7472_v7 = vmul.f32 %v6758_v57, %v859_v1 }
0x1015   :  { %v867_v9 = vrot.slane %v7472_v7, 2 }
0x1017   :  { %868 = vrot.lane.b32.xlu1 %v867_v9, %s7254_s8 }
0x1089   :  { %v869_v12 = vpop.permute.xlu1 %868 }
0x108a   :  { %6387 = vmatmul.mubr.msk.f32.vlgmr.msra.gmra.mxu1 %vm213_vm3, %v869_v12 }
0x108b   :  { %6397 = vmatpush3.msra.mxu1 %v7479_v10  ;;  %6400 = vmatprep.mubr.msk.f32.mxu1 %vm7252_vm0, %v7251_v0 }
0x108c   :  { %6398 = vmatprep.subr.mxu1 %v7251_v0 }
0x108d   :  { %6399 = vmatpush3.msra.mxu1 %v7485_v13 }
0x108e   :  { %6401 = vmatmul.mubr.f32.vlgmr.msra.gmra.mxu1 %v7251_v0  ;;  %6410 = vmatprep.subr.mxu1 %v7251_v0 }
0x108f   :  { %6411 = vmatpush3.msra.mxu1 %v7479_v10  ;;  %6414 = vmatprep.mubr.msk.f32.mxu1 %vm7252_vm0, %v7251_v0 }
0x1090   :  { %6412 = vmatprep.subr.mxu1 %v7251_v0 }
0x1091   :  { %6413 = vmatpush3.msra.mxu1 %v7485_v13 }
0x1092   :  { %6424 = vmatprep.subr.mxu1 %v7251_v0 }
0x114a   :  { %v938_v14 = vpop.f32.mrf.mxu1 }
0x114b   :  { %v943_v15 = vrot.slane %v938_v14, 4 }
0x114c   :  { %v6388_v16 = vpop.f32.mrf.mxu1 }
0x114d   :  { %v945_v17 = vadd.f32 %v943_v15, %v7393_v8 }
0x114e   :  { %v1158_v18 = vpop.f32.mrf.mxu1 }
0x114f   :  { %6761 = vtanh.f32 %v945_v17  ;;  %v1163_v19 = vrot.slane %v1158_v18, 2  ;;  %v6084_v22 = vmul.f32 -1.442695, %v945_v17 }
0x1150   :  { %v6402_v20 = vpop.f32.mrf.mxu1 }
0x1151   :  { %1164 = vrot.lane.b32.xlu0 %v1163_v19, %s7255_s2  ;;  %6763 = vpow2.f32 %v6084_v22 }
0x115c   :  { %v6762_v21 = vpop.eup %6761 }
0x115d   :  { %958 = vrot.lane.b32.xlu1 %v6762_v21, %s7253_s0 }
0x115e   :  { %v6764_v23 = vpop.eup %6763 }
0x115f   :  { %v949_v24 = vadd.f32 1.0, %v6764_v23 }
0x1161   :  { %6765 = vrcp.f32 %v949_v24 }
0x116e   :  { %v6766_v27 = vpop.eup %6765 }
0x116f   :  { %v956_v36 = vmul.f32 %v6766_v27, %v954_v35 }
0x11c3   :  { %v1165_v25 = vpop.permute.xlu0 %1164 }
0x11c4   :  { %v1167_v26 = vadd.f32 %v1165_v25, %v7393_v8 }
0x11c6   :  { %6767 = vtanh.f32 %v1167_v26  ;;  %v6089_v32 = vmul.f32 -1.442695, %v1167_v26 }
0x11c8   :  { %6769 = vpow2.f32 %v6089_v32 }
0x11cf   :  { %v959_v29 = vpop.permute.xlu1 %958 }
0x11d0   :  { %v961_v30 = vmul.f32 %v6766_v27, %v959_v29 }
0x11d2   :  { %963 = vrot.lane.b32.xlu1 %v961_v30, %s7242_s24 }
0x11d3   :  { %v6768_v31 = vpop.eup %6767 }
0x11d4   :  { %1177 = vrot.lane.b32.xlu0 %v6768_v31, %s7253_s0 }
0x11d5   :  { %v6770_v33 = vpop.eup %6769 }
0x11d6   :  { %v1171_v34 = vadd.f32 1.0, %v6770_v33 }
0x11d8   :  { %6771 = vrcp.f32 %v1171_v34 }
0x11e5   :  { %v6772_v39 = vpop.eup %6771 }
0x11e6   :  { %v1175_v43 = vmul.f32 0.0, %v6772_v39 }
0x1244   :  { %v964_v37 = vpop.permute.xlu1 %963 }
0x1245   :  { %v7506_v38 = vadd.f32 %v964_v37, %v956_v36 }
0x1246   :  { %v1178_v40 = vpop.permute.xlu0 %1177 }
0x1247   :  { %6773 = vtanh.f32 %v7506_v38  ;;  %v1180_v41 = vmul.f32 %v6772_v39, %v1178_v40 }
0x1249   :  { %1182 = vrot.lane.b32.xlu0 %v1180_v41, %s7242_s24 }
0x1254   :  { %v6774_v42 = vpop.eup %6773 }
0x1255   :  { %969 = vrot.lane.b32.xlu1 %v6774_v42, %s7242_s24 }
0x12bb   :  { %v1183_v44 = vpop.permute.xlu0 %1182 }
0x12bc   :  { %v1185_v46 = vadd.f32 %v1183_v44, %v1175_v43 }
0x12be   :  { %6775 = vtanh.f32 %v1185_v46  ;;  %v1287_v15 = vrot.slane %v1185_v46, 2 }
0x12c7   :  { %v970_v47 = vpop.permute.xlu1 %969 }
0x12c8   :  { %v7511_v48 = vmul.f32 %v6766_v27, %v970_v47 }
0x12ca   :  { %v978_v49 = vrot.slane %v7511_v48, 4 }
0x12cb   :  { %v6776_v50 = vpop.eup %6775 }
0x12cc   :  { %979 = vrot.lane.b32.xlu1 %v978_v49, %s7254_s8  ;;  %1188 = vrot.lane.b32.xlu0 %v6776_v50, %s7242_s24 }
0x133e   :  { %v980_v51 = vpop.permute.xlu1 %979  ;;  %v1189_v52 = vpop.permute.xlu0 %1188 }
0x133f   :  { %v7516_v53 = vmul.f32 %v6772_v39, %v1189_v52  ;;  %6394 = vmatmul.mubr.msk.f32.vlgmr.msra.gmra.mxu0 %vm213_vm3, %v980_v51 }
0x1340   :  { %6404 = vmatpush3.msra.mxu0 %v7479_v10  ;;  %6407 = vmatprep.mubr.msk.f32.mxu0 %vm7252_vm0, %v7251_v0 }
0x1341   :  { %v1198_v54 = vrot.slane %v7516_v53, 6  ;;  %6405 = vmatprep.subr.mxu0 %v7251_v0 }
0x1342   :  { %6406 = vmatpush3.msra.mxu0 %v7485_v13 }
0x1343   :  { %1199 = vrot.lane.b32.xlu0 %v1198_v54, %s7256_s29  ;;  %6417 = vmatprep.subr.mxu0 %v7251_v0 }
0x13b5   :  { %v1200_v55 = vpop.permute.xlu0 %1199 }
0x13b6   :  { %6408 = vmatmul.mubr.msk.f32.vlgmr.msra.gmra.mxu0 %vm213_vm3, %v1200_v55 }
0x13b7   :  { %6418 = vmatpush3.msra.mxu0 %v7479_v10  ;;  %6421 = vmatprep.mubr.msk.f32.mxu0 %vm7252_vm0, %v7251_v0 }
0x13b8   :  { %6419 = vmatprep.subr.mxu0 %v7251_v0 }
0x13b9   :  { %6420 = vmatpush3.msra.mxu0 %v7485_v13 }
0x13ba   :  { %6431 = vmatprep.subr.mxu0 %v7251_v0 }
0x13ff   :  { %v7534_v3 = vpop.f32.mrf.mxu0 }
0x1401   :  { %v6395_v56 = vpop.f32.mrf.mxu0 }
0x1476   :  { %v1269_v57 = vpop.f32.mrf.mxu0 }
0x1477   :  { %v1274_v58 = vrot.slane %v1269_v57, 4 }
0x1478   :  { %v6409_v59 = vpop.f32.mrf.mxu0 }
0x1479   :  { %1275 = vrot.lane.b32.xlu1 %v1274_v58, %s7255_s2 }
0x14eb   :  { %v1276_v5 = vpop.permute.xlu1 %1275 }
0x14ec   :  { %v1278_v60 = vadd.f32 %v1276_v5, %v7393_v8 }
0x14ee   :  { %6777 = vtanh.f32 %v1278_v60  ;;  %v6091_v62 = vmul.f32 -1.442695, %v1278_v60 }
0x14f0   :  { %6779 = vpow2.f32 %v6091_v62 }
0x14fb   :  { %v6778_v61 = vpop.eup %6777 }
0x14fc   :  { %1291 = vrot.lane.b32.xlu0 %v6778_v61, %s7253_s0 }
0x14fd   :  { %v6780_v63 = vpop.eup %6779 }
0x14fe   :  { %v1282_v1 = vadd.f32 1.0, %v6780_v63 }
0x1500   :  { %6781 = vrcp.f32 %v1282_v1 }
0x150d   :  { %v6782_v9 = vpop.eup %6781 }
0x150e   :  { %v1289_v16 = vmul.f32 %v6782_v9, %v1287_v15 }
0x156e   :  { %v1292_v12 = vpop.permute.xlu0 %1291 }
0x156f   :  { %v1294_v14 = vmul.f32 %v6782_v9, %v1292_v12 }
0x1571   :  { %1296 = vrot.lane.b32.xlu1 %v1294_v14, %s7242_s24 }
0x15e3   :  { %v1297_v17 = vpop.permute.xlu1 %1296 }
0x15e4   :  { %v1299_v18 = vadd.f32 %v1297_v17, %v1289_v16 }
0x15e6   :  { %6783 = vtanh.f32 %v1299_v18  ;;  %v1401_v37 = vrot.slane %v1299_v18, 2 }
0x15f3   :  { %v6784_v19 = vpop.eup %6783 }
0x15f4   :  { %1302 = vrot.lane.b32.xlu0 %v6784_v19, %s7242_s24 }
0x1666   :  { %v1303_v20 = vpop.permute.xlu0 %1302 }
0x1667   :  { %v7541_v21 = vmul.f32 %v6782_v9, %v1303_v20 }
0x1669   :  { %v1312_v22 = vrot.slane %v7541_v21, 4 }
0x166b   :  { %1313 = vrot.lane.b32.xlu1 %v1312_v22, %s7256_s29 }
0x16dd   :  { %v1314_v23 = vpop.permute.xlu1 %1313 }
0x16de   :  { %6415 = vmatmul.mubr.msk.f32.vlgmr.msra.gmra.mxu1 %vm213_vm3, %v1314_v23 }
0x16df   :  { %6425 = vmatpush3.msra.mxu1 %v7479_v10  ;;  %6428 = vmatprep.mubr.msk.f32.mxu1 %vm7252_vm0, %v7251_v0 }
0x16e0   :  { %6426 = vmatprep.subr.mxu1 %v7251_v0 }
0x16e1   :  { %6427 = vmatpush3.msra.mxu1 %v7485_v13 }
0x16e2   :  { %6438 = vmatprep.subr.mxu1 %v7251_v0 }
0x179e   :  { %v1383_v24 = vpop.f32.mrf.mxu1 }
0x179f   :  { %v1388_v25 = vrot.slane %v1383_v24, 6 }
0x17a0   :  { %v6416_v26 = vpop.f32.mrf.mxu1 }
0x17a1   :  { %1389 = vrot.lane.b32.xlu0 %v1388_v25, %s7255_s2 }
0x1813   :  { %v1390_v27 = vpop.permute.xlu0 %1389 }
0x1814   :  { %v1392_v29 = vadd.f32 %v1390_v27, %v7393_v8 }
0x1816   :  { %6785 = vtanh.f32 %v1392_v29  ;;  %v6093_v31 = vmul.f32 -1.442695, %v1392_v29 }
0x1818   :  { %6787 = vpow2.f32 %v6093_v31 }
0x1823   :  { %v6786_v30 = vpop.eup %6785 }
0x1824   :  { %1405 = vrot.lane.b32.xlu1 %v6786_v30, %s7253_s0 }
0x1825   :  { %v6788_v32 = vpop.eup %6787 }
0x1826   :  { %v1396_v33 = vadd.f32 1.0, %v6788_v32 }
0x1828   :  { %6789 = vrcp.f32 %v1396_v33 }
0x1835   :  { %v6790_v34 = vpop.eup %6789 }
0x1836   :  { %v1403_v39 = vmul.f32 %v6790_v34, %v1401_v37 }
0x1896   :  { %v1406_v35 = vpop.permute.xlu1 %1405 }
0x1897   :  { %v1408_v36 = vmul.f32 %v6790_v34, %v1406_v35 }
0x1899   :  { %1410 = vrot.lane.b32.xlu0 %v1408_v36, %s7242_s24 }
0x190b   :  { %v1411_v40 = vpop.permute.xlu0 %1410 }
0x190c   :  { %v1413_v41 = vadd.f32 %v1411_v40, %v1403_v39 }
0x190e   :  { %6791 = vtanh.f32 %v1413_v41  ;;  %v1514_v60 = vrot.slane %v1413_v41, 2 }
0x191b   :  { %v6792_v42 = vpop.eup %6791 }
0x191c   :  { %1416 = vrot.lane.b32.xlu1 %v6792_v42, %s7242_s24 }
0x198e   :  { %v1417_v43 = vpop.permute.xlu1 %1416 }
0x198f   :  { %v7557_v44 = vmul.f32 %v6790_v34, %v1417_v43 }
0x1991   :  { %v1426_v46 = vrot.slane %v7557_v44, 2 }
0x1993   :  { %1427 = vrot.lane.b32.xlu0 %v1426_v46, %s7256_s29 }
0x1a05   :  { %v1428_v47 = vpop.permute.xlu0 %1427 }
0x1a06   :  { %6422 = vmatmul.mubr.msk.f32.vlgmr.msra.gmra.mxu0 %vm213_vm3, %v1428_v47 }
0x1a07   :  { %6432 = vmatpush3.msra.mxu0 %v7479_v10  ;;  %6435 = vmatprep.mubr.msk.f32.mxu0 %vm7252_vm0, %v7251_v0 }
0x1a08   :  { %6433 = vmatprep.subr.mxu0 %v7251_v0 }
0x1a09   :  { %6434 = vmatpush3.msra.mxu0 %v7485_v13 }
0x1a0a   :  { %6445 = vmatprep.subr.mxu0 %v7251_v0 }
0x1ac6   :  { %v1497_v49 = vpop.f32.mrf.mxu0 }
0x1ac7   :  { %1502 = vrot.lane.b32.xlu1 %v1497_v49, %s7255_s2 }
0x1ac8   :  { %v6423_v50 = vpop.f32.mrf.mxu0 }
0x1b39   :  { %v1503_v51 = vpop.permute.xlu1 %1502 }
0x1b3a   :  { %v1505_v52 = vadd.f32 %v1503_v51, %v7393_v8 }
0x1b3c   :  { %6793 = vtanh.f32 %v1505_v52  ;;  %v6095_v55 = vmul.f32 -1.442695, %v1505_v52 }
0x1b3e   :  { %6795 = vpow2.f32 %v6095_v55 }
0x1b49   :  { %v6794_v54 = vpop.eup %6793 }
0x1b4a   :  { %1518 = vrot.lane.b32.xlu0 %v6794_v54, %s7253_s0 }
0x1b4b   :  { %v6796_v56 = vpop.eup %6795 }
0x1b4c   :  { %v1509_v57 = vadd.f32 1.0, %v6796_v56 }
0x1b4e   :  { %6797 = vrcp.f32 %v1509_v57 }
0x1b5b   :  { %v6798_v58 = vpop.eup %6797 }
0x1b5c   :  { %v1516_v61 = vmul.f32 %v6798_v58, %v1514_v60 }
0x1bbc   :  { %v1519_v59 = vpop.permute.xlu0 %1518 }
0x1bbd   :  { %v1521_v5 = vmul.f32 %v6798_v58, %v1519_v59 }
0x1bbf   :  { %1523 = vrot.lane.b32.xlu1 %v1521_v5, %s7242_s24 }
0x1c31   :  { %v1524_v62 = vpop.permute.xlu1 %1523 }
0x1c32   :  { %v1526_v63 = vadd.f32 %v1524_v62, %v1516_v61 }
0x1c34   :  { %6799 = vtanh.f32 %v1526_v63  ;;  %v1627_v29 = vrot.slane %v1526_v63, 2 }
0x1c41   :  { %v6800_v1 = vpop.eup %6799 }
0x1c42   :  { %1529 = vrot.lane.b32.xlu0 %v6800_v1, %s7242_s24 }
0x1cb4   :  { %v1530_v9 = vpop.permute.xlu0 %1529 }
0x1cb5   :  { %v7573_v12 = vmul.f32 %v6798_v58, %v1530_v9 }
0x1cb7   :  { %1539 = vrot.lane.b32.xlu1 %v7573_v12, %s7256_s29 }
0x1d29   :  { %v1540_v14 = vpop.permute.xlu1 %1539 }
0x1d2a   :  { %6429 = vmatmul.mubr.msk.f32.vlgmr.msra.gmra.mxu1 %vm213_vm3, %v1540_v14 }
0x1d2b   :  { %6439 = vmatpush3.msra.mxu1 %v7479_v10  ;;  %6442 = vmatprep.mubr.msk.f32.mxu1 %vm7252_vm0, %v7251_v0 }
0x1d2c   :  { %6440 = vmatprep.subr.mxu1 %v7251_v0 }
0x1d2d   :  { %6441 = vmatpush3.msra.mxu1 %v7485_v13 }
0x1dea   :  { %v1609_v15 = vpop.f32.mrf.mxu1 }
0x1deb   :  { %v1614_v16 = vrot.slane %v1609_v15, 2 }
0x1dec   :  { %v6430_v17 = vpop.f32.mrf.mxu1 }
0x1ded   :  { %1615 = vrot.lane.b32.xlu0 %v1614_v16, %s7255_s2 }
0x1e5f   :  { %v1616_v18 = vpop.permute.xlu0 %1615 }
0x1e60   :  { %v1618_v19 = vadd.f32 %v1616_v18, %v7395_v11 }
0x1e62   :  { %6801 = vtanh.f32 %v1618_v19  ;;  %v6097_v22 = vmul.f32 -1.442695, %v1618_v19 }
0x1e64   :  { %6803 = vpow2.f32 %v6097_v22 }
0x1e6f   :  { %v6802_v20 = vpop.eup %6801 }
0x1e70   :  { %1631 = vrot.lane.b32.xlu1 %v6802_v20, %s7253_s0 }
0x1e71   :  { %v6804_v23 = vpop.eup %6803 }
0x1e72   :  { %v1622_v24 = vadd.f32 1.0, %v6804_v23 }
0x1e74   :  { %6805 = vrcp.f32 %v1622_v24 }
0x1e81   :  { %v6806_v25 = vpop.eup %6805 }
0x1e82   :  { %v1629_v30 = vmul.f32 %v6806_v25, %v1627_v29  ;;  %v7630_v29 = vld [vmem:[#allocation8] sm:$0xff] }
0x1ee2   :  { %v1632_v26 = vpop.permute.xlu1 %1631 }
0x1ee3   :  { %v1634_v27 = vmul.f32 %v6806_v25, %v1632_v26 }
0x1ee5   :  { %1636 = vrot.lane.b32.xlu0 %v1634_v27, %s7242_s24  ;;  %v7627_v27 = vld [vmem:[#allocation8 + $0x8] sm:$0xff] }
0x1f57   :  { %v1637_v31 = vpop.permute.xlu0 %1636 }
0x1f58   :  { %v1639_v32 = vadd.f32 %v1637_v31, %v1629_v30 }
0x1f5a   :  { %6807 = vtanh.f32 %v1639_v32  ;;  %v1740_v52 = vrot.slane %v1639_v32, 2 }
0x1f67   :  { %v6808_v33 = vpop.eup %6807 }
0x1f68   :  { %1642 = vrot.lane.b32.xlu1 %v6808_v33, %s7242_s24 }
0x1fda   :  { %v1643_v34 = vpop.permute.xlu1 %1642 }
0x1fdb   :  { %v7588_v35 = vmul.f32 %v6806_v25, %v1643_v34  ;;  %v2079_v25 = vld [vmem:[%s8494_s6] sm:$0xff]  ;;  %s7257_s6 = smov 48  }
0x1fdc   :  { %6452 = vmatprep.subr.mxu1 %v2079_v25  ;;  %v7655_v34 = vld [vmem:[#allocation9] ss:$0 sm:$0xff] }
0x1fdd   :  { %v1651_v36 = vrot.slane %v7588_v35, 6 }
0x1fdf   :  { %1652 = vrot.lane.b32.xlu0 %v1651_v36, %s7256_s29 }
0x2051   :  { %v1653_v37 = vpop.permute.xlu0 %1652 }
0x2052   :  { %6436 = vmatmul.mubr.msk.f32.vlgmr.msra.gmra.mxu0 %vm213_vm3, %v1653_v37 }
0x2053   :  { %6446 = vmatpush3.msra.mxu0 %v7479_v10  ;;  %6449 = vmatprep.mubr.msk.f32.mxu0 %vm7252_vm0, %v7251_v0 }
0x2054   :  { %6447 = vmatprep.subr.mxu0 %v7251_v0 }
0x2055   :  { %6448 = vmatpush3.msra.mxu0 %v7485_v13 }
0x2056   :  { %6457 = vmatprep.subr.mxu0 %v7251_v0 }
0x2112   :  { %v1722_v39 = vpop.f32.mrf.mxu0 }
0x2113   :  { %v1727_v40 = vrot.slane %v1722_v39, 4 }
0x2114   :  { %v6437_v41 = vpop.f32.mrf.mxu0 }
0x2115   :  { %1728 = vrot.lane.b32.xlu1 %v1727_v40, %s7255_s2 }
0x2187   :  { %v1729_v42 = vpop.permute.xlu1 %1728 }
0x2188   :  { %v1731_v43 = vadd.f32 %v1729_v42, %v7395_v11 }
0x218a   :  { %6809 = vtanh.f32 %v1731_v43  ;;  %v6099_v10 = vmul.f32 -1.442695, %v1731_v43 }
0x218c   :  { %6811 = vpow2.f32 %v6099_v10 }
0x2197   :  { %v6810_v46 = vpop.eup %6809 }
0x2198   :  { %1744 = vrot.lane.b32.xlu0 %v6810_v46, %s7253_s0 }
0x2199   :  { %v6812_v47 = vpop.eup %6811 }
0x219a   :  { %v1735_v49 = vadd.f32 1.0, %v6812_v47 }
0x219c   :  { %6813 = vrcp.f32 %v1735_v49 }
0x21a9   :  { %v6814_v13 = vpop.eup %6813 }
0x21aa   :  { %v1742_v54 = vmul.f32 %v6814_v13, %v1740_v52 }
0x220a   :  { %v1745_v50 = vpop.permute.xlu0 %1744 }
0x220b   :  { %v1747_v51 = vmul.f32 %v6814_v13, %v1745_v50 }
0x220d   :  { %1749 = vrot.lane.b32.xlu1 %v1747_v51, %s7242_s24 }
0x227f   :  { %v1750_v55 = vpop.permute.xlu1 %1749 }
0x2280   :  { %v1752_v56 = vadd.f32 %v1750_v55, %v1742_v54 }
0x2282   :  { %6815 = vtanh.f32 %v1752_v56  ;;  %v1853_v20 = vrot.slane %v1752_v56, 2 }
0x228f   :  { %v6816_v57 = vpop.eup %6815 }
0x2290   :  { %1755 = vrot.lane.b32.xlu0 %v6816_v57, %s7242_s24 }
0x2302   :  { %v1756_v58 = vpop.permute.xlu0 %1755 }
0x2303   :  { %v7604_v59 = vmul.f32 %v6814_v13, %v1756_v58 }
0x2305   :  { %v1764_v5 = vrot.slane %v7604_v59, 4 }
0x2307   :  { %1765 = vrot.lane.b32.xlu1 %v1764_v5, %s7256_s29 }
0x2379   :  { %v1766_v60 = vpop.permute.xlu1 %1765 }
0x237a   :  { %6443 = vmatmul.mubr.msk.f32.vlgmr.msra.gmra.mxu1 %vm213_vm3, %v1766_v60  ;;  %v7702_v60 = vld [vmem:[#allocation6] ss:$0 sm:$0xff] }
0x237b   :  { %6454 = vmatprep.mubr.msk.f32.mxu1 %vm129_vm1, %v7354_v2  ;;  %6453 = vmatpush3.msra.mxu1 %v2079_v25 }
0x237c   :  { %6464 = vmatprep.subr.mxu1 %v7251_v0 }
0x237e   :  { %6455 = vmatmul.mubr.msk.f32.vlgmr.msra.gmra.mxu1 %vm129_vm1, %v7366_v4 }
0x237f   :  { %6468 = vmatprep.mubr.msk.f32.mxu1 %vm7252_vm0, %v7251_v0  ;;  %6465 = vmatpush3.msra.mxu1 %v7627_v27 }
0x2380   :  { %6466 = vmatprep.subr.mxu1 %v7251_v0 }
0x2381   :  { %6467 = vmatpush3.msra.mxu1 %v7630_v29 }
0x2382   :  { %6478 = vmatprep.subr.mxu1 %v7251_v0 }
0x243a   :  { %v1835_v61 = vpop.f32.mrf.mxu1 }
0x243b   :  { %v1840_v62 = vrot.slane %v1835_v61, 6 }
0x243c   :  { %v6444_v63 = vpop.f32.mrf.mxu1 }
0x243d   :  { %1841 = vrot.lane.b32.xlu0 %v1840_v62, %s7255_s2 }
0x243e   :  { %v7653_v33 = vpop.f32.mrf.mxu1 }
0x2440   :  { %v2153_v37 = vpop.f32.mrf.mxu1 }
0x2441   :  { %v7660_v40 = vadd.f32 %v7655_v34, %v2153_v37 }
0x24af   :  { %v1842_v1 = vpop.permute.xlu0 %1841 }
0x24b0   :  { %v1844_v9 = vadd.f32 %v1842_v1, %v7395_v11 }
0x24b2   :  { %6817 = vtanh.f32 %v1844_v9  ;;  %v6101_v15 = vmul.f32 -1.442695, %v1844_v9 }
0x24b4   :  { %6819 = vpow2.f32 %v6101_v15 }
0x24bf   :  { %v6818_v14 = vpop.eup %6817 }
0x24c0   :  { %1857 = vrot.lane.b32.xlu1 %v6818_v14, %s7253_s0 }
0x24c1   :  { %v6820_v16 = vpop.eup %6819 }
0x24c2   :  { %v1848_v17 = vadd.f32 1.0, %v6820_v16  ;;  %v7258_v16 = vmov 0  }
0x24c3   :  { %6711 = vset.pattern.permute.xlu1 %v7258_v16  ;;  %6712 = vset.pattern.permute.xlu0 %v7258_v16 }
0x24c4   :  { %6821 = vrcp.f32 %v1848_v17 }
0x24d1   :  { %v6822_v18 = vpop.eup %6821 }
0x24d2   :  { %v1855_v22 = vmul.f32 %v6822_v18, %v1853_v20 }
0x2532   :  { %v1858_v19 = vpop.permute.xlu1 %1857 }
0x2533   :  { %v1860_v2 = vmul.f32 %v6822_v18, %v1858_v19 }
0x2535   :  { %1862 = vrot.lane.b32.xlu0 %v1860_v2, %s7242_s24 }
0x25a7   :  { %v1863_v23 = vpop.permute.xlu0 %1862 }
0x25a8   :  { %v7615_v24 = vadd.f32 %v1863_v23, %v1855_v22 }
0x25aa   :  { %6823 = vtanh.f32 %v7615_v24 }
0x25b7   :  { %v6824_v26 = vpop.eup %6823 }
0x25b8   :  { %1868 = vrot.lane.b32.xlu1 %v6824_v26, %s7242_s24 }
0x262a   :  { %v1869_v4 = vpop.permute.xlu1 %1868 }
0x262b   :  { %v7635_v30 = vmul.f32 %v6822_v18, %v1869_v4  ;;  %v7714_v18 = vld [vmem:[%s8493_s5] ss:$0 sm:$0xff] }
0x262d   :  { %v1877_v31 = vrot.slane %v7635_v30, 2 }
0x262f   :  { %1878 = vrot.lane.b32.xlu0 %v1877_v31, %s7256_s29 }
0x26a1   :  { %v1879_v32 = vpop.permute.xlu0 %1878 }
0x26a2   :  { %6450 = vmatmul.mubr.msk.f32.vlgmr.msra.gmra.mxu0 %vm213_vm3, %v1879_v32 }
0x26a3   :  { %6458 = vmatpush3.msra.mxu0 %v7627_v27  ;;  %6461 = vmatprep.mubr.msk.f32.mxu0 %vm7252_vm0, %v7251_v0 }
0x26a4   :  { %6459 = vmatprep.subr.mxu0 %v7251_v0 }
0x26a5   :  { %6460 = vmatpush3.msra.mxu0 %v7630_v29 }
0x26a6   :  { %6462 = vmatmul.mubr.f32.vlgmr.msra.gmra.mxu0 %v7251_v0  ;;  %6471 = vmatprep.subr.mxu0 %v7251_v0 }
0x26a7   :  { %6472 = vmatpush3.msra.mxu0 %v7627_v27  ;;  %6475 = vmatprep.mubr.msk.f32.mxu0 %vm7252_vm0, %v7251_v0 }
0x26a8   :  { %6473 = vmatprep.subr.mxu0 %v7251_v0 }
0x26a9   :  { %6474 = vmatpush3.msra.mxu0 %v7630_v29 }
0x26aa   :  { %6485 = vmatprep.subr.mxu0 %v7251_v0 }
0x2762   :  { %v7657_v36 = vpop.f32.mrf.mxu0 }
0x2764   :  { %v6451_v39 = vpop.f32.mrf.mxu0 }
0x2766   :  { %v2230_v41 = vpop.f32.mrf.mxu0 }
0x2767   :  { %v2234_v42 = vadd.f32 %v2230_v41, %v7660_v40 }
0x2768   :  { %v6463_v43 = vpop.f32.mrf.mxu0 }
0x2769   :  { %6825 = vtanh.f32 %v2234_v42  ;;  %v6116_v10 = vmul.f32 -1.442695, %v2234_v42 }
0x276b   :  { %6827 = vpow2.f32 %v6116_v10 }
0x2776   :  { %v6826_v46 = vpop.eup %6825 }
0x2777   :  { %2244 = vrot.lane.b32.xlu1 %v6826_v46, %s7253_s0 }
0x2778   :  { %v6828_v47 = vpop.eup %6827 }
0x2779   :  { %v2238_v49 = vadd.f32 1.0, %v6828_v47 }
0x277b   :  { %6829 = vrcp.f32 %v2238_v49 }
0x2788   :  { %v6830_v13 = vpop.eup %6829 }
0x2789   :  { %v2242_v52 = vmul.f32 0.0, %v6830_v13 }
0x27e9   :  { %v2245_v50 = vpop.permute.xlu1 %2244 }
0x27ea   :  { %v2247_v51 = vmul.f32 %v6830_v13, %v2245_v50 }
0x27ec   :  { %2249 = vrot.lane.b32.xlu0 %v2247_v51, %s7242_s24 }
0x285e   :  { %v2250_v54 = vpop.permute.xlu0 %2249 }
0x285f   :  { %v7665_v55 = vadd.f32 %v2250_v54, %v2242_v52 }
0x2861   :  { %6831 = vtanh.f32 %v7665_v55  ;;  %v2348_v43 = vrot.slane %v7665_v55, 6 }
0x286e   :  { %v6832_v56 = vpop.eup %6831 }
0x286f   :  { %2255 = vrot.lane.b32.xlu1 %v6832_v56, %s7242_s24 }
0x2873   :  { %422 = vrot.lane.b32.xlu1 %v7414_v45, %s7254_s8 }
0x2877   :  { %646 = vrot.lane.b32.xlu1 %v7444_v28, %s7254_s8 }
0x287b   :  { %1307 = vrot.lane.b32.xlu1 %v7541_v21, %s7257_s6 }
0x287f   :  { %1534 = vrot.lane.b32.xlu1 %v7573_v12, %s7257_s6 }
0x28e1   :  { %v2256_v57 = vpop.permute.xlu1 %2255 }
0x28e2   :  { %v7677_v58 = vmul.f32 %v6830_v13, %v2256_v57 }
0x28e4   :  { %2260 = vrot.lane.b32.xlu0 %v7677_v58, %s7254_s8  ;;  %v2372_v42 = vrot.slane %v7677_v58, 6 }
0x28e5   :  { %v423_v5 = vpop.permute.xlu1 %422 }
0x28e6   :  { %426 = vst.msk [vmem:[#allocation2] sm:$0xc] %vm425_vm4, %v423_v5 }
0x28e8   :  { %534 = vrot.lane.b32.xlu0 %v7429_v6, %s7254_s8 }
0x28e9   :  { %v647_v45 = vpop.permute.xlu1 %646 }
0x28ea   :  { %650 = vst.msk [vmem:[#allocation2] sm:$0xc0] %vm649_vm5, %v647_v45 }
0x28ec   :  { %1193 = vrot.lane.b32.xlu0 %v7516_v53, %s7257_s6 }
0x28ed   :  { %v1308_v28 = vpop.permute.xlu1 %1307 }
0x28ee   :  { %1311 = vst.msk [vmem:[#allocation2 - $0x2] sm:$0x30] %vm1310_vm6, %v1308_v28 }
0x28f0   :  { %1421 = vrot.lane.b32.xlu0 %v7557_v44, %s7257_s6 }
0x28f1   :  { %v1535_v21 = vpop.permute.xlu1 %1534 }
0x28f2   :  { %1538 = vst.msk [vmem:[#allocation2 + $0x6] sm:$0x3] %vm1537_vm7, %v1535_v21 }
0x2956   :  { %v2261_v12 = vpop.permute.xlu0 %2260 }
0x2957   :  { %2263 = vst.msk [vmem:[#allocation3] sm:$0x3] %vm316_vm2, %v2261_v12  ;;  %6469 = vmatmul.mubr.msk.f32.vlgmr.msra.gmra.mxu1 %vm213_vm3, %v2261_v12 }
0x2958   :  { %6479 = vmatpush3.msra.mxu1 %v7627_v27  ;;  %6482 = vmatprep.mubr.msk.f32.mxu1 %vm7252_vm0, %v7251_v0 }
0x2959   :  { %6480 = vmatprep.subr.mxu1 %v7251_v0 }
0x295a   :  { %v535_v6 = vpop.permute.xlu0 %534  ;;  %6481 = vmatpush3.msra.mxu1 %v7630_v29 }
0x295b   :  { %538 = vst.msk [vmem:[#allocation2] sm:$0x30] %vm537_vm8, %v535_v6  ;;  %6492 = vmatprep.subr.mxu1 %v7251_v0 }
0x295e   :  { %v1194_v53 = vpop.permute.xlu0 %1193 }
0x295f   :  { %1197 = vst.msk [vmem:[#allocation2 - $0x6] sm:$0xc0] %vm1196_vm9, %v1194_v53 }
0x2962   :  { %v1422_v44 = vpop.permute.xlu0 %1421 }
0x2963   :  { %1425 = vst.msk [vmem:[#allocation2 + $0x2] sm:$0xc] %vm1424_vm10, %v1422_v44 }
0x296a   :  { %v7704_v61 = vld [vmem:[#allocation2] sm:$0xff] }
0x296b   :  { %v1998_v62 = vmul.f32 %v7702_v60, %v7704_v61 }
0x296d   :  { %v2000_v63 = vsel %vm213_vm3, %v1998_v62, 0.0 }
0x296e   :  { %2001 = vadd.xlane.f32.xlu0 %v2000_v63 }
0x29f7   :  { %v2002_v19 = vpop.xlane.xlu0 %2001 }
0x29f8   :  { %v2013_v2 = vadd.f32 %v7714_v18, %v2002_v19 }
0x29fa   :  { %v6106_v22 = vmul.f32 -1.442695, %v2013_v2 }
0x2a17   :  { %v2332_v1 = vpop.f32.mrf.mxu1 }
0x2a18   :  { %v2337_v9 = vrot.slane %v2332_v1, 6 }
0x2a19   :  { %v6470_v14 = vpop.f32.mrf.mxu1 }
0x2a1a   :  { %v2339_v15 = vadd.f32 %v2337_v9, %v7660_v40 }
0x2a1c   :  { %6833 = vtanh.f32 %v2339_v15  ;;  %v6118_v20 = vmul.f32 -1.442695, %v2339_v15 }
0x2a1e   :  { %6835 = vpow2.f32 %v6118_v20 }
0x2a1f   :  { %6837 = vpow2.f32 %v6106_v22 }
0x2a29   :  { %v6834_v17 = vpop.eup %6833 }
0x2a2a   :  { %2352 = vrot.lane.b32.xlu1 %v6834_v17, %s7253_s0 }
0x2a2b   :  { %v6836_v23 = vpop.eup %6835 }
0x2a2c   :  { %v6838_v25 = vpop.eup %6837  ;;  %v2343_v26 = vadd.f32 1.0, %v6836_v23 }
0x2a2d   :  { %v2021_v4 = vadd.f32 1.0, %v6838_v25 }
0x2a2e   :  { %6839 = vrcp.f32 %v2343_v26 }
0x2a2f   :  { %6841 = vrcp.f32 %v2021_v4 }
0x2a3b   :  { %v6840_v31 = vpop.eup %6839 }
0x2a3c   :  { %v6842_v39 = vpop.eup %6841  ;;  %v2350_v46 = vmul.f32 %v6840_v31, %v2348_v43 }
0x2a3d   :  { %v2027_v41 = vmul.f32 0.9, %v6842_v39 }
0x2a9c   :  { %v2353_v32 = vpop.permute.xlu1 %2352 }
0x2a9d   :  { %v2355_v37 = vmul.f32 %v6840_v31, %v2353_v32 }
0x2a9f   :  { %2357 = vrot.lane.b32.xlu1 %v2355_v37, %s7242_s24 }
0x2aa3   :  { %2369 = vperm.xlu1 %6711, %v2027_v41  }
0x2aa7   :  { %2373 = vrot.lane.b32.xlu1 %v2372_v42, %s7254_s8 }
0x2b11   :  { %v2358_v10 = vpop.permute.xlu1 %2357 }
0x2b12   :  { %v2360_v47 = vadd.f32 %v2358_v10, %v2350_v46 }
0x2b14   :  { %6843 = vtanh.f32 %v2360_v47  ;;  %v2474_v14 = vrot.slane %v2360_v47, 6 }
0x2b1e   :  { %v7721_v49 = vpop.permute.xlu1 %2369 }
0x2b21   :  { %v6844_v13 = vpop.eup %6843 }
0x2b22   :  { %2363 = vrot.lane.b32.xlu1 %v6844_v13, %s7242_s24  ;;  %v2374_v50 = vpop.permute.xlu1 %2373 }
0x2b23   :  { %v2376_v51 = vmul.f32 %v2374_v50, %v7721_v49 }
0x2b26   :  { %2378 = vrot.lane.b32.xlu1 %v2376_v51, %s7256_s29 }
0x2b94   :  { %v2364_v52 = vpop.permute.xlu1 %2363 }
0x2b95   :  { %v2366_v54 = vmul.f32 %v6840_v31, %v2364_v52 }
0x2b98   :  { %v2379_v56 = vpop.permute.xlu1 %2378 }
0x2b99   :  { %v7726_v57 = vadd.f32 %v2379_v56, %v2366_v54 }
0x2b9b   :  { %v2387_v55 = vrot.slane %v7726_v57, 2  ;;  %v2493_v6 = vrot.slane %v7726_v57, 6 }
0x2b9d   :  { %2388 = vrot.lane.b32.xlu1 %v2387_v55, %s7254_s8  ;;  %v1054_v55 = vrot.slane %v7534_v3, 2 }
0x2c0f   :  { %v2389_v58 = vpop.permute.xlu1 %2388 }
0x2c10   :  { %6476 = vmatmul.mubr.msk.f32.vlgmr.msra.gmra.mxu0 %vm213_vm3, %v2389_v58 }
0x2c11   :  { %6486 = vmatpush3.msra.mxu0 %v7627_v27  ;;  %6489 = vmatprep.mubr.msk.f32.mxu0 %vm7252_vm0, %v7251_v0 }
0x2c12   :  { %6487 = vmatprep.subr.mxu0 %v7251_v0 }
0x2c13   :  { %6488 = vmatpush3.msra.mxu0 %v7630_v29 }
0x2c14   :  { %6499 = vmatprep.subr.mxu0 %v7251_v0 }
0x2cd0   :  { %v2458_v5 = vpop.f32.mrf.mxu0 }
0x2cd1   :  { %v2463_v45 = vrot.slane %v2458_v5, 4 }
0x2cd2   :  { %v6477_v28 = vpop.f32.mrf.mxu0 }
0x2cd3   :  { %v2465_v21 = vadd.f32 %v2463_v45, %v7660_v40  ;;  %v1056_v28 = vadd.f32 %v1054_v55, %v7393_v8 }
0x2cd5   :  { %6845 = vtanh.f32 %v2465_v21  ;;  %v6120_v53 = vmul.f32 -1.442695, %v2465_v21  ;;  %v6086_v3 = vmul.f32 -1.442695, %v1056_v28 }
0x2cd7   :  { %6847 = vpow2.f32 %v6120_v53 }
0x2ce2   :  { %v6846_v12 = vpop.eup %6845 }
0x2ce3   :  { %2478 = vrot.lane.b32.xlu1 %v6846_v12, %s7253_s0 }
0x2ce4   :  { %v6848_v44 = vpop.eup %6847 }
0x2ce5   :  { %v2469_v62 = vadd.f32 1.0, %v6848_v44 }
0x2ce7   :  { %2494 = vrot.lane.b32.xlu1 %v2493_v6, %s7254_s8  ;;  %6849 = vrcp.f32 %v2469_v62 }
0x2cf4   :  { %v6850_v63 = vpop.eup %6849 }
0x2cf5   :  { %v2476_v15 = vmul.f32 %v6850_v63, %v2474_v14 }
0x2d55   :  { %v2479_v1 = vpop.permute.xlu1 %2478 }
0x2d56   :  { %v2481_v9 = vmul.f32 %v6850_v63, %v2479_v1 }
0x2d58   :  { %2483 = vrot.lane.b32.xlu0 %v2481_v9, %s7242_s24 }
0x2d59   :  { %v2495_v2 = vpop.permute.xlu1 %2494 }
0x2d5a   :  { %v2497_v20 = vmul.f32 %v2495_v2, %v7721_v49 }
0x2dca   :  { %v2484_v16 = vpop.permute.xlu0 %2483 }
0x2dcb   :  { %v2486_v17 = vadd.f32 %v2484_v16, %v2476_v15 }
0x2dcd   :  { %6851 = vtanh.f32 %v2486_v17  ;;  %v2595_v56 = vrot.slane %v2486_v17, 6 }
0x2dda   :  { %v6852_v19 = vpop.eup %6851 }
0x2ddb   :  { %2489 = vrot.lane.b32.xlu1 %v6852_v19, %s7242_s24 }
0x2ddf   :  { %2499 = vrot.lane.b32.xlu1 %v2497_v20, %s7256_s29 }
0x2e4d   :  { %v2490_v22 = vpop.permute.xlu1 %2489 }
0x2e4e   :  { %v2492_v23 = vmul.f32 %v6850_v63, %v2490_v22 }
0x2e51   :  { %v2500_v25 = vpop.permute.xlu1 %2499 }
0x2e52   :  { %v7745_v26 = vadd.f32 %v2500_v25, %v2492_v23  ;;  %v1065_v25 = vrot.slane %v7506_v38, 6 }
0x2e54   :  { %v2614_v4 = vrot.slane %v7745_v26, 6  ;;  %v2508_v31 = vrot.slane %v7745_v26, 4 }
0x2e56   :  { %2615 = vrot.lane.b32.xlu0 %v2614_v4, %s7254_s8  ;;  %2509 = vrot.lane.b32.xlu1 %v2508_v31, %s7254_s8 }
0x2ec8   :  { %v2510_v32 = vpop.permute.xlu1 %2509  ;;  %v2616_v52 = vpop.permute.xlu0 %2615 }
0x2ec9   :  { %6483 = vmatmul.mubr.msk.f32.vlgmr.msra.gmra.mxu1 %vm213_vm3, %v2510_v32  ;;  %v2618_v54 = vmul.f32 %v2616_v52, %v7721_v49 }
0x2eca   :  { %6493 = vmatpush3.msra.mxu1 %v7627_v27  ;;  %6496 = vmatprep.mubr.msk.f32.mxu1 %vm7252_vm0, %v7251_v0 }
0x2ecb   :  { %6494 = vmatprep.subr.mxu1 %v7251_v0 }
0x2ecc   :  { %6495 = vmatpush3.msra.mxu1 %v7630_v29 }
0x2ecd   :  { %6506 = vmatprep.subr.mxu1 %v7251_v0 }
0x2f89   :  { %v2579_v37 = vpop.f32.mrf.mxu1 }
0x2f8a   :  { %v2584_v39 = vrot.slane %v2579_v37, 2  ;;  %v1965_v37 = vrot.slane %v7615_v24, 2 }
0x2f8b   :  { %v6484_v41 = vpop.f32.mrf.mxu1 }
0x2f8c   :  { %v2586_v42 = vadd.f32 %v2584_v39, %v7660_v40 }
0x2f8e   :  { %6853 = vtanh.f32 %v2586_v42  ;;  %v6122_v46 = vmul.f32 -1.442695, %v2586_v42 }
0x2f90   :  { %6855 = vpow2.f32 %v6122_v46 }
0x2f9b   :  { %v6854_v43 = vpop.eup %6853 }
0x2f9c   :  { %2599 = vrot.lane.b32.xlu1 %v6854_v43, %s7253_s0 }
0x2f9d   :  { %v6856_v10 = vpop.eup %6855 }
0x2f9e   :  { %v2590_v47 = vadd.f32 1.0, %v6856_v10 }
0x2fa0   :  { %6857 = vrcp.f32 %v2590_v47 }
0x2fad   :  { %v6858_v13 = vpop.eup %6857 }
0x2fae   :  { %v2597_v58 = vmul.f32 %v6858_v13, %v2595_v56 }
0x300e   :  { %v2600_v50 = vpop.permute.xlu1 %2599 }
0x300f   :  { %v2602_v51 = vmul.f32 %v6858_v13, %v2600_v50 }
0x3011   :  { %2604 = vrot.lane.b32.xlu1 %v2602_v51, %s7242_s24 }
0x3015   :  { %1953 = vrot.lane.b32.xlu1 %v7657_v36, %s7255_s2 }
0x3019   :  { %2620 = vrot.lane.b32.xlu1 %v2618_v54, %s7256_s29 }
0x3083   :  { %v2605_v5 = vpop.permute.xlu1 %2604 }
0x3084   :  { %v7766_v45 = vadd.f32 %v2605_v5, %v2597_v58 }
0x3086   :  { %6859 = vtanh.f32 %v7766_v45 }
0x3087   :  { %v1954_v21 = vpop.permute.xlu1 %1953  ;;  %6861 = vtanh.f32 %v1056_v28 }
0x3088   :  { %v1956_v12 = vadd.f32 %v1954_v21, %v7395_v11 }
0x308a   :  { %6863 = vtanh.f32 %v1956_v12  ;;  %v6103_v44 = vmul.f32 -1.442695, %v1956_v12 }
0x308b   :  { %6865 = vpow2.f32 %v6086_v3  ;;  %v2621_v14 = vpop.permute.xlu1 %2620 }
0x308c   :  { %6867 = vpow2.f32 %v6103_v44 }
0x3093   :  { %v6860_v36 = vpop.eup %6859 }
0x3094   :  { %2610 = vrot.lane.b32.xlu0 %v6860_v36, %s7242_s24  ;;  %v6862_v6 = vpop.eup %6861 }
0x3097   :  { %v6864_v53 = vpop.eup %6863 }
0x3098   :  { %1969 = vrot.lane.b32.xlu1 %v6864_v53, %s7253_s0  ;;  %1069 = vrot.lane.b32.xlu0 %v6862_v6, %s7253_s0  ;;  %v6866_v8 = vpop.eup %6865 }
0x3099   :  { %v1060_v62 = vadd.f32 1.0, %v6866_v8  ;;  %v6868_v63 = vpop.eup %6867 }
0x309a   :  { %v1960_v11 = vadd.f32 1.0, %v6868_v63  ;;  %v2713_v63 = vrot.slane %v7766_v45, 6 }
0x309b   :  { %6869 = vrcp.f32 %v1060_v62 }
0x309c   :  { %6871 = vrcp.f32 %v1960_v11 }
0x30a8   :  { %v6870_v16 = vpop.eup %6869 }
0x30a9   :  { %v6872_v22 = vpop.eup %6871  ;;  %v1067_v4 = vmul.f32 %v6870_v16, %v1065_v25 }
0x30aa   :  { %v1967_v41 = vmul.f32 %v6872_v22, %v1965_v37 }
0x3106   :  { %v2611_v1 = vpop.permute.xlu0 %2610 }
0x3107   :  { %v2613_v9 = vmul.f32 %v6858_v13, %v2611_v1 }
0x3109   :  { %v7774_v15 = vadd.f32 %v2621_v14, %v2613_v9 }
0x310a   :  { %v1070_v17 = vpop.permute.xlu0 %1069  ;;  %v1970_v20 = vpop.permute.xlu1 %1969 }
0x310b   :  { %v1072_v19 = vmul.f32 %v6870_v16, %v1070_v17  ;;  %v2629_v2 = vrot.slane %v7774_v15, 6  ;;  %v1972_v23 = vmul.f32 %v6872_v22, %v1970_v20 }
0x310d   :  { %2630 = vrot.lane.b32.xlu0 %v2629_v2, %s7254_s8  ;;  %1074 = vrot.lane.b32.xlu1 %v1072_v19, %s7242_s24 }
0x3111   :  { %1974 = vrot.lane.b32.xlu0 %v1972_v23, %s7242_s24 }
0x317f   :  { %v1075_v31 = vpop.permute.xlu1 %1074  ;;  %v7781_v32 = vpop.permute.xlu0 %2630 }
0x3180   :  { %v1077_v39 = vadd.f32 %v1075_v31, %v1067_v4  ;;  %6490 = vmatmul.mubr.msk.f32.vlgmr.msra.gmra.mxu0 %vm213_vm3, %v7781_v32 }
0x3181   :  { %6500 = vmatpush3.msra.mxu0 %v7627_v27  ;;  %6503 = vmatprep.mubr.msk.f32.mxu0 %vm7252_vm0, %v7251_v0 }
0x3182   :  { %6873 = vtanh.f32 %v1077_v39  ;;  %6501 = vmatprep.subr.mxu0 %v7251_v0 }
0x3183   :  { %v1975_v38 = vpop.permute.xlu0 %1974  ;;  %6502 = vmatpush3.msra.mxu0 %v7630_v29 }
0x3184   :  { %v1977_v42 = vadd.f32 %v1975_v38, %v1967_v41  ;;  %6513 = vmatprep.subr.mxu0 %v7251_v0 }
0x3186   :  { %6875 = vtanh.f32 %v1977_v42 }
0x318f   :  { %v6874_v24 = vpop.eup %6873 }
0x3190   :  { %1080 = vrot.lane.b32.xlu1 %v6874_v24, %s7242_s24 }
0x3193   :  { %v6876_v43 = vpop.eup %6875 }
0x3194   :  { %863 = vrot.lane.b32.xlu1 %v7472_v7, %s7254_s8  ;;  %1980 = vrot.lane.b32.xlu0 %v6876_v43, %s7242_s24 }
0x3198   :  { %974 = vrot.lane.b32.xlu0 %v7511_v48, %s7254_s8 }
0x319c   :  { %1647 = vrot.lane.b32.xlu0 %v7588_v35, %s7257_s6 }
0x31a0   :  { %1873 = vrot.lane.b32.xlu0 %v7635_v30, %s7257_s6  ;;  %v7812_v30 = vadd.f32 %v7653_v33, %v7655_v34 }
0x3202   :  { %v1081_v46 = vpop.permute.xlu1 %1080 }
0x3203   :  { %v1083_v10 = vmul.f32 %v6870_v16, %v1081_v46 }
0x3205   :  { %1085 = vrot.lane.b32.xlu1 %v1083_v10, %s7254_s8 }
0x3206   :  { %v864_v47 = vpop.permute.xlu1 %863  ;;  %v1981_v13 = vpop.permute.xlu0 %1980 }
0x3207   :  { %866 = vst.msk [vmem:[#allocation2 + $0x8] sm:$0xc] %vm425_vm4, %v864_v47  ;;  %v1983_v50 = vmul.f32 %v6872_v22, %v1981_v13 }
0x3209   :  { %1760 = vrot.lane.b32.xlu1 %v7604_v59, %s7257_s6 }
0x320a   :  { %v975_v7 = vpop.permute.xlu0 %974 }
0x320b   :  { %977 = vst.msk [vmem:[#allocation2 + $0x8] sm:$0x30] %vm537_vm8, %v975_v7 }
0x320d   :  { %1985 = vrot.lane.b32.xlu1 %v1983_v50, %s7257_s6 }
0x320e   :  { %v1648_v48 = vpop.permute.xlu0 %1647 }
0x320f   :  { %1650 = vst.msk [vmem:[#allocation2 + $0x2] sm:$0xc0] %vm1196_vm9, %v1648_v48 }
0x3212   :  { %v1874_v35 = vpop.permute.xlu0 %1873 }
0x3213   :  { %1876 = vst.msk [vmem:[#allocation2 + $0xa] sm:$0xc] %vm1424_vm10, %v1874_v35 }
0x3240   :  { %v2700_v51 = vpop.f32.mrf.mxu0 }
0x3241   :  { %v2704_v52 = vadd.f32 %v2700_v51, %v7812_v30 }
0x3242   :  { %v6491_v59 = vpop.f32.mrf.mxu0 }
0x3243   :  { %6877 = vtanh.f32 %v2704_v52  ;;  %v6124_v28 = vmul.f32 -1.442695, %v2704_v52 }
0x3245   :  { %6879 = vpow2.f32 %v6124_v28 }
0x3250   :  { %v6878_v54 = vpop.eup %6877 }
0x3251   :  { %2717 = vrot.lane.b32.xlu1 %v6878_v54, %s7253_s0  ;;  %v7853_v54 = vld [vmem:[#allocation8 + $0x18] sm:$0xff] }
0x3252   :  { %v6880_v21 = vpop.eup %6879 }
0x3253   :  { %v2708_v12 = vadd.f32 1.0, %v6880_v21 }
0x3255   :  { %6881 = vrcp.f32 %v2708_v12 }
0x3262   :  { %v6882_v36 = vpop.eup %6881 }
0x3263   :  { %v2715_v1 = vmul.f32 %v6882_v36, %v2713_v63 }
0x3277   :  { %v1086_v56 = vpop.permute.xlu1 %1085 }
0x3278   :  { %1088 = vst.msk [vmem:[#allocation2 + $0x8] sm:$0xc0] %vm649_vm5, %v1086_v56 }
0x327b   :  { %v1761_v55 = vpop.permute.xlu1 %1760 }
0x327c   :  { %1763 = vst.msk [vmem:[#allocation2 + $0x6] sm:$0x30] %vm1310_vm6, %v1761_v55  ;;  %v7856_v55 = vld [vmem:[#allocation8 + $0x10] sm:$0xff] }
0x327f   :  { %v1986_v58 = vpop.permute.xlu1 %1985 }
0x3280   :  { %1988 = vst.msk [vmem:[#allocation2 + $0xe] sm:$0x3] %vm1537_vm7, %v1986_v58 }
0x3287   :  { %v7819_v5 = vld [vmem:[#allocation2 + $0x8] sm:$0xff] }
0x3288   :  { %v1999_v33 = vmul.f32 %v7702_v60, %v7819_v5 }
0x328a   :  { %v2003_v34 = vsel %vm213_vm3, %v1999_v33, 0.0 }
0x328b   :  { %2004 = vadd.xlane.f32.xlu0 %v2003_v34 }
0x32c3   :  { %v2718_v6 = vpop.permute.xlu1 %2717 }
0x32c4   :  { %v2720_v53 = vmul.f32 %v6882_v36, %v2718_v6 }
0x32c6   :  { %2722 = vrot.lane.b32.xlu1 %v2720_v53, %s7242_s24 }
0x3314   :  { %v2005_v3 = vpop.xlane.xlu0 %2004 }
0x3315   :  { %v2014_v44 = vadd.f32 %v7714_v18, %v2005_v3 }
0x3317   :  { %v6107_v8 = vmul.f32 -1.442695, %v2014_v44 }
0x3319   :  { %6883 = vpow2.f32 %v6107_v8 }
0x3326   :  { %v6884_v62 = vpop.eup %6883 }
0x3327   :  { %v2022_v60 = vadd.f32 1.0, %v6884_v62 }
0x3329   :  { %6885 = vrcp.f32 %v2022_v60 }
0x3336   :  { %v6886_v11 = vpop.eup %6885 }
0x3337   :  { %v2028_v9 = vmul.f32 0.9, %v6886_v11 }
0x3338   :  { %v2723_v14 = vpop.permute.xlu1 %2722 }
0x3339   :  { %v2725_v16 = vadd.f32 %v2723_v14, %v2715_v1  ;;  %2734 = vperm.xlu1 %6711, %v2028_v9  }
0x333b   :  { %6887 = vtanh.f32 %v2725_v16  ;;  %v2833_v43 = vrot.slane %v2725_v16, 6 }
0x3348   :  { %v6888_v17 = vpop.eup %6887 }
0x3349   :  { %2728 = vrot.lane.b32.xlu1 %v6888_v17, %s7242_s24 }
0x33b4   :  { %v7828_v19 = vpop.permute.xlu1 %2734 }
0x33b5   :  { %v2738_v18 = vmul.f32 %v7828_v19, %v7781_v32 }
0x33b7   :  { %2740 = vrot.lane.b32.xlu1 %v2738_v18, %s7256_s29 }
0x33bb   :  { %v2729_v2 = vpop.permute.xlu1 %2728 }
0x33bc   :  { %v2731_v20 = vmul.f32 %v6882_v36, %v2729_v2 }
0x3429   :  { %v2741_v45 = vpop.permute.xlu1 %2740 }
0x342a   :  { %v2743_v22 = vadd.f32 %v2741_v45, %v2731_v20 }
0x342c   :  { %2745 = vrot.lane.b32.xlu1 %v2743_v22, %s7254_s8  ;;  %v2852_v39 = vrot.slane %v2743_v22, 6 }
0x349e   :  { %v2746_v23 = vpop.permute.xlu1 %2745 }
0x349f   :  { %2748 = vst.msk [vmem:[#allocation3 + $0x8] sm:$0x3] %vm316_vm2, %v2746_v23  ;;  %6497 = vmatmul.mubr.msk.f32.vlgmr.msra.gmra.mxu1 %vm213_vm3, %v2746_v23 }
0x34a0   :  { %6507 = vmatpush3.msra.mxu1 %v7627_v27  ;;  %6510 = vmatprep.mubr.msk.f32.mxu1 %vm7252_vm0, %v7251_v0 }
0x34a1   :  { %6508 = vmatprep.subr.mxu1 %v7251_v0 }
0x34a2   :  { %6509 = vmatpush3.msra.mxu1 %v7630_v29 }
0x34a3   :  { %6520 = vmatprep.subr.mxu1 %v7251_v0 }
0x355f   :  { %v2817_v25 = vpop.f32.mrf.mxu1 }
0x3560   :  { %v2822_v4 = vrot.slane %v2817_v25, 6 }
0x3561   :  { %v6498_v31 = vpop.f32.mrf.mxu1 }
0x3562   :  { %v2824_v32 = vadd.f32 %v2822_v4, %v7812_v30 }
0x3564   :  { %6889 = vtanh.f32 %v2824_v32  ;;  %v6126_v27 = vmul.f32 -1.442695, %v2824_v32 }
0x3566   :  { %6891 = vpow2.f32 %v6126_v27 }
0x3571   :  { %v6890_v37 = vpop.eup %6889 }
0x3572   :  { %2837 = vrot.lane.b32.xlu1 %v6890_v37, %s7253_s0 }
0x3573   :  { %v6892_v41 = vpop.eup %6891 }
0x3574   :  { %v2828_v38 = vadd.f32 1.0, %v6892_v41 }
0x3576   :  { %2853 = vrot.lane.b32.xlu1 %v2852_v39, %s7254_s8  ;;  %6893 = vrcp.f32 %v2828_v38 }
0x3583   :  { %v6894_v29 = vpop.eup %6893 }
0x3584   :  { %v2835_v46 = vmul.f32 %v6894_v29, %v2833_v43 }
0x35e4   :  { %v2838_v42 = vpop.permute.xlu1 %2837 }
0x35e5   :  { %v2840_v24 = vmul.f32 %v6894_v29, %v2838_v42 }
0x35e7   :  { %2842 = vrot.lane.b32.xlu0 %v2840_v24, %s7242_s24 }
0x35e8   :  { %v2854_v7 = vpop.permute.xlu1 %2853 }
0x35e9   :  { %v2856_v50 = vmul.f32 %v2854_v7, %v7828_v19 }
0x3659   :  { %v2843_v10 = vpop.permute.xlu0 %2842 }
0x365a   :  { %v2845_v47 = vadd.f32 %v2843_v10, %v2835_v46  ;;  %v6108_v46 = vld [vmem:[#allocation6 + $0x1] ss:$0 sm:$0xff] }
0x365c   :  { %6895 = vtanh.f32 %v2845_v47  ;;  %v2954_v18 = vrot.slane %v2845_v47, 6 }
0x3669   :  { %v6896_v13 = vpop.eup %6895 }
0x366a   :  { %2848 = vrot.lane.b32.xlu1 %v6896_v13, %s7242_s24 }
0x366e   :  { %2858 = vrot.lane.b32.xlu1 %v2856_v50, %s7256_s29 }
0x36dc   :  { %v2849_v48 = vpop.permute.xlu1 %2848 }
0x36dd   :  { %v2851_v35 = vmul.f32 %v6894_v29, %v2849_v48 }
0x36e0   :  { %v2859_v51 = vpop.permute.xlu1 %2858 }
0x36e1   :  { %v7849_v52 = vadd.f32 %v2859_v51, %v2851_v35 }
0x36e3   :  { %v2867_v59 = vrot.slane %v7849_v52, 2  ;;  %v2973_v9 = vrot.slane %v7849_v52, 6 }
0x36e5   :  { %2868 = vrot.lane.b32.xlu1 %v2867_v59, %s7254_s8 }
0x3757   :  { %v2869_v56 = vpop.permute.xlu1 %2868 }
0x3758   :  { %6504 = vmatmul.mubr.msk.f32.vlgmr.msra.gmra.mxu0 %vm213_vm3, %v2869_v56 }
0x3759   :  { %6514 = vmatpush3.msra.mxu0 %v7853_v54  ;;  %6517 = vmatprep.mubr.msk.f32.mxu0 %vm7252_vm0, %v7251_v0 }
0x375a   :  { %6515 = vmatprep.subr.mxu0 %v7251_v0 }
0x375b   :  { %6516 = vmatpush3.msra.mxu0 %v7856_v55 }
0x375c   :  { %6518 = vmatmul.mubr.f32.vlgmr.msra.gmra.mxu0 %v7251_v0  ;;  %6527 = vmatprep.subr.mxu0 %v7251_v0 }
0x375d   :  { %6528 = vmatpush3.msra.mxu0 %v7853_v54  ;;  %6531 = vmatprep.mubr.msk.f32.mxu0 %vm7252_vm0, %v7251_v0 }
0x375e   :  { %6529 = vmatprep.subr.mxu0 %v7251_v0 }
0x375f   :  { %6530 = vmatpush3.msra.mxu0 %v7856_v55 }
0x3760   :  { %6541 = vmatprep.subr.mxu0 %v7251_v0 }
0x3818   :  { %v2938_v58 = vpop.f32.mrf.mxu0 }
0x3819   :  { %v2943_v33 = vrot.slane %v2938_v58, 4 }
0x381a   :  { %v6505_v34 = vpop.f32.mrf.mxu0 }
0x381b   :  { %v2945_v28 = vadd.f32 %v2943_v33, %v7812_v30 }
0x381c   :  { %v3178_v21 = vpop.f32.mrf.mxu0 }
0x381d   :  { %6897 = vtanh.f32 %v2945_v28  ;;  %v3183_v12 = vrot.slane %v3178_v21, 2  ;;  %v6128_v53 = vmul.f32 -1.442695, %v2945_v28 }
0x381e   :  { %v6519_v36 = vpop.f32.mrf.mxu0 }
0x381f   :  { %3184 = vrot.lane.b32.xlu1 %v3183_v12, %s7255_s2  ;;  %6899 = vpow2.f32 %v6128_v53  ;;  %v7927_v36 = vld [vmem:[%s8493_s5 + $0x1] ss:$0 sm:$0xff] }
0x382a   :  { %v6898_v6 = vpop.eup %6897 }
0x382b   :  { %2958 = vrot.lane.b32.xlu1 %v6898_v6, %s7253_s0 }
0x382c   :  { %v6900_v3 = vpop.eup %6899 }
0x382d   :  { %v2949_v44 = vadd.f32 1.0, %v6900_v3 }
0x382f   :  { %6901 = vrcp.f32 %v2949_v44 }
0x383c   :  { %v6902_v60 = vpop.eup %6901 }
0x383d   :  { %v2956_v2 = vmul.f32 %v6902_v60, %v2954_v18 }
0x3891   :  { %v3185_v8 = vpop.permute.xlu1 %3184 }
0x3892   :  { %v3187_v62 = vadd.f32 %v3185_v8, %v7812_v30 }
0x3894   :  { %6903 = vtanh.f32 %v3187_v62  ;;  %v6131_v14 = vmul.f32 -1.442695, %v3187_v62 }
0x3896   :  { %6905 = vpow2.f32 %v6131_v14 }
0x389d   :  { %v2959_v63 = vpop.permute.xlu1 %2958 }
0x389e   :  { %v2961_v11 = vmul.f32 %v6902_v60, %v2959_v63 }
0x38a0   :  { %2963 = vrot.lane.b32.xlu1 %v2961_v11, %s7242_s24 }
0x38a1   :  { %v6904_v1 = vpop.eup %6903 }
0x38a2   :  { %3197 = vrot.lane.b32.xlu0 %v6904_v1, %s7253_s0 }
0x38a3   :  { %v6906_v16 = vpop.eup %6905 }
0x38a4   :  { %2974 = vrot.lane.b32.xlu1 %v2973_v9, %s7254_s8  ;;  %v3191_v17 = vadd.f32 1.0, %v6906_v16 }
0x38a6   :  { %6907 = vrcp.f32 %v3191_v17 }
0x38b3   :  { %v6908_v22 = vpop.eup %6907 }
0x38b4   :  { %v3195_v37 = vmul.f32 0.0, %v6908_v22 }
0x3912   :  { %v2964_v20 = vpop.permute.xlu1 %2963 }
0x3913   :  { %v7879_v45 = vadd.f32 %v2964_v20, %v2956_v2 }
0x3914   :  { %v3198_v23 = vpop.permute.xlu0 %3197 }
0x3915   :  { %6909 = vtanh.f32 %v7879_v45  ;;  %v3200_v25 = vmul.f32 %v6908_v22, %v3198_v23 }
0x3916   :  { %v2975_v4 = vpop.permute.xlu1 %2974 }
0x3917   :  { %v2977_v31 = vmul.f32 %v2975_v4, %v7828_v19  ;;  %3202 = vrot.lane.b32.xlu0 %v3200_v25, %s7242_s24 }
0x3919   :  { %2979 = vrot.lane.b32.xlu1 %v2977_v31, %s7256_s29 }
0x3922   :  { %v6910_v32 = vpop.eup %6909 }
0x3923   :  { %2969 = vrot.lane.b32.xlu0 %v6910_v32, %s7242_s24 }
0x3989   :  { %v3203_v39 = vpop.permute.xlu0 %3202 }
0x398a   :  { %v7886_v27 = vadd.f32 %v3203_v39, %v3195_v37 }
0x398b   :  { %v2980_v29 = vpop.permute.xlu1 %2979 }
0x398c   :  { %6911 = vtanh.f32 %v7886_v27  ;;  %v3306_v18 = vrot.slane %v7886_v27, 2 }
0x3995   :  { %v2970_v41 = vpop.permute.xlu0 %2969 }
0x3996   :  { %v2972_v38 = vmul.f32 %v6902_v60, %v2970_v41 }
0x3998   :  { %v7889_v42 = vadd.f32 %v2980_v29, %v2972_v38 }
0x3999   :  { %v6912_v24 = vpop.eup %6911 }
0x399a   :  { %3208 = vrot.lane.b32.xlu0 %v6912_v24, %s7242_s24  ;;  %v2988_v43 = vrot.slane %v7889_v42, 4 }
0x399c   :  { %2989 = vrot.lane.b32.xlu1 %v2988_v43, %s7254_s8 }
0x39a0   :  { %2036 = vrot.lane.b32.xlu1 %v6108_v46, %s7242_s24 }
0x3a0c   :  { %v3209_v10 = vpop.permute.xlu0 %3208 }
0x3a0d   :  { %v7895_v47 = vmul.f32 %v6908_v22, %v3209_v10 }
0x3a0e   :  { %v2990_v13 = vpop.permute.xlu1 %2989 }
0x3a0f   :  { %v3217_v7 = vrot.slane %v7895_v47, 6  ;;  %6511 = vmatmul.mubr.msk.f32.vlgmr.msra.gmra.mxu1 %vm213_vm3, %v2990_v13  ;;  %v3330_v17 = vrot.slane %v7895_v47, 4 }
0x3a10   :  { %6521 = vmatpush3.msra.mxu1 %v7853_v54  ;;  %6524 = vmatprep.mubr.msk.f32.mxu1 %vm7252_vm0, %v7251_v0 }
0x3a11   :  { %3218 = vrot.lane.b32.xlu0 %v3217_v7, %s7256_s29  ;;  %6522 = vmatprep.subr.mxu1 %v7251_v0 }
0x3a12   :  { %v7904_v50 = vpop.permute.xlu1 %2036  ;;  %6523 = vmatpush3.msra.mxu1 %v7856_v55 }
0x3a13   :  { %v2039_v48 = vmul.f32 %v7904_v50, %v7704_v61  ;;  %6534 = vmatprep.subr.mxu1 %v7251_v0 }
0x3a15   :  { %2043 = vrot.lane.b32.xlu0 %v2039_v48, %s7259_s15 }
0x3a83   :  { %v3219_v35 = vpop.permute.xlu0 %3218 }
0x3a84   :  { %6525 = vmatmul.mubr.msk.f32.vlgmr.msra.gmra.mxu1 %vm213_vm3, %v3219_v35 }
0x3a85   :  { %6535 = vmatpush3.msra.mxu1 %v7853_v54  ;;  %6538 = vmatprep.mubr.msk.f32.mxu1 %vm7252_vm0, %v7251_v0 }
0x3a86   :  { %6536 = vmatprep.subr.mxu1 %v7251_v0 }
0x3a87   :  { %v2044_v51 = vpop.permute.xlu0 %2043  ;;  %6537 = vmatpush3.msra.mxu1 %v7856_v55 }
0x3a88   :  { %v2049_v61 = vsel %vm213_vm3, %v2044_v51, 0.0  ;;  %6548 = vmatprep.subr.mxu1 %v7251_v0 }
0x3a89   :  { %2050 = vadd.xlane.f32.xlu0 %v2049_v61 }
0x3acf   :  { %v7919_v59 = vpop.f32.mrf.mxu1 }
0x3ad1   :  { %v6512_v56 = vpop.f32.mrf.mxu1 }
0x3b12   :  { %v2051_v6 = vpop.xlane.xlu0 %2050 }
0x3b13   :  { %v2063_v53 = vadd.f32 %v7927_v36, %v2051_v6 }
0x3b15   :  { %v6111_v44 = vmul.f32 -1.442695, %v2063_v53 }
0x3b44   :  { %v3288_v58 = vpop.f32.mrf.mxu1 }
0x3b45   :  { %v3293_v33 = vrot.slane %v3288_v58, 4 }
0x3b46   :  { %v6526_v34 = vpop.f32.mrf.mxu1 }
0x3b47   :  { %3294 = vrot.lane.b32.xlu1 %v3293_v33, %s7255_s2 }
0x3bb9   :  { %v3295_v28 = vpop.permute.xlu1 %3294 }
0x3bba   :  { %v3297_v21 = vadd.f32 %v3295_v28, %v7812_v30 }
0x3bbc   :  { %6913 = vtanh.f32 %v3297_v21  ;;  %v6133_v3 = vmul.f32 -1.442695, %v3297_v21 }
0x3bbe   :  { %6915 = vpow2.f32 %v6133_v3 }
0x3bbf   :  { %6917 = vpow2.f32 %v6111_v44 }
0x3bc9   :  { %v6914_v12 = vpop.eup %6913 }
0x3bca   :  { %3310 = vrot.lane.b32.xlu1 %v6914_v12, %s7253_s0 }
0x3bcb   :  { %v6916_v8 = vpop.eup %6915 }
0x3bcc   :  { %v6918_v62 = vpop.eup %6917  ;;  %v3301_v60 = vadd.f32 1.0, %v6916_v8 }
0x3bcd   :  { %v2071_v63 = vadd.f32 1.0, %v6918_v62 }
0x3bce   :  { %6919 = vrcp.f32 %v3301_v60 }
0x3bcf   :  { %6921 = vrcp.f32 %v2071_v63 }
0x3bdb   :  { %v6920_v11 = vpop.eup %6919 }
0x3bdc   :  { %v6922_v14 = vpop.eup %6921  ;;  %v3308_v2 = vmul.f32 %v6920_v11, %v3306_v18 }
0x3bdd   :  { %v2077_v16 = vmul.f32 0.9, %v6922_v14 }
0x3c3c   :  { %v3311_v1 = vpop.permute.xlu1 %3310 }
0x3c3d   :  { %v3313_v9 = vmul.f32 %v6920_v11, %v3311_v1 }
0x3c3f   :  { %3315 = vrot.lane.b32.xlu1 %v3313_v9, %s7242_s24 }
0x3c43   :  { %3327 = vperm.xlu1 %6711, %v2077_v16  }
0x3c47   :  { %3331 = vrot.lane.b32.xlu1 %v3330_v17, %s7256_s29 }
0x3cb1   :  { %v3316_v20 = vpop.permute.xlu1 %3315 }
0x3cb2   :  { %v3318_v22 = vadd.f32 %v3316_v20, %v3308_v2 }
0x3cb4   :  { %6923 = vtanh.f32 %v3318_v22  ;;  %v3435_v33 = vrot.slane %v3318_v22, 2 }
0x3cbe   :  { %v7934_v23 = vpop.permute.xlu1 %3327 }
0x3cc1   :  { %v6924_v25 = vpop.eup %6923 }
0x3cc2   :  { %v3332_v4 = vpop.permute.xlu1 %3331  ;;  %3321 = vrot.lane.b32.xlu1 %v6924_v25, %s7242_s24 }
0x3cc3   :  { %v3334_v31 = vmul.f32 %v3332_v4, %v7934_v23 }
0x3cc5   :  { %v3336_v32 = vrot.slane %v3334_v31, 6 }
0x3cc7   :  { %3337 = vrot.lane.b32.xlu1 %v3336_v32, %s7254_s8 }
0x3d34   :  { %v3322_v37 = vpop.permute.xlu1 %3321 }
0x3d35   :  { %v3324_v39 = vmul.f32 %v6920_v11, %v3322_v37 }
0x3d39   :  { %v3338_v41 = vpop.permute.xlu1 %3337 }
0x3d3a   :  { %v7939_v38 = vadd.f32 %v3338_v41, %v3324_v39 }
0x3d3c   :  { %v3346_v27 = vrot.slane %v7939_v38, 4  ;;  %v3454_v6 = vmul.f32 %v7939_v38, %v7934_v23 }
0x3d3e   :  { %3347 = vrot.lane.b32.xlu1 %v3346_v27, %s7256_s29  ;;  %v3456_v3 = vrot.slane %v3454_v6, 2 }
0x3db0   :  { %v3348_v29 = vpop.permute.xlu1 %3347 }
0x3db1   :  { %6532 = vmatmul.mubr.msk.f32.vlgmr.msra.gmra.mxu0 %vm213_vm3, %v3348_v29 }
0x3db2   :  { %6542 = vmatpush3.msra.mxu0 %v7853_v54  ;;  %6545 = vmatprep.mubr.msk.f32.mxu0 %vm7252_vm0, %v7251_v0 }
0x3db3   :  { %6543 = vmatprep.subr.mxu0 %v7251_v0 }
0x3db4   :  { %6544 = vmatpush3.msra.mxu0 %v7856_v55 }
0x3db5   :  { %6555 = vmatprep.subr.mxu0 %v7251_v0 }
0x3e71   :  { %v3417_v24 = vpop.f32.mrf.mxu0 }
0x3e72   :  { %v3422_v43 = vrot.slane %v3417_v24, 6 }
0x3e73   :  { %v6533_v46 = vpop.f32.mrf.mxu0 }
0x3e74   :  { %3423 = vrot.lane.b32.xlu1 %v3422_v43, %s7255_s2 }
0x3ee6   :  { %v3424_v10 = vpop.permute.xlu1 %3423 }
0x3ee7   :  { %v3426_v13 = vadd.f32 %v3424_v10, %v7812_v30 }
0x3ee9   :  { %6925 = vtanh.f32 %v3426_v13  ;;  %v6135_v48 = vmul.f32 -1.442695, %v3426_v13  ;;  %v2040_v13 = vmul.f32 %v7904_v50, %v7819_v5 }
0x3eeb   :  { %6927 = vpow2.f32 %v6135_v48 }
0x3ef6   :  { %v6926_v7 = vpop.eup %6925 }
0x3ef7   :  { %3439 = vrot.lane.b32.xlu0 %v6926_v7, %s7253_s0 }
0x3ef8   :  { %v6928_v35 = vpop.eup %6927 }
0x3ef9   :  { %v3430_v51 = vadd.f32 1.0, %v6928_v35 }
0x3efb   :  { %6929 = vrcp.f32 %v3430_v51 }
0x3f08   :  { %v6930_v61 = vpop.eup %6929 }
0x3f09   :  { %v3437_v34 = vmul.f32 %v6930_v61, %v3435_v33 }
0x3f69   :  { %v3440_v56 = vpop.permute.xlu0 %3439 }
0x3f6a   :  { %v3442_v58 = vmul.f32 %v6930_v61, %v3440_v56 }
0x3f6c   :  { %3444 = vrot.lane.b32.xlu1 %v3442_v58, %s7242_s24 }
0x3fde   :  { %v3445_v28 = vpop.permute.xlu1 %3444 }
0x3fdf   :  { %v3447_v21 = vadd.f32 %v3445_v28, %v3437_v34 }
0x3fe1   :  { %6931 = vtanh.f32 %v3447_v21  ;;  %v3552_v37 = vrot.slane %v3447_v21, 2 }
0x3fee   :  { %v6932_v12 = vpop.eup %6931 }
0x3fef   :  { %3450 = vrot.lane.b32.xlu1 %v6932_v12, %s7242_s24 }
0x4061   :  { %v3451_v53 = vpop.permute.xlu1 %3450 }
0x4062   :  { %v3453_v44 = vmul.f32 %v6930_v61, %v3451_v53 }
0x4064   :  { %v7957_v8 = vadd.f32 %v3456_v3, %v3453_v44 }
0x4066   :  { %v3464_v62 = vrot.slane %v7957_v8, 2  ;;  %v3571_v16 = vrot.slane %v7957_v8, 4 }
0x4068   :  { %3465 = vrot.lane.b32.xlu1 %v3464_v62, %s7256_s29 }
0x40da   :  { %v3466_v60 = vpop.permute.xlu1 %3465 }
0x40db   :  { %6539 = vmatmul.mubr.msk.f32.vlgmr.msra.gmra.mxu1 %vm213_vm3, %v3466_v60 }
0x40dc   :  { %6549 = vmatpush3.msra.mxu1 %v7853_v54  ;;  %6552 = vmatprep.mubr.msk.f32.mxu1 %vm7252_vm0, %v7251_v0 }
0x40dd   :  { %6550 = vmatprep.subr.mxu1 %v7251_v0 }
0x40de   :  { %6551 = vmatpush3.msra.mxu1 %v7856_v55 }
0x40df   :  { %6562 = vmatprep.subr.mxu1 %v7251_v0 }
0x419b   :  { %v3535_v63 = vpop.f32.mrf.mxu1 }
0x419c   :  { %3540 = vrot.lane.b32.xlu1 %v3535_v63, %s7255_s2 }
0x419d   :  { %v6540_v11 = vpop.f32.mrf.mxu1 }
0x420e   :  { %v3541_v1 = vpop.permute.xlu1 %3540 }
0x420f   :  { %v3543_v9 = vadd.f32 %v3541_v1, %v7812_v30 }
0x4211   :  { %6933 = vtanh.f32 %v3543_v9  ;;  %v6137_v17 = vmul.f32 -1.442695, %v3543_v9 }
0x4213   :  { %6935 = vpow2.f32 %v6137_v17 }
0x421e   :  { %v6934_v14 = vpop.eup %6933 }
0x421f   :  { %3556 = vrot.lane.b32.xlu1 %v6934_v14, %s7253_s0 }
0x4220   :  { %v6936_v18 = vpop.eup %6935 }
0x4221   :  { %v3547_v2 = vadd.f32 1.0, %v6936_v18 }
0x4223   :  { %3572 = vrot.lane.b32.xlu1 %v3571_v16, %s7256_s29  ;;  %6937 = vrcp.f32 %v3547_v2 }
0x4230   :  { %v6938_v20 = vpop.eup %6937 }
0x4231   :  { %v3554_v39 = vmul.f32 %v6938_v20, %v3552_v37 }
0x4291   :  { %v3557_v22 = vpop.permute.xlu1 %3556 }
0x4292   :  { %v3559_v25 = vmul.f32 %v6938_v20, %v3557_v22 }
0x4294   :  { %3561 = vrot.lane.b32.xlu0 %v3559_v25, %s7242_s24 }
0x4295   :  { %v3573_v4 = vpop.permute.xlu1 %3572 }
0x4296   :  { %v3575_v31 = vmul.f32 %v3573_v4, %v7934_v23 }
0x4298   :  { %v3577_v32 = vrot.slane %v3575_v31, 6 }
0x429a   :  { %3578 = vrot.lane.b32.xlu1 %v3577_v32, %s7254_s8 }
0x4306   :  { %v3562_v41 = vpop.permute.xlu0 %3561 }
0x4307   :  { %v3564_v27 = vadd.f32 %v3562_v41, %v3554_v39 }
0x4309   :  { %6939 = vtanh.f32 %v3564_v27  ;;  %v3675_v1 = vrot.slane %v3564_v27, 2 }
0x430c   :  { %v3579_v46 = vpop.permute.xlu1 %3578 }
0x4316   :  { %v6940_v29 = vpop.eup %6939 }
0x4317   :  { %3567 = vrot.lane.b32.xlu0 %v6940_v29, %s7242_s24 }
0x4389   :  { %v3568_v24 = vpop.permute.xlu0 %3567 }
0x438a   :  { %v3570_v43 = vmul.f32 %v6938_v20, %v3568_v24 }
0x438c   :  { %v7977_v10 = vadd.f32 %v3579_v46, %v3570_v43 }
0x438e   :  { %3587 = vrot.lane.b32.xlu0 %v7977_v10, %s7256_s29 }
0x4392   :  { %2045 = vrot.lane.b32.xlu0 %v2040_v13, %s7259_s15 }
0x4400   :  { %v3588_v7 = vpop.permute.xlu0 %3587 }
0x4401   :  { %6546 = vmatmul.mubr.msk.f32.vlgmr.msra.gmra.mxu0 %vm213_vm3, %v3588_v7 }
0x4402   :  { %6556 = vmatpush3.msra.mxu0 %v7853_v54  ;;  %6559 = vmatprep.mubr.msk.f32.mxu0 %vm7252_vm0, %v7251_v0 }
0x4403   :  { %6557 = vmatprep.subr.mxu0 %v7251_v0 }
0x4404   :  { %v2046_v48 = vpop.permute.xlu0 %2045  ;;  %6558 = vmatpush3.msra.mxu0 %v7856_v55 }
0x4405   :  { %v2052_v35 = vsel %vm213_vm3, %v2046_v48, 0.0 }
0x4406   :  { %2053 = vadd.xlane.f32.xlu0 %v2052_v35 }
0x448f   :  { %v2054_v33 = vpop.xlane.xlu0 %2053 }
0x4490   :  { %v2064_v34 = vadd.f32 %v7927_v36, %v2054_v33 }
0x4492   :  { %v6112_v21 = vmul.f32 -1.442695, %v2064_v34 }
0x44c1   :  { %v3657_v51 = vpop.f32.mrf.mxu0 }
0x44c2   :  { %v3662_v5 = vrot.slane %v3657_v51, 2 }
0x44c3   :  { %v6547_v50 = vpop.f32.mrf.mxu0 }
0x44c4   :  { %3663 = vrot.lane.b32.xlu1 %v3662_v5, %s7255_s2 }
0x4536   :  { %v3664_v61 = vpop.permute.xlu1 %3663 }
0x4537   :  { %v3666_v56 = vadd.f32 %v3664_v61, %v7660_v40 }
0x4539   :  { %6941 = vtanh.f32 %v3666_v56  ;;  %v6139_v28 = vmul.f32 -1.442695, %v3666_v56 }
0x453b   :  { %6943 = vpow2.f32 %v6139_v28 }
0x453c   :  { %6945 = vpow2.f32 %v6112_v21 }
0x4546   :  { %v6942_v58 = vpop.eup %6941 }
0x4547   :  { %3679 = vrot.lane.b32.xlu1 %v6942_v58, %s7253_s0 }
0x4548   :  { %v6944_v12 = vpop.eup %6943 }
0x4549   :  { %v6946_v6 = vpop.eup %6945  ;;  %v3670_v53 = vadd.f32 1.0, %v6944_v12 }
0x454a   :  { %v2072_v3 = vadd.f32 1.0, %v6946_v6 }
0x454b   :  { %6947 = vrcp.f32 %v3670_v53 }
0x454c   :  { %6949 = vrcp.f32 %v2072_v3 }
0x4558   :  { %v6948_v44 = vpop.eup %6947 }
0x4559   :  { %v6950_v63 = vpop.eup %6949  ;;  %v3677_v36 = vmul.f32 %v6948_v44, %v3675_v1 }
0x455a   :  { %v2078_v11 = vmul.f32 0.9, %v6950_v63 }
0x45b9   :  { %v3680_v62 = vpop.permute.xlu1 %3679 }
0x45ba   :  { %v3682_v60 = vmul.f32 %v6948_v44, %v3680_v62 }
0x45bc   :  { %3684 = vrot.lane.b32.xlu1 %v3682_v60, %s7242_s24 }
0x45c0   :  { %3696 = vperm.xlu1 %6711, %v2078_v11  }
0x462e   :  { %v3685_v9 = vpop.permute.xlu1 %3684 }
0x462f   :  { %v3687_v14 = vadd.f32 %v3685_v9, %v3677_v36 }
0x4631   :  { %6951 = vtanh.f32 %v3687_v14  ;;  %v3798_v48 = vrot.slane %v3687_v14, 2 }
0x463b   :  { %v7997_v17 = vpop.permute.xlu1 %3696 }
0x463c   :  { %v3699_v18 = vmul.f32 %v7997_v17, %v7977_v10 }
0x463e   :  { %v6952_v16 = vpop.eup %6951  ;;  %v3701_v20 = vrot.slane %v3699_v18, 2 }
0x463f   :  { %3690 = vrot.lane.b32.xlu1 %v6952_v16, %s7242_s24 }
0x46b1   :  { %v3691_v2 = vpop.permute.xlu1 %3690 }
0x46b2   :  { %v3693_v22 = vmul.f32 %v6948_v44, %v3691_v2 }
0x46b4   :  { %v8001_v25 = vadd.f32 %v3701_v20, %v3693_v22 }
0x46b6   :  { %v3709_v4 = vrot.slane %v8001_v25, 6  ;;  %v3817_v7 = vrot.slane %v8001_v25, 4 }
0x46b8   :  { %3710 = vrot.lane.b32.xlu1 %v3709_v4, %s7256_s29 }
0x472a   :  { %v3711_v31 = vpop.permute.xlu1 %3710 }
0x472b   :  { %6553 = vmatmul.mubr.msk.f32.vlgmr.msra.gmra.mxu1 %vm213_vm3, %v3711_v31  ;;  %v3064_v31 = vrot.slane %v7919_v59, 2 }
0x472c   :  { %6563 = vmatpush3.msra.mxu1 %v7853_v54  ;;  %6566 = vmatprep.mubr.msk.f32.mxu1 %vm7252_vm0, %v7251_v0 }
0x472d   :  { %6564 = vmatprep.subr.mxu1 %v7251_v0 }
0x472e   :  { %6565 = vmatpush3.msra.mxu1 %v7856_v55 }
0x472f   :  { %6580 = vmatprep.subr.mxu1 %v7251_v0 }
0x47eb   :  { %v3780_v32 = vpop.f32.mrf.mxu1 }
0x47ec   :  { %v3785_v37 = vrot.slane %v3780_v32, 4  ;;  %v3066_v32 = vadd.f32 %v3064_v31, %v7812_v30  ;;  %v8084_v31 = vld [vmem:[#allocation12 + $0x8] sm:$0xff] }
0x47ed   :  { %v6554_v39 = vpop.f32.mrf.mxu1 }
0x47ee   :  { %3786 = vrot.lane.b32.xlu1 %v3785_v37, %s7255_s2 }
0x4860   :  { %v3787_v41 = vpop.permute.xlu1 %3786 }
0x4861   :  { %v3789_v27 = vadd.f32 %v3787_v41, %v7660_v40 }
0x4863   :  { %6953 = vtanh.f32 %v3789_v27  ;;  %v6141_v54 = vmul.f32 -1.442695, %v3789_v27 }
0x4865   :  { %6955 = vpow2.f32 %v6141_v54 }
0x4870   :  { %v6954_v29 = vpop.eup %6953 }
0x4871   :  { %3802 = vrot.lane.b32.xlu1 %v6954_v29, %s7253_s0 }
0x4872   :  { %v6956_v24 = vpop.eup %6955 }
0x4873   :  { %v3793_v43 = vadd.f32 1.0, %v6956_v24 }
0x4875   :  { %6957 = vrcp.f32 %v3793_v43  ;;  %v6130_v43 = vmul.f32 -1.442695, %v3066_v32 }
0x4882   :  { %v6958_v55 = vpop.eup %6957 }
0x4883   :  { %v3800_v35 = vmul.f32 %v6958_v55, %v3798_v48 }
0x48e3   :  { %v3803_v46 = vpop.permute.xlu1 %3802 }
0x48e4   :  { %v3805_v13 = vmul.f32 %v6958_v55, %v3803_v46 }
0x48e6   :  { %3807 = vrot.lane.b32.xlu1 %v3805_v13, %s7242_s24 }
0x48ea   :  { %3818 = vrot.lane.b32.xlu1 %v3817_v7, %s7256_s29 }
0x4958   :  { %v3808_v51 = vpop.permute.xlu1 %3807 }
0x4959   :  { %v3810_v5 = vadd.f32 %v3808_v51, %v3800_v35  ;;  %v3075_v35 = vrot.slane %v7879_v45, 6 }
0x495b   :  { %6959 = vtanh.f32 %v3810_v5  ;;  %v3922_v18 = vrot.slane %v3810_v5, 2 }
0x495c   :  { %v3819_v50 = vpop.permute.xlu1 %3818 }
0x495d   :  { %v3821_v61 = vmul.f32 %v3819_v50, %v7997_v17 }
0x495f   :  { %v3823_v56 = vrot.slane %v3821_v61, 6 }
0x4961   :  { %3824 = vrot.lane.b32.xlu1 %v3823_v56, %s7254_s8 }
0x4968   :  { %v6960_v58 = vpop.eup %6959 }
0x4969   :  { %3813 = vrot.lane.b32.xlu0 %v6960_v58, %s7242_s24 }
0x49d3   :  { %v3825_v28 = vpop.permute.xlu1 %3824 }
0x49db   :  { %v3814_v33 = vpop.permute.xlu0 %3813 }
0x49dc   :  { %v3816_v34 = vmul.f32 %v6958_v55, %v3814_v33 }
0x49de   :  { %v8021_v21 = vadd.f32 %v3825_v28, %v3816_v34 }
0x49e0   :  { %v3833_v12 = vrot.slane %v8021_v21, 4  ;;  %v3941_v37 = vmul.f32 %v8021_v21, %v7997_v17 }
0x49e2   :  { %3834 = vrot.lane.b32.xlu1 %v3833_v12, %s7256_s29  ;;  %v3943_v41 = vrot.slane %v3941_v37, 2 }
0x4a54   :  { %v3835_v6 = vpop.permute.xlu1 %3834 }
0x4a55   :  { %6560 = vmatmul.mubr.msk.f32.vlgmr.msra.gmra.mxu0 %vm213_vm3, %v3835_v6 }
0x4b15   :  { %v3904_v53 = vpop.f32.mrf.mxu0 }
0x4b16   :  { %v3909_v3 = vrot.slane %v3904_v53, 6 }
0x4b17   :  { %v6561_v44 = vpop.f32.mrf.mxu0 }
0x4b18   :  { %3910 = vrot.lane.b32.xlu1 %v3909_v3, %s7255_s2 }
0x4b8a   :  { %v3911_v62 = vpop.permute.xlu1 %3910 }
0x4b8b   :  { %v3913_v60 = vadd.f32 %v3911_v62, %v7660_v40  ;;  %v3094_v62 = vrot.slane %v7889_v42, 6 }
0x4b8d   :  { %6961 = vtanh.f32 %v3913_v60  ;;  %v6143_v11 = vmul.f32 -1.442695, %v3913_v60 }
0x4b8f   :  { %6963 = vpow2.f32 %v6143_v11 }
0x4b9a   :  { %v6962_v63 = vpop.eup %6961 }
0x4b9b   :  { %3926 = vrot.lane.b32.xlu1 %v6962_v63, %s7253_s0 }
0x4b9c   :  { %v6964_v1 = vpop.eup %6963 }
0x4b9d   :  { %v3917_v36 = vadd.f32 1.0, %v6964_v1 }
0x4b9f   :  { %6965 = vrcp.f32 %v3917_v36 }
0x4bac   :  { %v6966_v9 = vpop.eup %6965 }
0x4bad   :  { %v3924_v2 = vmul.f32 %v6966_v9, %v3922_v18 }
0x4c0d   :  { %v3927_v14 = vpop.permute.xlu1 %3926 }
0x4c0e   :  { %v3929_v16 = vmul.f32 %v6966_v9, %v3927_v14 }
0x4c10   :  { %3931 = vrot.lane.b32.xlu1 %v3929_v16, %s7242_s24 }
0x4c82   :  { %v3932_v20 = vpop.permute.xlu1 %3931 }
0x4c83   :  { %v3934_v22 = vadd.f32 %v3932_v20, %v3924_v2  ;;  %v4078_v20 = vld [vmem:[#allocation11 + $0x10] sm:$0xff] }
0x4c85   :  { %6967 = vtanh.f32 %v3934_v22  ;;  %v4039_v60 = vrot.slane %v3934_v22, 2 }
0x4c86   :  { %6969 = vtanh.f32 %v3066_v32 }
0x4c87   :  { %6971 = vpow2.f32 %v6130_v43 }
0x4c92   :  { %v6968_v4 = vpop.eup %6967 }
0x4c93   :  { %3937 = vrot.lane.b32.xlu0 %v6968_v4, %s7242_s24  ;;  %v6970_v24 = vpop.eup %6969  ;;  %v4076_v4 = vld [vmem:[#allocation11] sm:$0xff] }
0x4c94   :  { %v6972_v59 = vpop.eup %6971 }
0x4c95   :  { %v3070_v30 = vadd.f32 1.0, %v6972_v59 }
0x4c97   :  { %6973 = vrcp.f32 %v3070_v30 }
0x4ca4   :  { %v6974_v46 = vpop.eup %6973 }
0x4ca5   :  { %v3077_v51 = vmul.f32 %v6974_v46, %v3075_v35  ;;  %v6146_v35 = vld [vmem:[%s8499_s11] ss:$0 sm:$0xff] }
0x4d05   :  { %v3938_v39 = vpop.permute.xlu0 %3937 }
0x4d06   :  { %v3940_v27 = vmul.f32 %v6966_v9, %v3938_v39 }
0x4d08   :  { %v8035_v29 = vadd.f32 %v3943_v41, %v3940_v27 }
0x4d0a   :  { %v3951_v54 = vrot.slane %v8035_v29, 2  ;;  %v4058_v48 = vrot.slane %v8035_v29, 4 }
0x4d0c   :  { %3952 = vrot.lane.b32.xlu1 %v3951_v54, %s7256_s29 }
0x4d10   :  { %3079 = vrot.lane.b32.xlu1 %v6970_v24, %s7253_s0 }
0x4d7e   :  { %v3953_v55 = vpop.permute.xlu1 %3952 }
0x4d7f   :  { %6567 = vmatmul.mubr.msk.f32.vlgmr.msra.gmra.mxu1 %vm213_vm3, %v3953_v55 }
0x4d80   :  { %6584 = vmatprep.mubr.msk.f32.mxu1 %vm7252_vm0, %v7251_v0  ;;  %6581 = vmatpush3.msra.mxu1 %v8084_v31 }
0x4d81   :  { %6582 = vmatprep.subr.mxu1 %v7251_v0 }
0x4d82   :  { %v3080_v13 = vpop.permute.xlu1 %3079 }
0x4d83   :  { %v3082_v7 = vmul.f32 %v6974_v46, %v3080_v13 }
0x4d85   :  { %3084 = vrot.lane.b32.xlu1 %v3082_v7, %s7242_s24 }
0x4d89   :  { %4059 = vrot.lane.b32.xlu1 %v4058_v48, %s7256_s29 }
0x4df7   :  { %v3085_v5 = vpop.permute.xlu1 %3084 }
0x4df8   :  { %v3087_v50 = vadd.f32 %v3085_v5, %v3077_v51 }
0x4dfa   :  { %6975 = vtanh.f32 %v3087_v50 }
0x4dfb   :  { %v4060_v9 = vpop.permute.xlu1 %4059 }
0x4dfc   :  { %v4062_v14 = vmul.f32 %v4060_v9, %v7997_v17 }
0x4dfe   :  { %v4064_v18 = vrot.slane %v4062_v14, 6 }
0x4e07   :  { %v6976_v61 = vpop.eup %6975 }
0x4e08   :  { %3090 = vrot.lane.b32.xlu1 %v6976_v61, %s7242_s24 }
0x4e3f   :  { %v4022_v56 = vpop.f32.mrf.mxu1 }
0x4e40   :  { %4027 = vrot.lane.b32.xlu0 %v4022_v56, %s7255_s2 }
0x4e41   :  { %v6568_v58 = vpop.f32.mrf.mxu1 }
0x4eb2   :  { %v4028_v33 = vpop.permute.xlu0 %4027 }
0x4eb3   :  { %v4030_v34 = vadd.f32 %v4028_v33, %v7660_v40 }
0x4eb5   :  { %6977 = vtanh.f32 %v4030_v34  ;;  %v6145_v12 = vmul.f32 -1.442695, %v4030_v34 }
0x4eb7   :  { %6979 = vpow2.f32 %v6145_v12 }
0x4ec2   :  { %v6978_v28 = vpop.eup %6977 }
0x4ec3   :  { %4043 = vrot.lane.b32.xlu0 %v6978_v28, %s7253_s0 }
0x4ec4   :  { %v6980_v45 = vpop.eup %6979 }
0x4ec5   :  { %v4034_v6 = vadd.f32 1.0, %v6980_v45 }
0x4ec7   :  { %6981 = vrcp.f32 %v4034_v6 }
0x4ed4   :  { %v6982_v53 = vpop.eup %6981 }
0x4ed5   :  { %v4041_v40 = vmul.f32 %v6982_v53, %v4039_v60 }
0x4f35   :  { %v4044_v3 = vpop.permute.xlu0 %4043 }
0x4f36   :  { %v4046_v44 = vmul.f32 %v6982_v53, %v4044_v3 }
0x4f38   :  { %4048 = vrot.lane.b32.xlu0 %v4046_v44, %s7242_s24 }
0x4f3c   :  { %3095 = vrot.lane.b32.xlu0 %v3094_v62, %s7254_s8 }
0x4faa   :  { %v4049_v63 = vpop.permute.xlu0 %4048 }
0x4fab   :  { %v4051_v11 = vadd.f32 %v4049_v63, %v4041_v40 }
0x4fad   :  { %6983 = vtanh.f32 %v4051_v11 }
0x4fae   :  { %v3096_v1 = vpop.permute.xlu0 %3095 }
0x4faf   :  { %v3098_v36 = vmul.f32 %v3096_v1, %v7828_v19 }
0x4fb1   :  { %3100 = vrot.lane.b32.xlu1 %v3098_v36, %s7256_s29 }
0x4fb5   :  { %2383 = vrot.lane.b32.xlu1 %v7726_v57, %s7254_s8  ;;  %v3091_v57 = vpop.permute.xlu1 %3090 }
0x4fb9   :  { %2625 = vrot.lane.b32.xlu1 %v7774_v15, %s7254_s8  ;;  %v3093_v15 = vmul.f32 %v6974_v46, %v3091_v57 }
0x4fba   :  { %v6984_v16 = vpop.eup %6983 }
0x4fbb   :  { %4054 = vrot.lane.b32.xlu0 %v6984_v16, %s7242_s24 }
0x4fbd   :  { %2984 = vrot.lane.b32.xlu1 %v7889_v42, %s7254_s8 }
0x4fbf   :  { %4065 = vrot.lane.b32.xlu0 %v4064_v18, %s7254_s8 }
0x4fc1   :  { %3705 = vrot.lane.b32.xlu1 %v8001_v25, %s7257_s6 }
0x4fc3   :  { %2504 = vrot.lane.b32.xlu0 %v7745_v26, %s7254_s8  ;;  %v4079_v26 = vld [vmem:[#allocation11 + $0x18] sm:$0xff] }
0x4fc4   :  { %6569 = vmatprep.subr.mxu0 %v4079_v26 }
0x4fc5   :  { %3947 = vrot.lane.b32.xlu1 %v8035_v29, %s7257_s6  ;;  %6570 = vmatpush3.msra.mxu0 %v4079_v26 }
0x4fc6   :  { %6571 = vmatprep.subr.mxu0 %v4078_v20 }
0x4fc7   :  { %2863 = vrot.lane.b32.xlu0 %v7849_v52, %s7254_s8  ;;  %6572 = vmatpush3.msra.mxu0 %v4078_v20 }
0x4fc9   :  { %3213 = vrot.lane.b32.xlu1 %v7895_v47, %s7257_s6  ;;  %v4077_v47 = vld [vmem:[#allocation11 + $0x8] sm:$0xff] }
0x4fca   :  { %6573 = vmatprep.subr.mxu0 %v4077_v47 }
0x4fcb   :  { %6574 = vmatpush3.msra.mxu0 %v4077_v47 }
0x4fcc   :  { %6575 = vmatprep.subr.mxu0 %v4076_v4 }
0x4fcd   :  { %3460 = vrot.lane.b32.xlu1 %v7957_v8, %s7257_s6  ;;  %6576 = vmatpush3.msra.mxu0 %v4076_v4 }
0x4fce   :  { %6594 = vmatprep.subr.mxu0 %v7251_v0 }
0x5023   :  { %v3101_v42 = vpop.permute.xlu1 %3100 }
0x5024   :  { %v3103_v2 = vadd.f32 %v3101_v42, %v3093_v15 }
0x5026   :  { %3105 = vrot.lane.b32.xlu0 %v3103_v2, %s7254_s8 }
0x5027   :  { %v2384_v25 = vpop.permute.xlu1 %2383 }
0x5028   :  { %2386 = vst.msk [vmem:[#allocation3] sm:$0xc] %vm425_vm4, %v2384_v25 }
0x502a   :  { %3829 = vrot.lane.b32.xlu0 %v8021_v21, %s7257_s6 }
0x502b   :  { %v2626_v52 = vpop.permute.xlu1 %2625 }
0x502c   :  { %2628 = vst.msk [vmem:[#allocation3] sm:$0xc0] %vm649_vm5, %v2626_v52 }
0x502d   :  { %v4055_v8 = vpop.permute.xlu0 %4054 }
0x502e   :  { %3342 = vrot.lane.b32.xlu0 %v7939_v38, %s7257_s6  ;;  %v4057_v21 = vmul.f32 %v6982_v53, %v4055_v8  ;;  %v8089_v38 = vld [vmem:[#allocation12] sm:$0xff] }
0x502f   :  { %v2985_v22 = vpop.permute.xlu1 %2984  ;;  %6583 = vmatpush3.msra.mxu1 %v8089_v38 }
0x5030   :  { %2987 = vst.msk [vmem:[#allocation3 + $0x8] sm:$0x30] %vm537_vm8, %v2985_v22  ;;  %6585 = vmatmul.mubr.f32.vlgmr.msra.gmra.mxu1 %v7251_v0  ;;  %6587 = vmatprep.subr.mxu1 %v7251_v0 }
0x5031   :  { %v4066_v32 = vpop.permute.xlu0 %4065  ;;  %6588 = vmatpush3.msra.mxu1 %v8084_v31  ;;  %6591 = vmatprep.mubr.msk.f32.mxu1 %vm7252_vm0, %v7251_v0 }
0x5032   :  { %v4068_v37 = vadd.f32 %v4066_v32, %v4057_v21  ;;  %6589 = vmatprep.subr.mxu1 %v7251_v0 }
0x5033   :  { %v3706_v39 = vpop.permute.xlu1 %3705  ;;  %6590 = vmatpush3.msra.mxu1 %v8089_v38 }
0x5034   :  { %3708 = vst.msk [vmem:[#allocation3] sm:$0xc0] %vm1196_vm9, %v3706_v39  ;;  %4070 = vrot.lane.b32.xlu0 %v4068_v37, %s7257_s6  ;;  %6601 = vmatprep.subr.mxu1 %v7251_v0 }
0x5035   :  { %v2505_v41 = vpop.permute.xlu0 %2504 }
0x5036   :  { %2507 = vst.msk [vmem:[#allocation3] sm:$0x30] %vm537_vm8, %v2505_v41 }
0x5037   :  { %v3948_v27 = vpop.permute.xlu1 %3947 }
0x5038   :  { %3950 = vst.msk [vmem:[#allocation3] sm:$0xc] %vm1424_vm10, %v3948_v27  ;;  %3583 = vrot.lane.b32.xlu0 %v7977_v10, %s7257_s6 }
0x5039   :  { %v2864_v29 = vpop.permute.xlu0 %2863 }
0x503a   :  { %2866 = vst.msk [vmem:[#allocation3 + $0x8] sm:$0xc] %vm425_vm4, %v2864_v29 }
0x503b   :  { %v3214_v54 = vpop.permute.xlu1 %3213 }
0x503f   :  { %v3461_v24 = vpop.permute.xlu1 %3460 }
0x5040   :  { %3463 = vst.msk [vmem:[#allocation3 + $0x8] sm:$0xc] %vm1424_vm10, %v3461_v24 }
0x5098   :  { %v3106_v43 = vpop.permute.xlu0 %3105 }
0x5099   :  { %3108 = vst.msk [vmem:[#allocation3 + $0x8] sm:$0xc0] %vm649_vm5, %v3106_v43 }
0x509a   :  { %3216 = vst.msk [vmem:[#allocation3 + $0x8] sm:$0xc0] %vm1196_vm9, %v3214_v54 }
0x509c   :  { %v3830_v59 = vpop.permute.xlu0 %3829 }
0x509d   :  { %3832 = vst.msk [vmem:[#allocation3] sm:$0x30] %vm1310_vm6, %v3830_v59 }
0x50a0   :  { %v3343_v10 = vpop.permute.xlu0 %3342 }
0x50a1   :  { %3345 = vst.msk [vmem:[#allocation3 + $0x8] sm:$0x30] %vm1310_vm6, %v3343_v10 }
0x50a6   :  { %v4071_v30 = vpop.permute.xlu0 %4070 }
0x50a7   :  { %4073 = vst.msk [vmem:[#allocation3] sm:$0x3] %vm1537_vm7, %v4071_v30 }
0x50aa   :  { %v3584_v55 = vpop.permute.xlu0 %3583 }
0x50ab   :  { %3586 = vst.msk [vmem:[#allocation3 + $0x8] sm:$0x3] %vm1537_vm7, %v3584_v55 }
0x50ae   :  { %v4074_v46 = vld [vmem:[#allocation3] sm:$0xff] }
0x50af   :  { %6577 = vmatprep.mubr.msk.f32.mxu0 %vm4087_vm11, %v4074_v46 }
0x50b2   :  { %v4075_v13 = vld [vmem:[#allocation3 + $0x8] sm:$0xff] }
0x50b3   :  { %6578 = vmatmul.mubr.msk.f32.vlgmr.msra.gmra.mxu0 %vm4087_vm11, %v4075_v13 }
0x50b4   :  { %6595 = vmatpush3.msra.mxu0 %v8084_v31  ;;  %6598 = vmatprep.mubr.msk.f32.mxu0 %vm7252_vm0, %v7251_v0 }
0x50b5   :  { %6596 = vmatprep.subr.mxu0 %v7251_v0 }
0x50b6   :  { %6597 = vmatpush3.msra.mxu0 %v8089_v38 }
0x50b7   :  { %6608 = vmatprep.subr.mxu0 %v7251_v0 }
0x50f0   :  { %v4237_v7 = vpop.f32.mrf.mxu1 }
0x50f2   :  { %v6586_v48 = vpop.f32.mrf.mxu1 }
0x5173   :  { %v6579_v51 = vpop.f32.mrf.mxu0 }
0x5174   :  { %v8124_v5 = vadd.f32 %v6579_v51, %v6146_v35 }
0x5175   :  { %v4160_v50 = vpop.f32.mrf.mxu0 }
0x5176   :  { %v8126_v61 = vadd.f32 %v6146_v35, %v4160_v50 }
0x5178   :  { %v4241_v56 = vadd.f32 %v4237_v7, %v8126_v61 }
0x517a   :  { %6985 = vtanh.f32 %v4241_v56  ;;  %v6149_v33 = vmul.f32 -1.442695, %v4241_v56 }
0x517c   :  { %6987 = vpow2.f32 %v6149_v33 }
0x5187   :  { %v6986_v58 = vpop.eup %6985 }
0x5188   :  { %4251 = vrot.lane.b32.xlu1 %v6986_v58, %s7253_s0 }
0x5189   :  { %v6988_v34 = vpop.eup %6987 }
0x518a   :  { %v4245_v28 = vadd.f32 1.0, %v6988_v34 }
0x518c   :  { %6989 = vrcp.f32 %v4245_v28 }
0x5199   :  { %v6990_v12 = vpop.eup %6989 }
0x519a   :  { %v4249_v53 = vmul.f32 0.0, %v6990_v12 }
0x51fa   :  { %v4252_v45 = vpop.permute.xlu1 %4251 }
0x51fb   :  { %v4254_v6 = vmul.f32 %v6990_v12, %v4252_v45 }
0x51fd   :  { %4256 = vrot.lane.b32.xlu0 %v4254_v6, %s7242_s24 }
0x526f   :  { %v4257_v3 = vpop.permute.xlu0 %4256 }
0x5270   :  { %v4259_v44 = vadd.f32 %v4257_v3, %v4249_v53 }
0x5272   :  { %6991 = vtanh.f32 %v4259_v44  ;;  %v4355_v20 = vrot.slane %v4259_v44, 6 }
0x527f   :  { %v6992_v62 = vpop.eup %6991 }
0x5280   :  { %4262 = vrot.lane.b32.xlu1 %v6992_v62, %s7242_s24 }
0x52f2   :  { %v4263_v60 = vpop.permute.xlu1 %4262 }
0x52f3   :  { %v4265_v40 = vmul.f32 %v6990_v12, %v4263_v60 }
0x52f5   :  { %4267 = vrot.lane.b32.xlu0 %v4265_v40, %s7254_s8  ;;  %v4374_v16 = vrot.slane %v4265_v40, 6 }
0x5367   :  { %v4268_v63 = vpop.permute.xlu0 %4267 }
0x5368   :  { %4270 = vst.msk [vmem:[%s8500_s12] sm:$0x3] %vm316_vm2, %v4268_v63  ;;  %6592 = vmatmul.mubr.msk.f32.vlgmr.msra.gmra.mxu1 %vm213_vm3, %v4268_v63 }
0x5369   :  { %6602 = vmatpush3.msra.mxu1 %v8084_v31  ;;  %6605 = vmatprep.mubr.msk.f32.mxu1 %vm7252_vm0, %v7251_v0 }
0x536a   :  { %6603 = vmatprep.subr.mxu1 %v7251_v0 }
0x536b   :  { %6604 = vmatpush3.msra.mxu1 %v8089_v38 }
0x536c   :  { %6615 = vmatprep.subr.mxu1 %v7251_v0 }
0x5428   :  { %v4339_v11 = vpop.f32.mrf.mxu1 }
0x5429   :  { %v4344_v1 = vrot.slane %v4339_v11, 6 }
0x542a   :  { %v6593_v36 = vpop.f32.mrf.mxu1 }
0x542b   :  { %v4346_v9 = vadd.f32 %v4344_v1, %v8126_v61 }
0x542d   :  { %6993 = vtanh.f32 %v4346_v9  ;;  %v6151_v18 = vmul.f32 -1.442695, %v4346_v9 }
0x542f   :  { %6995 = vpow2.f32 %v6151_v18 }
0x543a   :  { %v6994_v14 = vpop.eup %6993 }
0x543b   :  { %4359 = vrot.lane.b32.xlu1 %v6994_v14, %s7253_s0 }
0x543c   :  { %v6996_v57 = vpop.eup %6995 }
0x543d   :  { %v4350_v15 = vadd.f32 1.0, %v6996_v57 }
0x543f   :  { %4375 = vrot.lane.b32.xlu1 %v4374_v16, %s7254_s8  ;;  %6997 = vrcp.f32 %v4350_v15 }
0x544c   :  { %v6998_v42 = vpop.eup %6997 }
0x544d   :  { %v4357_v47 = vmul.f32 %v6998_v42, %v4355_v20 }
0x54ad   :  { %v4360_v2 = vpop.permute.xlu1 %4359 }
0x54ae   :  { %v4362_v25 = vmul.f32 %v6998_v42, %v4360_v2 }
0x54b0   :  { %4364 = vrot.lane.b32.xlu0 %v4362_v25, %s7242_s24 }
0x54b1   :  { %v4376_v26 = vpop.permute.xlu1 %4375 }
0x54b2   :  { %v4378_v52 = vmul.f32 %v4376_v26, %v7721_v49 }
0x54b4   :  { %4380 = vrot.lane.b32.xlu1 %v4378_v52, %s7256_s29 }
0x5522   :  { %v4365_v8 = vpop.permute.xlu0 %4364 }
0x5523   :  { %v4367_v22 = vadd.f32 %v4365_v8, %v4357_v47 }
0x5525   :  { %6999 = vtanh.f32 %v4367_v22  ;;  %v4476_v50 = vrot.slane %v4367_v22, 6 }
0x5526   :  { %v4381_v37 = vpop.permute.xlu1 %4380 }
0x5532   :  { %v7000_v4 = vpop.eup %6999 }
0x5533   :  { %4370 = vrot.lane.b32.xlu0 %v7000_v4, %s7242_s24 }
0x55a5   :  { %v4371_v21 = vpop.permute.xlu0 %4370 }
0x55a6   :  { %v4373_v32 = vmul.f32 %v6998_v42, %v4371_v21 }
0x55a8   :  { %v8151_v39 = vadd.f32 %v4381_v37, %v4373_v32 }
0x55aa   :  { %v4389_v41 = vrot.slane %v8151_v39, 2  ;;  %v4495_v10 = vrot.slane %v8151_v39, 6 }
0x55ac   :  { %4390 = vrot.lane.b32.xlu0 %v4389_v41, %s7254_s8 }
0x561e   :  { %v4391_v27 = vpop.permute.xlu0 %4390 }
0x561f   :  { %6599 = vmatmul.mubr.msk.f32.vlgmr.msra.gmra.mxu0 %vm213_vm3, %v4391_v27 }
0x5620   :  { %6609 = vmatpush3.msra.mxu0 %v8084_v31  ;;  %6612 = vmatprep.mubr.msk.f32.mxu0 %vm7252_vm0, %v7251_v0 }
0x5621   :  { %6610 = vmatprep.subr.mxu0 %v7251_v0 }
0x5622   :  { %6611 = vmatpush3.msra.mxu0 %v8089_v38 }
0x5623   :  { %6622 = vmatprep.subr.mxu0 %v7251_v0 }
0x56df   :  { %v4460_v29 = vpop.f32.mrf.mxu0 }
0x56e0   :  { %v4465_v54 = vrot.slane %v4460_v29, 4 }
0x56e1   :  { %v6600_v24 = vpop.f32.mrf.mxu0 }
0x56e2   :  { %v4467_v43 = vadd.f32 %v4465_v54, %v8126_v61 }
0x56e4   :  { %7001 = vtanh.f32 %v4467_v43  ;;  %v6153_v30 = vmul.f32 -1.442695, %v4467_v43 }
0x56e6   :  { %7003 = vpow2.f32 %v6153_v30 }
0x56f1   :  { %v7002_v59 = vpop.eup %7001 }
0x56f2   :  { %4480 = vrot.lane.b32.xlu1 %v7002_v59, %s7253_s0 }
0x56f3   :  { %v7004_v55 = vpop.eup %7003 }
0x56f4   :  { %v4471_v46 = vadd.f32 1.0, %v7004_v55 }
0x56f6   :  { %4496 = vrot.lane.b32.xlu1 %v4495_v10, %s7254_s8  ;;  %7005 = vrcp.f32 %v4471_v46 }
0x5703   :  { %v7006_v13 = vpop.eup %7005 }
0x5704   :  { %v4478_v56 = vmul.f32 %v7006_v13, %v4476_v50 }
0x5764   :  { %v4481_v7 = vpop.permute.xlu1 %4480 }
0x5765   :  { %v4483_v48 = vmul.f32 %v7006_v13, %v4481_v7 }
0x5767   :  { %4485 = vrot.lane.b32.xlu0 %v4483_v48, %s7242_s24 }
0x5768   :  { %v4497_v35 = vpop.permute.xlu1 %4496 }
0x5769   :  { %v4499_v51 = vmul.f32 %v4497_v35, %v7721_v49 }
0x576b   :  { %4501 = vrot.lane.b32.xlu1 %v4499_v51, %s7256_s29 }
0x57d9   :  { %v4486_v58 = vpop.permute.xlu0 %4485 }
0x57da   :  { %v4488_v33 = vadd.f32 %v4486_v58, %v4478_v56 }
0x57dc   :  { %7007 = vtanh.f32 %v4488_v33  ;;  %v4597_v42 = vrot.slane %v4488_v33, 6 }
0x57dd   :  { %v4502_v45 = vpop.permute.xlu1 %4501 }
0x57e9   :  { %v7008_v34 = vpop.eup %7007 }
0x57ea   :  { %4491 = vrot.lane.b32.xlu0 %v7008_v34, %s7242_s24 }
0x585c   :  { %v4492_v28 = vpop.permute.xlu0 %4491 }
0x585d   :  { %v4494_v12 = vmul.f32 %v7006_v13, %v4492_v28 }
0x585f   :  { %v8170_v6 = vadd.f32 %v4502_v45, %v4494_v12 }
0x5861   :  { %v4510_v53 = vrot.slane %v8170_v6, 4  ;;  %v4616_v11 = vrot.slane %v8170_v6, 6 }
0x5863   :  { %4511 = vrot.lane.b32.xlu0 %v4510_v53, %s7254_s8 }
0x58d5   :  { %v4512_v3 = vpop.permute.xlu0 %4511 }
0x58d6   :  { %6606 = vmatmul.mubr.msk.f32.vlgmr.msra.gmra.mxu1 %vm213_vm3, %v4512_v3 }
0x58d7   :  { %6616 = vmatpush3.msra.mxu1 %v8084_v31  ;;  %6619 = vmatprep.mubr.msk.f32.mxu1 %vm7252_vm0, %v7251_v0 }
0x58d8   :  { %6617 = vmatprep.subr.mxu1 %v7251_v0 }
0x58d9   :  { %6618 = vmatpush3.msra.mxu1 %v8089_v38 }
0x58da   :  { %6629 = vmatprep.subr.mxu1 %v7251_v0 }
0x5996   :  { %v4581_v44 = vpop.f32.mrf.mxu1 }
0x5997   :  { %v4586_v62 = vrot.slane %v4581_v44, 2 }
0x5998   :  { %v6607_v60 = vpop.f32.mrf.mxu1 }
0x5999   :  { %v4588_v40 = vadd.f32 %v4586_v62, %v8126_v61 }
0x599b   :  { %7009 = vtanh.f32 %v4588_v40  ;;  %v6155_v1 = vmul.f32 -1.442695, %v4588_v40 }
0x599d   :  { %7011 = vpow2.f32 %v6155_v1 }
0x59a8   :  { %v7010_v63 = vpop.eup %7009 }
0x59a9   :  { %4601 = vrot.lane.b32.xlu1 %v7010_v63, %s7253_s0 }
0x59aa   :  { %v7012_v36 = vpop.eup %7011 }
0x59ab   :  { %v4592_v9 = vadd.f32 1.0, %v7012_v36 }
0x59ad   :  { %4617 = vrot.lane.b32.xlu1 %v4616_v11, %s7254_s8  ;;  %7013 = vrcp.f32 %v4592_v9 }
0x59ba   :  { %v7014_v14 = vpop.eup %7013 }
0x59bb   :  { %v4599_v2 = vmul.f32 %v7014_v14, %v4597_v42  ;;  %v8229_v42 = vld [vmem:[#allocation12 + $0x18] sm:$0xff] }
0x5a1b   :  { %v4602_v16 = vpop.permute.xlu1 %4601 }
0x5a1c   :  { %v4604_v18 = vmul.f32 %v7014_v14, %v4602_v16 }
0x5a1e   :  { %4606 = vrot.lane.b32.xlu0 %v4604_v18, %s7242_s24 }
0x5a1f   :  { %v4618_v57 = vpop.permute.xlu1 %4617 }
0x5a20   :  { %v4620_v15 = vmul.f32 %v4618_v57, %v7721_v49 }
0x5a22   :  { %4622 = vrot.lane.b32.xlu1 %v4620_v15, %s7256_s29 }
0x5a90   :  { %v4607_v25 = vpop.permute.xlu0 %4606 }
0x5a91   :  { %v4609_v26 = vadd.f32 %v4607_v25, %v4599_v2  ;;  %v8232_v25 = vld [vmem:[#allocation12 + $0x10] sm:$0xff] }
0x5a93   :  { %7015 = vtanh.f32 %v4609_v26  ;;  %v4715_v30 = vrot.slane %v4609_v26, 6 }
0x5a94   :  { %v4623_v8 = vpop.permute.xlu1 %4622 }
0x5aa0   :  { %v7016_v52 = vpop.eup %7015 }
0x5aa1   :  { %4612 = vrot.lane.b32.xlu0 %v7016_v52, %s7242_s24 }
0x5b13   :  { %v4613_v20 = vpop.permute.xlu0 %4612 }
0x5b14   :  { %v4615_v47 = vmul.f32 %v7014_v14, %v4613_v20 }
0x5b16   :  { %v8189_v22 = vadd.f32 %v4623_v8, %v4615_v47 }
0x5b18   :  { %v4631_v4 = vrot.slane %v8189_v22, 6 }
0x5b1a   :  { %4632 = vrot.lane.b32.xlu0 %v4631_v4, %s7254_s8 }
0x5b8c   :  { %v4633_v49 = vpop.permute.xlu0 %4632 }
0x5b8d   :  { %6613 = vmatmul.mubr.msk.f32.vlgmr.msra.gmra.mxu0 %vm213_vm3, %v4633_v49  ;;  %v4735_v10 = vmul.f32 %v4633_v49, %v7828_v19 }
0x5b8e   :  { %6623 = vmatpush3.msra.mxu0 %v8084_v31  ;;  %6626 = vmatprep.mubr.msk.f32.mxu0 %vm7252_vm0, %v7251_v0 }
0x5b8f   :  { %6624 = vmatprep.subr.mxu0 %v7251_v0 }
0x5b90   :  { %6625 = vmatpush3.msra.mxu0 %v8089_v38 }
0x5b91   :  { %6636 = vmatprep.subr.mxu0 %v7251_v0 }
0x5c4d   :  { %v4702_v21 = vpop.f32.mrf.mxu0 }
0x5c4e   :  { %v4706_v32 = vadd.f32 %v4702_v21, %v8124_v5 }
0x5c4f   :  { %v6614_v37 = vpop.f32.mrf.mxu0 }
0x5c50   :  { %7017 = vtanh.f32 %v4706_v32  ;;  %v6157_v27 = vmul.f32 -1.442695, %v4706_v32 }
0x5c52   :  { %7019 = vpow2.f32 %v6157_v27 }
0x5c5d   :  { %v7018_v41 = vpop.eup %7017 }
0x5c5e   :  { %4719 = vrot.lane.b32.xlu1 %v7018_v41, %s7253_s0 }
0x5c5f   :  { %v7020_v29 = vpop.eup %7019 }
0x5c60   :  { %v4710_v54 = vadd.f32 1.0, %v7020_v29 }
0x5c62   :  { %7021 = vrcp.f32 %v4710_v54 }
0x5c6f   :  { %v7022_v24 = vpop.eup %7021 }
0x5c70   :  { %v4717_v55 = vmul.f32 %v7022_v24, %v4715_v30 }
0x5cd0   :  { %v4720_v43 = vpop.permute.xlu1 %4719 }
0x5cd1   :  { %v4722_v59 = vmul.f32 %v7022_v24, %v4720_v43 }
0x5cd3   :  { %4724 = vrot.lane.b32.xlu0 %v4722_v59, %s7242_s24 }
0x5cd7   :  { %4737 = vrot.lane.b32.xlu0 %v4735_v10, %s7256_s29 }
0x5d45   :  { %v4725_v46 = vpop.permute.xlu0 %4724 }
0x5d46   :  { %v4727_v13 = vadd.f32 %v4725_v46, %v4717_v55 }
0x5d48   :  { %7023 = vtanh.f32 %v4727_v13  ;;  %v4830_v63 = vrot.slane %v4727_v13, 6 }
0x5d49   :  { %v4738_v51 = vpop.permute.xlu0 %4737 }
0x5d55   :  { %v7024_v7 = vpop.eup %7023 }
0x5d56   :  { %4730 = vrot.lane.b32.xlu1 %v7024_v7, %s7242_s24 }
0x5dc8   :  { %v4731_v48 = vpop.permute.xlu1 %4730 }
0x5dc9   :  { %v4733_v35 = vmul.f32 %v7022_v24, %v4731_v48 }
0x5dcb   :  { %v4740_v50 = vadd.f32 %v4738_v51, %v4733_v35 }
0x5dcd   :  { %4742 = vrot.lane.b32.xlu1 %v4740_v50, %s7254_s8  ;;  %v4849_v45 = vrot.slane %v4740_v50, 6 }
0x5e3f   :  { %v4743_v56 = vpop.permute.xlu1 %4742 }
0x5e40   :  { %4745 = vst.msk [vmem:[%s8500_s12 + $0x8] sm:$0x3] %vm316_vm2, %v4743_v56  ;;  %6620 = vmatmul.mubr.msk.f32.vlgmr.msra.gmra.mxu1 %vm213_vm3, %v4743_v56 }
0x5e41   :  { %6630 = vmatpush3.msra.mxu1 %v8084_v31  ;;  %6633 = vmatprep.mubr.msk.f32.mxu1 %vm7252_vm0, %v7251_v0 }
0x5e42   :  { %6631 = vmatprep.subr.mxu1 %v7251_v0 }
0x5e43   :  { %6632 = vmatpush3.msra.mxu1 %v8089_v38 }
0x5e44   :  { %6643 = vmatprep.subr.mxu1 %v7251_v0 }
0x5f00   :  { %v4814_v58 = vpop.f32.mrf.mxu1 }
0x5f01   :  { %v4819_v33 = vrot.slane %v4814_v58, 6 }
0x5f02   :  { %v6621_v34 = vpop.f32.mrf.mxu1 }
0x5f03   :  { %v4821_v28 = vadd.f32 %v4819_v33, %v8124_v5 }
0x5f05   :  { %7025 = vtanh.f32 %v4821_v28  ;;  %v6159_v31 = vmul.f32 -1.442695, %v4821_v28 }
0x5f07   :  { %7027 = vpow2.f32 %v6159_v31 }
0x5f12   :  { %v7026_v12 = vpop.eup %7025 }
0x5f13   :  { %4834 = vrot.lane.b32.xlu0 %v7026_v12, %s7253_s0 }
0x5f14   :  { %v7028_v53 = vpop.eup %7027 }
0x5f15   :  { %v4825_v3 = vadd.f32 1.0, %v7028_v53 }
0x5f17   :  { %4850 = vrot.lane.b32.xlu0 %v4849_v45, %s7254_s8  ;;  %7029 = vrcp.f32 %v4825_v3 }
0x5f24   :  { %v7030_v38 = vpop.eup %7029 }
0x5f25   :  { %v4832_v11 = vmul.f32 %v7030_v38, %v4830_v63 }
0x5f85   :  { %v4835_v44 = vpop.permute.xlu0 %4834 }
0x5f86   :  { %v4837_v62 = vmul.f32 %v7030_v38, %v4835_v44 }
0x5f88   :  { %4839 = vrot.lane.b32.xlu1 %v4837_v62, %s7242_s24 }
0x5f89   :  { %v4851_v60 = vpop.permute.xlu0 %4850 }
0x5f8a   :  { %v4853_v40 = vmul.f32 %v4851_v60, %v7828_v19 }
0x5f8c   :  { %4855 = vrot.lane.b32.xlu0 %v4853_v40, %s7256_s29 }
0x5ffa   :  { %v4840_v1 = vpop.permute.xlu1 %4839 }
0x5ffb   :  { %v4842_v36 = vadd.f32 %v4840_v1, %v4832_v11 }
0x5ffd   :  { %7031 = vtanh.f32 %v4842_v36  ;;  %v4951_v13 = vrot.slane %v4842_v36, 6 }
0x5ffe   :  { %v4856_v18 = vpop.permute.xlu0 %4855 }
0x600a   :  { %v7032_v9 = vpop.eup %7031 }
0x600b   :  { %4845 = vrot.lane.b32.xlu1 %v7032_v9, %s7242_s24 }
0x607d   :  { %v4846_v14 = vpop.permute.xlu1 %4845 }
0x607e   :  { %v4848_v16 = vmul.f32 %v7030_v38, %v4846_v14 }
0x6080   :  { %v8225_v57 = vadd.f32 %v4856_v18, %v4848_v16 }
0x6082   :  { %v4864_v15 = vrot.slane %v8225_v57, 2  ;;  %v4970_v10 = vrot.slane %v8225_v57, 6 }
0x6084   :  { %4865 = vrot.lane.b32.xlu1 %v4864_v15, %s7254_s8 }
0x60f6   :  { %v4866_v2 = vpop.permute.xlu1 %4865 }
0x60f7   :  { %6627 = vmatmul.mubr.msk.f32.vlgmr.msra.gmra.mxu0 %vm213_vm3, %v4866_v2 }
0x60f8   :  { %6637 = vmatpush3.msra.mxu0 %v8229_v42  ;;  %6640 = vmatprep.mubr.msk.f32.mxu0 %vm7252_vm0, %v7251_v0 }
0x60f9   :  { %6638 = vmatprep.subr.mxu0 %v7251_v0 }
0x60fa   :  { %6639 = vmatpush3.msra.mxu0 %v8232_v25 }
0x60fb   :  { %6641 = vmatmul.mubr.f32.vlgmr.msra.gmra.mxu0 %v7251_v0  ;;  %6650 = vmatprep.subr.mxu0 %v7251_v0 }
0x60fc   :  { %6651 = vmatpush3.msra.mxu0 %v8229_v42  ;;  %6654 = vmatprep.mubr.msk.f32.mxu0 %vm7252_vm0, %v7251_v0 }
0x60fd   :  { %6652 = vmatprep.subr.mxu0 %v7251_v0 }
0x60fe   :  { %6653 = vmatpush3.msra.mxu0 %v8232_v25 }
0x60ff   :  { %6664 = vmatprep.subr.mxu0 %v7251_v0 }
0x61b7   :  { %v4935_v26 = vpop.f32.mrf.mxu0 }
0x61b8   :  { %v4940_v52 = vrot.slane %v4935_v26, 4 }
0x61b9   :  { %v6628_v20 = vpop.f32.mrf.mxu0 }
0x61ba   :  { %v4942_v47 = vadd.f32 %v4940_v52, %v8124_v5 }
0x61bb   :  { %v5175_v8 = vpop.f32.mrf.mxu0 }
0x61bc   :  { %7033 = vtanh.f32 %v4942_v47  ;;  %v5180_v4 = vrot.slane %v5175_v8, 2  ;;  %v6161_v32 = vmul.f32 -1.442695, %v4942_v47 }
0x61bd   :  { %v6642_v49 = vpop.f32.mrf.mxu0 }
0x61be   :  { %5181 = vrot.lane.b32.xlu0 %v5180_v4, %s7255_s2  ;;  %7035 = vpow2.f32 %v6161_v32 }
0x61c9   :  { %v7034_v21 = vpop.eup %7033 }
0x61ca   :  { %4955 = vrot.lane.b32.xlu1 %v7034_v21, %s7253_s0 }
0x61cb   :  { %v7036_v37 = vpop.eup %7035 }
0x61cc   :  { %v4946_v41 = vadd.f32 1.0, %v7036_v37 }
0x61ce   :  { %7037 = vrcp.f32 %v4946_v41 }
0x61db   :  { %v7038_v54 = vpop.eup %7037 }
0x61dc   :  { %v4953_v7 = vmul.f32 %v7038_v54, %v4951_v13 }
0x6230   :  { %v5182_v27 = vpop.permute.xlu0 %5181 }
0x6231   :  { %v5184_v29 = vadd.f32 %v5182_v27, %v8124_v5 }
0x6233   :  { %7039 = vtanh.f32 %v5184_v29  ;;  %v6164_v30 = vmul.f32 -1.442695, %v5184_v29 }
0x6235   :  { %7041 = vpow2.f32 %v6164_v30 }
0x623c   :  { %v4956_v24 = vpop.permute.xlu1 %4955 }
0x623d   :  { %v4958_v43 = vmul.f32 %v7038_v54, %v4956_v24 }
0x623f   :  { %4960 = vrot.lane.b32.xlu1 %v4958_v43, %s7242_s24 }
0x6240   :  { %v7040_v59 = vpop.eup %7039 }
0x6241   :  { %5194 = vrot.lane.b32.xlu0 %v7040_v59, %s7253_s0 }
0x6242   :  { %v7042_v55 = vpop.eup %7041 }
0x6243   :  { %4971 = vrot.lane.b32.xlu1 %v4970_v10, %s7254_s8  ;;  %v5188_v46 = vadd.f32 1.0, %v7042_v55 }
0x6245   :  { %7043 = vrcp.f32 %v5188_v46 }
0x6252   :  { %v7044_v51 = vpop.eup %7043 }
0x6253   :  { %v5192_v28 = vmul.f32 0.0, %v7044_v51 }
0x62b1   :  { %v4961_v48 = vpop.permute.xlu1 %4960 }
0x62b2   :  { %v8255_v35 = vadd.f32 %v4961_v48, %v4953_v7 }
0x62b3   :  { %v5195_v50 = vpop.permute.xlu0 %5194 }
0x62b4   :  { %7045 = vtanh.f32 %v8255_v35  ;;  %v5197_v56 = vmul.f32 %v7044_v51, %v5195_v50 }
0x62b5   :  { %v4972_v58 = vpop.permute.xlu1 %4971 }
0x62b6   :  { %v4974_v33 = vmul.f32 %v4972_v58, %v7828_v19  ;;  %5199 = vrot.lane.b32.xlu0 %v5197_v56, %s7242_s24 }
0x62b8   :  { %4976 = vrot.lane.b32.xlu1 %v4974_v33, %s7256_s29 }
0x62c1   :  { %v7046_v34 = vpop.eup %7045 }
0x62c2   :  { %4966 = vrot.lane.b32.xlu0 %v7046_v34, %s7242_s24 }
0x6328   :  { %v5200_v12 = vpop.permute.xlu0 %5199 }
0x6329   :  { %v5202_v45 = vadd.f32 %v5200_v12, %v5192_v28 }
0x632a   :  { %v4977_v3 = vpop.permute.xlu1 %4976 }
0x632b   :  { %7047 = vtanh.f32 %v5202_v45  ;;  %v5303_v27 = vrot.slane %v5202_v45, 2 }
0x6334   :  { %v4967_v31 = vpop.permute.xlu0 %4966 }
0x6335   :  { %v4969_v53 = vmul.f32 %v7038_v54, %v4967_v31 }
0x6337   :  { %v8262_v38 = vadd.f32 %v4977_v3, %v4969_v53 }
0x6338   :  { %v7048_v44 = vpop.eup %7047 }
0x6339   :  { %v4985_v62 = vrot.slane %v8262_v38, 4  ;;  %5205 = vrot.lane.b32.xlu0 %v7048_v44, %s7242_s24 }
0x633b   :  { %4986 = vrot.lane.b32.xlu1 %v4985_v62, %s7254_s8 }
0x63ab   :  { %v5206_v60 = vpop.permute.xlu0 %5205 }
0x63ac   :  { %v8267_v40 = vmul.f32 %v7044_v51, %v5206_v60 }
0x63ad   :  { %v4987_v63 = vpop.permute.xlu1 %4986 }
0x63ae   :  { %v5214_v11 = vrot.slane %v8267_v40, 6  ;;  %6634 = vmatmul.mubr.msk.f32.vlgmr.msra.gmra.mxu1 %vm213_vm3, %v4987_v63  ;;  %v5322_v52 = vrot.slane %v8267_v40, 4 }
0x63af   :  { %6644 = vmatpush3.msra.mxu1 %v8229_v42  ;;  %6647 = vmatprep.mubr.msk.f32.mxu1 %vm7252_vm0, %v7251_v0 }
0x63b0   :  { %5215 = vrot.lane.b32.xlu0 %v5214_v11, %s7256_s29  ;;  %6645 = vmatprep.subr.mxu1 %v7251_v0 }
0x63b1   :  { %6646 = vmatpush3.msra.mxu1 %v8232_v25 }
0x63b2   :  { %6657 = vmatprep.subr.mxu1 %v7251_v0 }
0x6422   :  { %v5216_v1 = vpop.permute.xlu0 %5215 }
0x6423   :  { %6648 = vmatmul.mubr.msk.f32.vlgmr.msra.gmra.mxu1 %vm213_vm3, %v5216_v1 }
0x6424   :  { %6658 = vmatpush3.msra.mxu1 %v8229_v42  ;;  %6661 = vmatprep.mubr.msk.f32.mxu1 %vm7252_vm0, %v7251_v0 }
0x6425   :  { %6659 = vmatprep.subr.mxu1 %v7251_v0 }
0x6426   :  { %6660 = vmatpush3.msra.mxu1 %v8232_v25 }
0x6427   :  { %6671 = vmatprep.subr.mxu1 %v7251_v0 }
0x646e   :  { %v8285_v36 = vpop.f32.mrf.mxu1 }
0x6470   :  { %v6635_v9 = vpop.f32.mrf.mxu1 }
0x64e3   :  { %v5285_v14 = vpop.f32.mrf.mxu1 }
0x64e4   :  { %v5290_v16 = vrot.slane %v5285_v14, 4 }
0x64e5   :  { %v6649_v18 = vpop.f32.mrf.mxu1 }
0x64e6   :  { %5291 = vrot.lane.b32.xlu1 %v5290_v16, %s7255_s2 }
0x6558   :  { %v5292_v15 = vpop.permute.xlu1 %5291 }
0x6559   :  { %v5294_v2 = vadd.f32 %v5292_v15, %v8124_v5 }
0x655b   :  { %7049 = vtanh.f32 %v5294_v2  ;;  %v6166_v20 = vmul.f32 -1.442695, %v5294_v2 }
0x655d   :  { %7051 = vpow2.f32 %v6166_v20 }
0x6568   :  { %v7050_v26 = vpop.eup %7049 }
0x6569   :  { %5307 = vrot.lane.b32.xlu0 %v7050_v26, %s7253_s0 }
0x656a   :  { %v7052_v47 = vpop.eup %7051 }
0x656b   :  { %v5298_v8 = vadd.f32 1.0, %v7052_v47 }
0x656d   :  { %5323 = vrot.lane.b32.xlu0 %v5322_v52, %s7256_s29  ;;  %7053 = vrcp.f32 %v5298_v8 }
0x657a   :  { %v7054_v4 = vpop.eup %7053 }
0x657b   :  { %v5305_v29 = vmul.f32 %v7054_v4, %v5303_v27 }
0x65db   :  { %v5308_v49 = vpop.permute.xlu0 %5307 }
0x65dc   :  { %v5310_v21 = vmul.f32 %v7054_v4, %v5308_v49 }
0x65de   :  { %5312 = vrot.lane.b32.xlu1 %v5310_v21, %s7242_s24 }
0x65df   :  { %v5324_v32 = vpop.permute.xlu0 %5323 }
0x65e0   :  { %v5326_v37 = vmul.f32 %v5324_v32, %v7934_v23 }
0x65e2   :  { %v5328_v41 = vrot.slane %v5326_v37, 6 }
0x65e4   :  { %5329 = vrot.lane.b32.xlu0 %v5328_v41, %s7254_s8 }
0x6650   :  { %v5313_v54 = vpop.permute.xlu1 %5312 }
0x6651   :  { %v5315_v24 = vadd.f32 %v5313_v54, %v5305_v29 }
0x6653   :  { %7055 = vtanh.f32 %v5315_v24  ;;  %v5427_v53 = vrot.slane %v5315_v24, 2 }
0x6656   :  { %v5330_v30 = vpop.permute.xlu0 %5329 }
0x6660   :  { %v7056_v43 = vpop.eup %7055 }
0x6661   :  { %5318 = vrot.lane.b32.xlu1 %v7056_v43, %s7242_s24 }
0x66d3   :  { %v5319_v59 = vpop.permute.xlu1 %5318 }
0x66d4   :  { %v5321_v10 = vmul.f32 %v7054_v4, %v5319_v59 }
0x66d6   :  { %v8296_v55 = vadd.f32 %v5330_v30, %v5321_v10 }
0x66d8   :  { %v5338_v46 = vrot.slane %v8296_v55, 4  ;;  %v5446_v63 = vmul.f32 %v8296_v55, %v7934_v23 }
0x66da   :  { %5339 = vrot.lane.b32.xlu1 %v5338_v46, %s7256_s29  ;;  %v5448_v1 = vrot.slane %v5446_v63, 2 }
0x674c   :  { %v5340_v13 = vpop.permute.xlu1 %5339 }
0x674d   :  { %6655 = vmatmul.mubr.msk.f32.vlgmr.msra.gmra.mxu0 %vm213_vm3, %v5340_v13 }
0x674e   :  { %6665 = vmatpush3.msra.mxu0 %v8229_v42  ;;  %6668 = vmatprep.mubr.msk.f32.mxu0 %vm7252_vm0, %v7251_v0 }
0x674f   :  { %6666 = vmatprep.subr.mxu0 %v7251_v0 }
0x6750   :  { %6667 = vmatpush3.msra.mxu0 %v8232_v25 }
0x6751   :  { %6678 = vmatprep.subr.mxu0 %v7251_v0 }
0x680d   :  { %v5409_v7 = vpop.f32.mrf.mxu0 }
0x680e   :  { %v5414_v48 = vrot.slane %v5409_v7, 6 }
0x680f   :  { %v6656_v51 = vpop.f32.mrf.mxu0 }
0x6810   :  { %5415 = vrot.lane.b32.xlu0 %v5414_v48, %s7255_s2 }
0x6882   :  { %v5416_v50 = vpop.permute.xlu0 %5415 }
0x6883   :  { %v5418_v56 = vadd.f32 %v5416_v50, %v8124_v5 }
0x6885   :  { %7057 = vtanh.f32 %v5418_v56  ;;  %v6168_v33 = vmul.f32 -1.442695, %v5418_v56 }
0x6887   :  { %7059 = vpow2.f32 %v6168_v33 }
0x6892   :  { %v7058_v58 = vpop.eup %7057 }
0x6893   :  { %5431 = vrot.lane.b32.xlu1 %v7058_v58, %s7253_s0 }
0x6894   :  { %v7060_v34 = vpop.eup %7059 }
0x6895   :  { %v5422_v28 = vadd.f32 1.0, %v7060_v34 }
0x6897   :  { %7061 = vrcp.f32 %v5422_v28 }
0x68a4   :  { %v7062_v12 = vpop.eup %7061 }
0x68a5   :  { %v5429_v3 = vmul.f32 %v7062_v12, %v5427_v53 }
0x6905   :  { %v5432_v45 = vpop.permute.xlu1 %5431 }
0x6906   :  { %v5434_v31 = vmul.f32 %v7062_v12, %v5432_v45 }
0x6908   :  { %5436 = vrot.lane.b32.xlu0 %v5434_v31, %s7242_s24 }
0x697a   :  { %v5437_v44 = vpop.permute.xlu0 %5436 }
0x697b   :  { %v5439_v62 = vadd.f32 %v5437_v44, %v5429_v3 }
0x697d   :  { %7063 = vtanh.f32 %v5439_v62  ;;  %v5544_v54 = vrot.slane %v5439_v62, 2 }
0x698a   :  { %v7064_v60 = vpop.eup %7063 }
0x698b   :  { %5442 = vrot.lane.b32.xlu1 %v7064_v60, %s7242_s24 }
0x69fd   :  { %v5443_v11 = vpop.permute.xlu1 %5442 }
0x69fe   :  { %v5445_v9 = vmul.f32 %v7062_v12, %v5443_v11 }
0x6a00   :  { %v8314_v14 = vadd.f32 %v5448_v1, %v5445_v9 }
0x6a02   :  { %v5456_v16 = vrot.slane %v8314_v14, 2  ;;  %v5563_v47 = vrot.slane %v8314_v14, 4 }
0x6a04   :  { %5457 = vrot.lane.b32.xlu0 %v5456_v16, %s7256_s29 }
0x6a76   :  { %v5458_v18 = vpop.permute.xlu0 %5457 }
0x6a77   :  { %6662 = vmatmul.mubr.msk.f32.vlgmr.msra.gmra.mxu1 %vm213_vm3, %v5458_v18 }
0x6a78   :  { %6672 = vmatpush3.msra.mxu1 %v8229_v42  ;;  %6675 = vmatprep.mubr.msk.f32.mxu1 %vm7252_vm0, %v7251_v0 }
0x6a79   :  { %6673 = vmatprep.subr.mxu1 %v7251_v0 }
0x6a7a   :  { %6674 = vmatpush3.msra.mxu1 %v8232_v25 }
0x6a7b   :  { %6685 = vmatprep.subr.mxu1 %v7251_v0 }
0x6b37   :  { %v5527_v15 = vpop.f32.mrf.mxu1 }
0x6b38   :  { %5532 = vrot.lane.b32.xlu1 %v5527_v15, %s7255_s2 }
0x6b39   :  { %v6663_v2 = vpop.f32.mrf.mxu1 }
0x6baa   :  { %v5533_v26 = vpop.permute.xlu1 %5532 }
0x6bab   :  { %v5535_v52 = vadd.f32 %v5533_v26, %v8124_v5 }
0x6bad   :  { %7065 = vtanh.f32 %v5535_v52  ;;  %v6170_v8 = vmul.f32 -1.442695, %v5535_v52 }
0x6baf   :  { %7067 = vpow2.f32 %v6170_v8 }
0x6bba   :  { %v7066_v20 = vpop.eup %7065 }
0x6bbb   :  { %5548 = vrot.lane.b32.xlu0 %v7066_v20, %s7253_s0 }
0x6bbc   :  { %v7068_v4 = vpop.eup %7067 }
0x6bbd   :  { %v5539_v49 = vadd.f32 1.0, %v7068_v4 }
0x6bbf   :  { %5564 = vrot.lane.b32.xlu0 %v5563_v47, %s7256_s29  ;;  %7069 = vrcp.f32 %v5539_v49 }
0x6bcc   :  { %v7070_v21 = vpop.eup %7069 }
0x6bcd   :  { %v5546_v24 = vmul.f32 %v7070_v21, %v5544_v54 }
0x6c2d   :  { %v5549_v32 = vpop.permute.xlu0 %5548 }
0x6c2e   :  { %v5551_v37 = vmul.f32 %v7070_v21, %v5549_v32 }
0x6c30   :  { %5553 = vrot.lane.b32.xlu1 %v5551_v37, %s7242_s24 }
0x6c31   :  { %v5565_v41 = vpop.permute.xlu0 %5564 }
0x6c32   :  { %v5567_v27 = vmul.f32 %v5565_v41, %v7934_v23 }
0x6c34   :  { %v5569_v29 = vrot.slane %v5567_v27, 6 }
0x6c36   :  { %5570 = vrot.lane.b32.xlu0 %v5569_v29, %s7254_s8 }
0x6ca2   :  { %v5554_v43 = vpop.permute.xlu1 %5553 }
0x6ca3   :  { %v5556_v59 = vadd.f32 %v5554_v43, %v5546_v24 }
0x6ca5   :  { %7071 = vtanh.f32 %v5556_v59  ;;  %v5667_v3 = vrot.slane %v5556_v59, 2 }
0x6ca8   :  { %v5571_v13 = vpop.permute.xlu0 %5570 }
0x6cb2   :  { %v7072_v10 = vpop.eup %7071 }
0x6cb3   :  { %5559 = vrot.lane.b32.xlu1 %v7072_v10, %s7242_s24 }
0x6d25   :  { %v5560_v30 = vpop.permute.xlu1 %5559 }
0x6d26   :  { %v5562_v46 = vmul.f32 %v7070_v21, %v5560_v30 }
0x6d28   :  { %v8334_v7 = vadd.f32 %v5571_v13, %v5562_v46 }
0x6d2a   :  { %5579 = vrot.lane.b32.xlu1 %v8334_v7, %s7256_s29  ;;  %v5686_v11 = vmul.f32 %v8334_v7, %v7997_v17 }
0x6d2c   :  { %v5688_v9 = vrot.slane %v5686_v11, 2 }
0x6d9c   :  { %v5580_v23 = vpop.permute.xlu1 %5579 }
0x6d9d   :  { %6669 = vmatmul.mubr.msk.f32.vlgmr.msra.gmra.mxu0 %vm213_vm3, %v5580_v23 }
0x6d9e   :  { %6679 = vmatpush3.msra.mxu0 %v8229_v42  ;;  %6682 = vmatprep.mubr.msk.f32.mxu0 %vm7252_vm0, %v7251_v0 }
0x6d9f   :  { %6680 = vmatprep.subr.mxu0 %v7251_v0 }
0x6da0   :  { %6681 = vmatpush3.msra.mxu0 %v8232_v25 }
0x6e5d   :  { %v5649_v48 = vpop.f32.mrf.mxu0 }
0x6e5e   :  { %v5654_v51 = vrot.slane %v5649_v48, 2 }
0x6e5f   :  { %v6670_v50 = vpop.f32.mrf.mxu0 }
0x6e60   :  { %5655 = vrot.lane.b32.xlu0 %v5654_v51, %s7255_s2 }
0x6ed2   :  { %v5656_v56 = vpop.permute.xlu0 %5655 }
0x6ed3   :  { %v5658_v58 = vadd.f32 %v5656_v56, %v8126_v61 }
0x6ed5   :  { %7073 = vtanh.f32 %v5658_v58  ;;  %v6172_v34 = vmul.f32 -1.442695, %v5658_v58 }
0x6ed7   :  { %7075 = vpow2.f32 %v6172_v34 }
0x6ee2   :  { %v7074_v33 = vpop.eup %7073 }
0x6ee3   :  { %5671 = vrot.lane.b32.xlu1 %v7074_v33, %s7253_s0 }
0x6ee4   :  { %v7076_v28 = vpop.eup %7075 }
0x6ee5   :  { %v5662_v12 = vadd.f32 1.0, %v7076_v28 }
0x6ee7   :  { %7077 = vrcp.f32 %v5662_v12 }
0x6ef4   :  { %v7078_v45 = vpop.eup %7077 }
0x6ef5   :  { %v5669_v44 = vmul.f32 %v7078_v45, %v5667_v3 }
0x6f55   :  { %v5672_v31 = vpop.permute.xlu1 %5671 }
0x6f56   :  { %v5674_v53 = vmul.f32 %v7078_v45, %v5672_v31 }
0x6f58   :  { %5676 = vrot.lane.b32.xlu0 %v5674_v53, %s7242_s24 }
0x6fca   :  { %v5677_v62 = vpop.permute.xlu0 %5676 }
0x6fcb   :  { %v5679_v60 = vadd.f32 %v5677_v62, %v5669_v44 }
0x6fcd   :  { %7079 = vtanh.f32 %v5679_v60  ;;  %v5785_v54 = vrot.slane %v5679_v60, 2 }
0x6fda   :  { %v7080_v63 = vpop.eup %7079 }
0x6fdb   :  { %5682 = vrot.lane.b32.xlu1 %v7080_v63, %s7242_s24 }
0x704d   :  { %v5683_v1 = vpop.permute.xlu1 %5682 }
0x704e   :  { %v5685_v16 = vmul.f32 %v7078_v45, %v5683_v1 }
0x7050   :  { %v8351_v18 = vadd.f32 %v5688_v9, %v5685_v16  ;;  %v5061_v9 = vrot.slane %v8285_v36, 2 }
0x7052   :  { %v5696_v15 = vrot.slane %v8351_v18, 6  ;;  %v5063_v16 = vadd.f32 %v5061_v9, %v8124_v5 }
0x7054   :  { %5697 = vrot.lane.b32.xlu0 %v5696_v15, %s7256_s29 }
0x70c6   :  { %v5698_v2 = vpop.permute.xlu0 %5697 }
0x70c7   :  { %6676 = vmatmul.mubr.msk.f32.vlgmr.msra.gmra.mxu1 %vm213_vm3, %v5698_v2 }
0x70c8   :  { %6686 = vmatpush3.msra.mxu1 %v8229_v42  ;;  %6689 = vmatprep.mubr.msk.f32.mxu1 %vm7252_vm0, %v7251_v0  ;;  %v5804_v42 = vrot.slane %v8351_v18, 4 }
0x70c9   :  { %6687 = vmatprep.subr.mxu1 %v7251_v0 }
0x70ca   :  { %6688 = vmatpush3.msra.mxu1 %v8232_v25 }
0x7187   :  { %v5767_v26 = vpop.f32.mrf.mxu1 }
0x7188   :  { %v5772_v52 = vrot.slane %v5767_v26, 4 }
0x7189   :  { %v6677_v20 = vpop.f32.mrf.mxu1 }
0x718a   :  { %5773 = vrot.lane.b32.xlu1 %v5772_v52, %s7255_s2 }
0x71fc   :  { %v5774_v47 = vpop.permute.xlu1 %5773 }
0x71fd   :  { %v5776_v8 = vadd.f32 %v5774_v47, %v8126_v61 }
0x71ff   :  { %7081 = vtanh.f32 %v5776_v8  ;;  %v6174_v49 = vmul.f32 -1.442695, %v5776_v8 }
0x7201   :  { %7083 = vpow2.f32 %v6174_v49 }
0x720c   :  { %v7082_v4 = vpop.eup %7081 }
0x720d   :  { %5789 = vrot.lane.b32.xlu0 %v7082_v4, %s7253_s0  ;;  %v6163_v4 = vmul.f32 -1.442695, %v5063_v16 }
0x720e   :  { %v7084_v0 = vpop.eup %7083 }
0x720f   :  { %v5780_v25 = vadd.f32 1.0, %v7084_v0 }
0x7211   :  { %5805 = vrot.lane.b32.xlu0 %v5804_v42, %s7256_s29  ;;  %7085 = vrcp.f32 %v5780_v25 }
0x721e   :  { %v7086_v21 = vpop.eup %7085 }
0x721f   :  { %v5787_v24 = vmul.f32 %v7086_v21, %v5785_v54 }
0x727f   :  { %v5790_v32 = vpop.permute.xlu0 %5789 }
0x7280   :  { %v5792_v37 = vmul.f32 %v7086_v21, %v5790_v32  ;;  %v5072_v32 = vrot.slane %v8255_v35, 6 }
0x7282   :  { %5794 = vrot.lane.b32.xlu1 %v5792_v37, %s7242_s24 }
0x7283   :  { %v5806_v41 = vpop.permute.xlu0 %5805 }
0x7284   :  { %v5808_v27 = vmul.f32 %v5806_v41, %v7997_v17 }
0x7286   :  { %v5810_v29 = vrot.slane %v5808_v27, 6 }
0x7288   :  { %5811 = vrot.lane.b32.xlu0 %v5810_v29, %s7254_s8 }
0x72f4   :  { %v5795_v43 = vpop.permute.xlu1 %5794 }
0x72f5   :  { %v5797_v59 = vadd.f32 %v5795_v43, %v5787_v24 }
0x72f7   :  { %7087 = vtanh.f32 %v5797_v59  ;;  %v5909_v62 = vrot.slane %v5797_v59, 2 }
0x72fa   :  { %v5812_v13 = vpop.permute.xlu0 %5811 }
0x7304   :  { %v7088_v10 = vpop.eup %7087 }
0x7305   :  { %5800 = vrot.lane.b32.xlu1 %v7088_v10, %s7242_s24 }
0x7377   :  { %v5801_v30 = vpop.permute.xlu1 %5800 }
0x7378   :  { %v5803_v46 = vmul.f32 %v7086_v21, %v5801_v30 }
0x737a   :  { %v8370_v23 = vadd.f32 %v5812_v13, %v5803_v46 }
0x737c   :  { %v5820_v48 = vrot.slane %v8370_v23, 4  ;;  %v5928_v15 = vmul.f32 %v8370_v23, %v7997_v17 }
0x737e   :  { %5821 = vrot.lane.b32.xlu1 %v5820_v48, %s7256_s29  ;;  %v5930_v26 = vrot.slane %v5928_v15, 2 }
0x73f0   :  { %v5822_v51 = vpop.permute.xlu1 %5821 }
0x73f1   :  { %6683 = vmatmul.mubr.msk.f32.vlgmr.msra.gmra.mxu0 %vm213_vm3, %v5822_v51 }
0x74b1   :  { %v5891_v50 = vpop.f32.mrf.mxu0 }
0x74b2   :  { %v5896_v56 = vrot.slane %v5891_v50, 6  ;;  %v5091_v50 = vrot.slane %v8262_v38, 6 }
0x74b3   :  { %v6684_v58 = vpop.f32.mrf.mxu0 }
0x74b4   :  { %5897 = vrot.lane.b32.xlu0 %v5896_v56, %s7255_s2 }
0x7526   :  { %v5898_v33 = vpop.permute.xlu0 %5897 }
0x7527   :  { %v5900_v34 = vadd.f32 %v5898_v33, %v8126_v61 }
0x7529   :  { %7089 = vtanh.f32 %v5900_v34  ;;  %v6176_v12 = vmul.f32 -1.442695, %v5900_v34 }
0x752b   :  { %7091 = vpow2.f32 %v6176_v12 }
0x7536   :  { %v7090_v28 = vpop.eup %7089 }
0x7537   :  { %5913 = vrot.lane.b32.xlu1 %v7090_v28, %s7253_s0 }
0x7538   :  { %v7092_v45 = vpop.eup %7091 }
0x7539   :  { %v5904_v31 = vadd.f32 1.0, %v7092_v45 }
0x753b   :  { %7093 = vrcp.f32 %v5904_v31 }
0x7548   :  { %v7094_v53 = vpop.eup %7093 }
0x7549   :  { %v5911_v60 = vmul.f32 %v7094_v53, %v5909_v62 }
0x75a9   :  { %v5914_v3 = vpop.permute.xlu1 %5913 }
0x75aa   :  { %v5916_v44 = vmul.f32 %v7094_v53, %v5914_v3 }
0x75ac   :  { %5918 = vrot.lane.b32.xlu0 %v5916_v44, %s7242_s24 }
0x761e   :  { %v5919_v63 = vpop.permute.xlu0 %5918 }
0x761f   :  { %v5921_v11 = vadd.f32 %v5919_v63, %v5911_v60 }
0x7621   :  { %7095 = vtanh.f32 %v5921_v11  ;;  %v6026_v56 = vrot.slane %v5921_v11, 2 }
0x7622   :  { %7097 = vtanh.f32 %v5063_v16 }
0x7623   :  { %7099 = vpow2.f32 %v6163_v4 }
0x762e   :  { %v7096_v1 = vpop.eup %7095 }
0x762f   :  { %5924 = vrot.lane.b32.xlu1 %v7096_v1, %s7242_s24  ;;  %v7098_v8 = vpop.eup %7097 }
0x7630   :  { %v7100_v36 = vpop.eup %7099 }
0x7631   :  { %v5067_v5 = vadd.f32 1.0, %v7100_v36 }
0x7633   :  { %7101 = vrcp.f32 %v5067_v5 }
0x7640   :  { %v7102_v49 = vpop.eup %7101 }
0x7641   :  { %v5074_v37 = vmul.f32 %v7102_v49, %v5072_v32 }
0x76a1   :  { %v5925_v2 = vpop.permute.xlu1 %5924 }
0x76a2   :  { %v5927_v52 = vmul.f32 %v7094_v53, %v5925_v2 }
0x76a4   :  { %v8384_v20 = vadd.f32 %v5930_v26, %v5927_v52 }
0x76a6   :  { %v5938_v47 = vrot.slane %v8384_v20, 2  ;;  %v6045_v21 = vrot.slane %v8384_v20, 4 }
0x76a8   :  { %5939 = vrot.lane.b32.xlu0 %v5938_v47, %s7256_s29 }
0x76ac   :  { %5076 = vrot.lane.b32.xlu0 %v7098_v8, %s7253_s0 }
0x771a   :  { %v5940_v42 = vpop.permute.xlu0 %5939 }
0x771b   :  { %6690 = vmatmul.mubr.msk.f32.vlgmr.msra.gmra.mxu1 %vm213_vm3, %v5940_v42 }
0x771e   :  { %v5077_v0 = vpop.permute.xlu0 %5076 }
0x771f   :  { %v5079_v25 = vmul.f32 %v7102_v49, %v5077_v0 }
0x7721   :  { %5081 = vrot.lane.b32.xlu0 %v5079_v25, %s7242_s24 }
0x7725   :  { %6046 = vrot.lane.b32.xlu0 %v6045_v21, %s7256_s29 }
0x7793   :  { %v5082_v41 = vpop.permute.xlu0 %5081 }
0x7794   :  { %v5084_v27 = vadd.f32 %v5082_v41, %v5074_v37 }
0x7796   :  { %7103 = vtanh.f32 %v5084_v27 }
0x7797   :  { %v6047_v12 = vpop.permute.xlu0 %6046 }
0x7798   :  { %v6049_v45 = vmul.f32 %v6047_v12, %v7997_v17 }
0x779a   :  { %v6051_v53 = vrot.slane %v6049_v45, 6 }
0x77a3   :  { %v7104_v29 = vpop.eup %7103 }
0x77a4   :  { %5087 = vrot.lane.b32.xlu0 %v7104_v29, %s7242_s24 }
0x77db   :  { %v6009_v54 = vpop.f32.mrf.mxu1 }
0x77dc   :  { %6014 = vrot.lane.b32.xlu1 %v6009_v54, %s7255_s2 }
0x77dd   :  { %v6691_v24 = vpop.f32.mrf.mxu1 }
0x784e   :  { %v6015_v43 = vpop.permute.xlu1 %6014 }
0x784f   :  { %v6017_v59 = vadd.f32 %v6015_v43, %v8126_v61 }
0x7851   :  { %7105 = vtanh.f32 %v6017_v59  ;;  %v6178_v30 = vmul.f32 -1.442695, %v6017_v59 }
0x7853   :  { %7107 = vpow2.f32 %v6178_v30 }
0x785e   :  { %v7106_v10 = vpop.eup %7105 }
0x785f   :  { %6030 = vrot.lane.b32.xlu1 %v7106_v10, %s7253_s0 }
0x7860   :  { %v7108_v35 = vpop.eup %7107 }
0x7861   :  { %v6021_v46 = vadd.f32 1.0, %v7108_v35 }
0x7863   :  { %7109 = vrcp.f32 %v6021_v46 }
0x7870   :  { %v7110_v13 = vpop.eup %7109 }
0x7871   :  { %v6028_v61 = vmul.f32 %v7110_v13, %v6026_v56 }
0x78d1   :  { %v6031_v48 = vpop.permute.xlu1 %6030 }
0x78d2   :  { %v6033_v51 = vmul.f32 %v7110_v13, %v6031_v48 }
0x78d4   :  { %6035 = vrot.lane.b32.xlu1 %v6033_v51, %s7242_s24 }
0x78d8   :  { %5092 = vrot.lane.b32.xlu1 %v5091_v50, %s7254_s8 }
0x7946   :  { %v6036_v58 = vpop.permute.xlu1 %6035 }
0x7947   :  { %v6038_v33 = vadd.f32 %v6036_v58, %v6028_v61 }
0x7949   :  { %7111 = vtanh.f32 %v6038_v33 }
0x794a   :  { %v5093_v34 = vpop.permute.xlu1 %5092 }
0x794b   :  { %v5095_v28 = vmul.f32 %v5093_v34, %v7828_v19  ;;  %v5088_v19 = vpop.permute.xlu0 %5087 }
0x794c   :  { %v5090_v17 = vmul.f32 %v7102_v49, %v5088_v19 }
0x794d   :  { %5097 = vrot.lane.b32.xlu0 %v5095_v28, %s7256_s29 }
0x7951   :  { %4385 = vrot.lane.b32.xlu0 %v8151_v39, %s7254_s8 }
0x7955   :  { %4627 = vrot.lane.b32.xlu0 %v8189_v22, %s7254_s8 }
0x7956   :  { %v7112_v31 = vpop.eup %7111 }
0x7957   :  { %6041 = vrot.lane.b32.xlu1 %v7112_v31, %s7242_s24 }
0x7959   :  { %4981 = vrot.lane.b32.xlu0 %v8262_v38, %s7254_s8 }
0x795b   :  { %6052 = vrot.lane.b32.xlu1 %v6051_v53, %s7254_s8 }
0x795d   :  { %5210 = vrot.lane.b32.xlu0 %v8267_v40, %s7257_s6 }
0x795f   :  { %4506 = vrot.lane.b32.xlu1 %v8170_v6, %s7254_s8 }
0x7961   :  { %5452 = vrot.lane.b32.xlu0 %v8314_v14, %s7257_s6 }
0x7963   :  { %4860 = vrot.lane.b32.xlu1 %v8225_v57, %s7254_s8 }
0x7965   :  { %5692 = vrot.lane.b32.xlu0 %v8351_v18, %s7257_s6 }
0x7969   :  { %5934 = vrot.lane.b32.xlu0 %v8384_v20, %s7257_s6 }
0x79bf   :  { %v5098_v39 = vpop.permute.xlu0 %5097 }
0x79c0   :  { %v5100_v22 = vadd.f32 %v5098_v39, %v5090_v17 }
0x79c2   :  { %5102 = vrot.lane.b32.xlu1 %v5100_v22, %s7254_s8 }
0x79c3   :  { %v4386_v38 = vpop.permute.xlu0 %4385 }
0x79c4   :  { %4388 = vst.msk [vmem:[%s8500_s12] sm:$0xc] %vm425_vm4, %v4386_v38 }
0x79c6   :  { %5334 = vrot.lane.b32.xlu1 %v8296_v55, %s7257_s6 }
0x79c7   :  { %v4628_v6 = vpop.permute.xlu0 %4627 }
0x79c8   :  { %4630 = vst.msk [vmem:[%s8500_s12] sm:$0xc0] %vm649_vm5, %v4628_v6 }
0x79c9   :  { %v6042_v57 = vpop.permute.xlu1 %6041 }
0x79ca   :  { %5575 = vrot.lane.b32.xlu1 %v8334_v7, %s7257_s6  ;;  %v6044_v18 = vmul.f32 %v7110_v13, %v6042_v57 }
0x79cb   :  { %v4982_v40 = vpop.permute.xlu0 %4981 }
0x79cc   :  { %4984 = vst.msk [vmem:[%s8500_s12 + $0x8] sm:$0x30] %vm537_vm8, %v4982_v40 }
0x79cd   :  { %v6053_v14 = vpop.permute.xlu1 %6052 }
0x79ce   :  { %5816 = vrot.lane.b32.xlu1 %v8370_v23, %s7257_s6  ;;  %v6055_v3 = vadd.f32 %v6053_v14, %v6044_v18 }
0x79cf   :  { %v5211_v55 = vpop.permute.xlu0 %5210 }
0x79d1   :  { %v4507_v44 = vpop.permute.xlu1 %4506 }
0x79d2   :  { %4509 = vst.msk [vmem:[%s8500_s12] sm:$0x30] %vm537_vm8, %v4507_v44  ;;  %6057 = vrot.lane.b32.xlu1 %v6055_v3, %s7257_s6 }
0x79d3   :  { %v5453_v7 = vpop.permute.xlu0 %5452 }
0x79d5   :  { %v4861_v62 = vpop.permute.xlu1 %4860 }
0x79d6   :  { %4863 = vst.msk [vmem:[%s8500_s12 + $0x8] sm:$0xc] %vm425_vm4, %v4861_v62 }
0x79d7   :  { %5455 = vst.msk [vmem:[%s8500_s12 + $0x8] sm:$0xc] %vm1424_vm10, %v5453_v7  ;;  %v5693_v23 = vpop.permute.xlu0 %5692 }
0x79d8   :  { %5695 = vst.msk [vmem:[%s8500_s12] sm:$0xc0] %vm1196_vm9, %v5693_v23 }
0x79db   :  { %v5935_v60 = vpop.permute.xlu0 %5934 }
0x79dc   :  { %5937 = vst.msk [vmem:[%s8500_s12] sm:$0xc] %vm1424_vm10, %v5935_v60 }
0x7a34   :  { %v5103_v63 = vpop.permute.xlu1 %5102 }
0x7a35   :  { %5105 = vst.msk [vmem:[%s8500_s12 + $0x8] sm:$0xc0] %vm649_vm5, %v5103_v63 }
0x7a36   :  { %5213 = vst.msk [vmem:[%s8500_s12 + $0x8] sm:$0xc0] %vm1196_vm9, %v5211_v55 }
0x7a38   :  { %v5335_v11 = vpop.permute.xlu1 %5334 }
0x7a39   :  { %5337 = vst.msk [vmem:[%s8500_s12 + $0x8] sm:$0x30] %vm1310_vm6, %v5335_v11 }
0x7a3c   :  { %v5576_v1 = vpop.permute.xlu1 %5575 }
0x7a3d   :  { %5578 = vst.msk [vmem:[%s8500_s12 + $0x8] sm:$0x3] %vm1537_vm7, %v5576_v1 }
0x7a40   :  { %v5817_v9 = vpop.permute.xlu1 %5816 }
0x7a41   :  { %5819 = vst.msk [vmem:[%s8500_s12] sm:$0x30] %vm1310_vm6, %v5817_v9 }
0x7a44   :  { %v6058_v16 = vpop.permute.xlu1 %6057 }
0x7a45   :  { %6060 = vst.msk [vmem:[%s8500_s12] sm:$0x3] %vm1537_vm7, %v6058_v16 }
0x7a46   :  { %6065 = vsyncpa [#allocation5], 1 }
0x7a47   :  { %6066 = vsyncpa [#allocation7], 1 }
0x7a48   :  { %6067 = vsyncpa [#allocation10], 1 }
0x7a49   :  { %6068 = vsyncpa [#allocation13], 1 }

</bundles_post_ra>
